<compile_context>
chip_gen: v7x
topology: tpu7x:2x2x1
jax: 0.10.0
libtpu: 0.0.40
codegen_flags: <defaults>
</compile_context>

<pallas_src>
import functools
import math

import jax
import jax.numpy as jnp
from jax import lax
from jax.experimental import pallas as pl
from jax.experimental.pallas import tpu as pltpu


def _cwsa_kernel(w_ref, bv_ref, x_ref, o_ref, *, c4, exp_dtype):
    # w_ref : (2*C4, C) bf16 -- rows [0:C4] = Wq * factor**-0.5, rows [C4:] = Wv
    # bv_ref: (C4, 1)   f32
    # x_ref : (bt, C, N) f32  (cast to bf16 here; no wrapper-side pass over x)
    # o_ref : (bt, C4, N)
    bt = x_ref.shape[0]

    x = x_ref[...].astype(jnp.bfloat16)                            # (bt, C, N)
    w = jnp.broadcast_to(w_ref[...][None], (bt,) + w_ref.shape)    # (bt, 2C4, C)

    # Fused q/v projection for the whole batch tile: canonical batched matmul
    # 'bok,bkn->bon' on the MXU, f32 accumulation.  Hoisted (no inner loop).
    qv = lax.dot_general(
        w, x, dimension_numbers=(((2,), (1,)), ((0,), (0,))),
        preferred_element_type=jnp.float32)                        # (bt, 2C4, N)

    # q is pre-scaled by factor**-0.5 (folded into Wq on the host).
    q = qv[:, :c4, :]                                              # (bt, C4, N) f32
    v = qv[:, c4:, :] + bv_ref[...][None]                          # (bt, C4, N) f32

    # One explicit (C4, N) -> (N, C4) transpose per sample (XLU slot is idle)
    # so the Gram matmul below is the well-trodden 'bnc,bmc->bnm' pattern.
    q_t = jnp.swapaxes(q, -1, -2).astype(jnp.bfloat16)             # (bt, N, C4)

    # energy[b, n, m] = sum_c q[b, c, n] * q[b, c, m]   (tied q/k weights)
    energy = lax.dot_general(
        q_t, q_t, dimension_numbers=(((2,), (2,)), ((0,), (0,))),
        preferred_element_type=jnp.float32)                        # (bt, N, N) f32

    # Numerically stable softmax over the last axis.  1/denom is folded into v
    # so the N x N path never sees the normalization multiply.
    m = jnp.max(energy, axis=-1, keepdims=True)                    # (bt, N, 1) f32
    e = jnp.exp((energy - m).astype(exp_dtype))                    # (bt, N, N)
    denom = jnp.sum(e, axis=-1, keepdims=True, dtype=jnp.float32)  # f32 accumulate
    r = pl.reciprocal(denom, approx=True)                          # (bt, N, 1), EUP

    r_row = jnp.swapaxes(r, -1, -2)                                # (bt, 1, N)
    v_scaled = (v * r_row).astype(jnp.bfloat16)                    # (bt, C4, N)

    # out[b, c, m] = sum_n v_scaled[b, c, n] * e[b, n, m]   (canonical batched)
    out = lax.dot_general(
        v_scaled, e.astype(jnp.bfloat16),
        dimension_numbers=(((2,), (1,)), ((0,), (0,))),
        preferred_element_type=jnp.float32)                        # (bt, C4, N)
    o_ref[...] = out.astype(o_ref.dtype)


def _device_kind():
    try:
        return jax.devices()[0].device_kind.lower()
    except Exception:
        return ""


def _per_sample_vmem_bytes(C, C4, N, exp_bytes):
    # f32 x tile + f32 out tile (double-buffered by the BlockSpec pipeline)
    io = 2 * C * N * 4 + 2 * C4 * N * 4
    temps = (C * N * 2             # x cast to bf16
             + 2 * C4 * N * 4      # qv (f32)
             + 2 * C4 * N * 2      # q_t + v_scaled (bf16)
             + N * N * 4           # energy (f32)
             + N * N * exp_bytes   # e
             + N * N * 2           # e as bf16 MXU operand (worst case, v5e)
             + 4 * N * 4)          # m / denom / r rows
    return io + temps


def _pick_block_batch(B, device_kind, per_sample_bytes, budget_bytes=24 << 20):
    cap = max(1, int(budget_bytes // max(per_sample_bytes, 1)))
    if "v7" in device_kind:
        # v7x has 2 TensorCores: want >= 2 parallel grid steps per core
        # (grid >= 4) so the pipeline hides x DMA / output writeback.
        cap = min(cap, max(B // 4, 1))
    # On single-TensorCore chips (v5e / v6e) extra grid steps are pure
    # ~0.35us/step overhead, so take the largest batch tile that fits VMEM.
    cap = min(cap, B)
    for bt in range(cap, 0, -1):
        if B % bt == 0:
            return bt
    return 1


def _vmem_limit_bytes(bt, C, C4, N, per_sample_bytes):
    fixed = 2 * (2 * C4 * C * 2) + 2 * (C4 * 4)   # stacked bf16 weights + bias
    total = fixed + bt * per_sample_bytes
    # 2x headroom for compiler scratch; clamp so we never exceed v7x's 64 MiB
    # physical VMEM (48 MiB cap) nor fall below a useful 16 MiB floor.
    return int(min(max(2 * total, 16 << 20), 48 << 20))


def cwsa_layer(x, wq, wv, bv):
    """x: (B, C, N) f32; wq, wv: (C//4, C); bv: (C//4,). Returns (B, C//4, N)."""
    B, C, N = x.shape
    C4 = C // 4
    factor = math.sqrt(C4)

    dk = _device_kind()
    # bf16 exp only on bf16-capable EUPs (v6e / v7x); keep f32 on v5e / unknown.
    use_bf16_exp = ("v6" in dk) or ("v7" in dk)
    exp_dtype = jnp.bfloat16 if use_bf16_exp else jnp.float32

    per_sample = _per_sample_vmem_bytes(C, C4, N, 2 if use_bf16_exp else 4)
    bt = _pick_block_batch(B, dk, per_sample)
    grid = (B // bt,)

    # Fold the 1/factor energy scaling into Wq (q and k share Wq, so q^T q
    # picks up the full 1/factor) and stack Wq/Wv so the projection is a
    # single MXU matmul.  Weight prep is a tiny (2*C4, C) host-side op; x
    # itself is passed f32 and cast to bf16 inside the kernel.
    w = jnp.concatenate([wq * (factor ** -0.5), wv], axis=0).astype(jnp.bfloat16)
    bv2 = bv.reshape(C4, 1).astype(jnp.float32)

    kernel = functools.partial(_cwsa_kernel, c4=C4, exp_dtype=exp_dtype)

    return pl.pallas_call(
        kernel,
        out_shape=jax.ShapeDtypeStruct((B, C4, N), x.dtype),
        grid_spec=pltpu.PrefetchScalarGridSpec(
            num_scalar_prefetch=0,
            grid=grid,
            in_specs=[
                pl.BlockSpec((2 * C4, C), lambda b: (0, 0)),    # stacked Wq|Wv
                pl.BlockSpec((C4, 1), lambda b: (0, 0)),        # bv
                pl.BlockSpec((bt, C, N), lambda b: (b, 0, 0)),  # x batch tile
            ],
            out_specs=pl.BlockSpec((bt, C4, N), lambda b: (b, 0, 0)),
        ),
        compiler_params=pltpu.CompilerParams(
            dimension_semantics=("parallel",),
            vmem_limit_bytes=_vmem_limit_bytes(bt, C, C4, N, per_sample)),
    )(w, bv2, x)


def cwsa_reference(x, wq, wv, bv):
    """Pure-JAX f32 reference matching the PyTorch forward (tied q/k weights)."""
    C4 = wq.shape[0]
    factor = math.sqrt(C4)
    x_q = jnp.einsum("oc,bcn->bon", wq, x)                     # (B, C4, N)
    x_k = x_q.transpose(0, 2, 1)                               # (B, N, C4)
    x_v = jnp.einsum("oc,bcn->bon", wv, x) + bv[None, :, None]
    energy = jnp.einsum("bnc,bcm->bnm", x_k, x_q) / factor
    attn = jax.nn.softmax(energy, axis=-1)
    return jnp.einsum("bcn,bnm->bcm", x_v, attn)


if __name__ == "__main__":
    # channels=32 -> C//4 = 8 (sublane aligned); N=128 (lane aligned); B=8 so
    # the batch tiling gives grid=(1,) on v5e/v6e and grid=(4,) on v7x.
    B, C, N = 8, 32, 128
    C4 = C // 4

    key = jax.random.PRNGKey(0)
    kx, kq, kv, kb = jax.random.split(key, 4)
    x = jax.random.normal(kx, (B, C, N), dtype=jnp.float32)
    # Conv1d(C, C4, 1) weights: (out, in, 1) -> squeeze kernel dim -> (C4, C)
    wq = jax.random.normal(kq, (C4, C), dtype=jnp.float32) * 0.1
    wv = jax.random.normal(kv, (C4, C), dtype=jnp.float32) * 0.1
    bv = jax.random.normal(kb, (C4,), dtype=jnp.float32) * 0.1

    out = jax.block_until_ready(cwsa_layer(x, wq, wv, bv))
    ref = cwsa_reference(x, wq, wv, bv)

    assert out.shape == (B, C4, N)
    # bf16 MXU operands, (optionally) bf16 exp and approx reciprocal vs the
    # exact f32 reference: tolerance covers the deliberate precision trades.
    max_err = float(jnp.max(jnp.abs(out - ref)))
    assert jnp.allclose(out, ref, atol=5e-2, rtol=5e-2), max_err

    print("KERNEL_OK")
</pallas_src>

<mosaic_0001>
module attributes {stable_mosaic.version = 11 : i64} {
  func.func @_cwsa_kernel(%arg0: i32, %arg1: memref<16x32xbf16, #tpu.memory_space<vmem>>, %arg2: memref<8x1xf32, #tpu.memory_space<vmem>>, %arg3: memref<8x32x128xf32, #tpu.memory_space<vmem>>, %arg4: memref<8x8x128xf32, #tpu.memory_space<vmem>>) attributes {dimension_semantics = [#tpu.dimension_semantics<parallel>], iteration_bounds = array<i64: 1>, scalar_prefetch = 0 : i64, scratch_operands = 0 : i64, tpu.core_type = #tpu.core_type<tc>, window_params = [{pipeline_mode = #tpu.pipeline_mode<synchronous>, transform_indices = @transform_0, window_bounds = array<i64: 16, 32>}, {pipeline_mode = #tpu.pipeline_mode<synchronous>, transform_indices = @transform_1, window_bounds = array<i64: 8, 1>}, {transform_indices = @transform_2, window_bounds = array<i64: 8, 32, 128>}, {transform_indices = @transform_3, window_bounds = array<i64: 8, 8, 128>}]} {
    %c0 = arith.constant 0 : index
    %c0_0 = arith.constant 0 : index
    %c0_1 = arith.constant 0 : index
    %0 = vector.load %arg3[%c0, %c0_0, %c0_1] : memref<8x32x128xf32, #tpu.memory_space<vmem>>, vector<8x32x128xf32>
    %1 = arith.truncf %0 : vector<8x32x128xf32> to vector<8x32x128xbf16>
    %c0_2 = arith.constant 0 : index
    %c0_3 = arith.constant 0 : index
    %2 = vector.load %arg1[%c0_2, %c0_3] : memref<16x32xbf16, #tpu.memory_space<vmem>>, vector<16x32xbf16>
    %3 = vector.shape_cast %2 : vector<16x32xbf16> to vector<1x16x32xbf16>
    %4 = vector.shape_cast %3 : vector<1x16x32xbf16> to vector<1x16x32xbf16>
    %5 = vector.broadcast %4 : vector<1x16x32xbf16> to vector<8x16x32xbf16>
    %cst = arith.constant dense<0.000000e+00> : vector<8x16x128xf32>
    %6 = tpu.matmul %5, %1, %cst {dimension_numbers = #tpu.dot_dimension_numbers<[2], [1], [1], [2], [0, 0, 0, 1, 1, 2], [0], [0]>} : vector<8x16x32xbf16>, vector<8x32x128xbf16>, vector<8x16x128xf32> -> vector<8x16x128xf32>
    %7 = vector.extract_strided_slice %6 {offsets = [0, 0, 0], sizes = [8, 8, 128], strides = [1, 1, 1]} : vector<8x16x128xf32> to vector<8x8x128xf32>
    %8 = vector.extract_strided_slice %6 {offsets = [0, 8, 0], sizes = [8, 8, 128], strides = [1, 1, 1]} : vector<8x16x128xf32> to vector<8x8x128xf32>
    %c0_4 = arith.constant 0 : index
    %c0_5 = arith.constant 0 : index
    %9 = vector.load %arg2[%c0_4, %c0_5] : memref<8x1xf32, #tpu.memory_space<vmem>>, vector<8x1xf32>
    %10 = vector.shape_cast %9 : vector<8x1xf32> to vector<1x8x1xf32>
    %11 = vector.broadcast %10 : vector<1x8x1xf32> to vector<8x8x128xf32>
    %12 = arith.addf %8, %11 : vector<8x8x128xf32>
    %13 = tpu.transpose %7, [0, 2, 1] : vector<8x8x128xf32> -> vector<8x128x8xf32>
    %14 = arith.truncf %13 : vector<8x128x8xf32> to vector<8x128x8xbf16>
    %cst_6 = arith.constant dense<0.000000e+00> : vector<8x128x128xf32>
    %15 = tpu.matmul %14, %14, %cst_6 {dimension_numbers = #tpu.dot_dimension_numbers<[2], [2], [1], [1], [0, 0, 0, 1, 1, 1], [0], [0]>} : vector<8x128x8xbf16>, vector<8x128x8xbf16>, vector<8x128x128xf32> -> vector<8x128x128xf32>
    %cst_7 = arith.constant dense<0xFF800000> : vector<8x128xf32>
    %16 = vector.multi_reduction <maximumf>, %15, %cst_7 [2] : vector<8x128x128xf32> to vector<8x128xf32>
    %17 = vector.shape_cast %16 : vector<8x128xf32> to vector<8x128x1xf32>
    %18 = vector.broadcast %17 : vector<8x128x1xf32> to vector<8x128x128xf32>
    %19 = arith.subf %15, %18 : vector<8x128x128xf32>
    %20 = math.exp %19 : vector<8x128x128xf32>
    %cst_8 = arith.constant dense<0.000000e+00> : vector<8x128xf32>
    %21 = vector.multi_reduction <add>, %20, %cst_8 [2] : vector<8x128x128xf32> to vector<8x128xf32>
    %22 = vector.shape_cast %21 : vector<8x128xf32> to vector<8x128x1xf32>
    %23 = tpu.reciprocal %22 {approx = true} : vector<8x128x1xf32> -> vector<8x128x1xf32>
    %24 = tpu.transpose %23, [0, 2, 1] : vector<8x128x1xf32> -> vector<8x1x128xf32>
    %25 = vector.broadcast %24 : vector<8x1x128xf32> to vector<8x8x128xf32>
    %26 = arith.mulf %12, %25 : vector<8x8x128xf32>
    %27 = arith.truncf %26 : vector<8x8x128xf32> to vector<8x8x128xbf16>
    %28 = arith.truncf %20 : vector<8x128x128xf32> to vector<8x128x128xbf16>
    %cst_9 = arith.constant dense<0.000000e+00> : vector<8x8x128xf32>
    %29 = tpu.matmul %27, %28, %cst_9 {dimension_numbers = #tpu.dot_dimension_numbers<[2], [1], [1], [2], [0, 0, 0, 1, 1, 2], [0], [0]>} : vector<8x8x128xbf16>, vector<8x128x128xbf16>, vector<8x8x128xf32> -> vector<8x8x128xf32>
    %c0_10 = arith.constant 0 : index
    %c0_11 = arith.constant 0 : index
    %c0_12 = arith.constant 0 : index
    %30 = vector.load %arg4[%c0_10, %c0_11, %c0_12] : memref<8x8x128xf32, #tpu.memory_space<vmem>>, vector<8x8x128xf32>
    tpu.vector_store %arg4[%c0_10, %c0_11, %c0_12], %29 {strides = array<i32>} : memref<8x8x128xf32, #tpu.memory_space<vmem>>, vector<8x8x128xf32>,
    return
  }
  func.func @transform_0(%arg0: i32) -> (i32, i32) {
    %c0_i32 = arith.constant 0 : i32
    %c0_i32_0 = arith.constant 0 : i32
    %c0_i32_1 = arith.constant 0 : i32
    return %c0_i32, %c0_i32_0 : i32, i32
  }
  func.func @transform_1(%arg0: i32) -> (i32, i32) {
    %c0_i32 = arith.constant 0 : i32
    %c0_i32_0 = arith.constant 0 : i32
    %c0_i32_1 = arith.constant 0 : i32
    return %c0_i32, %c0_i32_0 : i32, i32
  }
  func.func @transform_2(%arg0: i32) -> (i32, i32, i32) {
    %c0_i32 = arith.constant 0 : i32
    %c0_i32_0 = arith.constant 0 : i32
    %c0_i32_1 = arith.constant 0 : i32
    return %arg0, %c0_i32, %c0_i32_0 : i32, i32, i32
  }
  func.func @transform_3(%arg0: i32) -> (i32, i32, i32) {
    %c0_i32 = arith.constant 0 : i32
    %c0_i32_0 = arith.constant 0 : i32
    %c0_i32_1 = arith.constant 0 : i32
    return %arg0, %c0_i32, %c0_i32_0 : i32, i32, i32
  }
}

</mosaic_0001>

<bundles_post_ra>
// kernel: tpu_custom_call.1
= control target key start
LH: loop header
LB: loop body
LE: loop exit
PB: predicated region body
PF: predicated region fallthrough
CT: control target
= control target key end

     0   :  { %8 = vsyncpa [#allocation3], 0  ;;  %s7938_s0 = inlined_call_operand.vmem [shape: bf16[16,32], index: 0, kind: input, shape index: {}]   ;;  %s7939_s1 = inlined_call_operand.vmem [shape: f32[8,1], index: 1, kind: input, shape index: {}]   ;;  %s7940_s2 = inlined_call_operand.hbm [shape: f32[8,32,128], index: 2, kind: input, shape index: {}]   ;;  %s7941_s3 = inlined_call_operand.hbm [shape: f32[8,8,128], index: 3, kind: output, shape index: {}]  }
   0x1   :  { %9 = vsyncpa [#allocation4], 0  ;;  %s5195_s12 = smov [#allocation2]   ;;  %s5147_s16 = scalar_lea.hbm %s7940_s2, 4096 }
   0x2   :  { %s19_s13 = sshll.u32 %s5195_s12, 4  ;;  %p5148_p0 = scmp.ne.s32.totalorder %s7940_s2, %s5147_s16  ;;  %s20_s13 = int_to_ptr.vmem [resolvable:$true] %s19_s13 }
   0x3   :  { %p5151_p1 = scmp.lt.u32.totalorder %s5147_s16, %s7940_s2 }
   0x5   :  { %p5153_p2 = pnand %p5151_p1, %p5148_p0 }
   0x7   :  { %5156 = shalt.err (!%p5153_p2)
}
   0x8   :  { %s5157_s21 = scalar_lea.vmem %s20_s13, 4096  ;;  %p5162_p4 = scmp.lt.s32.totalorder %s20_s13, %s20_s13 }
   0x9   :  { %p5158_p3 = scmp.ne.s32.totalorder %s20_s13, %s5157_s21  ;;  %p5163_p5 = scmp.lt.s32.totalorder %s5157_s21, %s5157_s21 }
   0xb   :  { %p5164_p6 = por %p5163_p5, %p5162_p4 }
   0xd   :  { %p5165_p7 = pnand %p5164_p6, %p5158_p3 }
   0xf   :  { %5168 = shalt.err (!%p5165_p7)
}
  0x10   :  { %s5196_s22 = smov 128   ;;  %s5197_s23 = smov 8  }
  0x11   :  { %25 = dma.hbm_to_vmem [thread:$0]  %s7940_s2, 4096, %s20_s13, [#allocation3], %s5196_s22, %s5196_s22, %s5197_s23  }
  0x12   :  { %5191 = dma.done.wait [#allocation3], 4096  }
  0x13   :  { %5192 = vsyncadd [#allocation3], 4294963200  ;;  %v7942_v0 = vmov 0.0   ;;  %vm5199_vm0 = vmmov 0   ;;  %v5200_v1 = vmov 0   ;;  %v30_v2 = vld [vmem:[#allocation2] sm:$0xff] }
  0x14   :  { %3754 = vmatprep.subr.bf16.mxu0 %v7942_v0  ;;  %3762 = vmatprep.subr.bf16.mxu1 %v7942_v0  ;;  %v31_v3 = vld [vmem:[#allocation2 + $0x8] sm:$0xff]  ;;  %v34_v4 = vld [vmem:[#allocation2 + $0x20] sm:$0xff]  ;;  %v32_v7 = vld [vmem:[#allocation2 + $0x10] sm:$0xff]  ;;  %vm85_vm1 = vcmask 261120   ;;  %vm751_vm2 = vcmask 64512  }
  0x15   :  { %3758 = vmatprep.mubr.msk.bf16.mxu0 %vm5199_vm0, %v7942_v0  ;;  %3766 = vmatprep.mubr.msk.bf16.mxu1 %vm5199_vm0, %v7942_v0  ;;  %v62_v5 = vpack.c.bf16 %v31_v3, %v30_v2  ;;  %v35_v6 = vld [vmem:[#allocation2 + $0x28] sm:$0xff]  ;;  %v33_v8 = vld [vmem:[#allocation2 + $0x18] sm:$0xff]  ;;  %v36_v10 = vld [vmem:[#allocation2 + $0x30] sm:$0xff] }
  0x16   :  { %4305 = vset.pattern.permute.xlu0 %v5200_v1  ;;  %v64_v9 = vpack.c.bf16 %v35_v6, %v34_v4  ;;  %v37_v11 = vld [vmem:[#allocation2 + $0x38] sm:$0xff]  ;;  %v63_v12 = vpack.c.bf16 %v33_v8, %v32_v7  ;;  %v38_v14 = vld [vmem:[#allocation2 + $0x40] sm:$0xff]  ;;  %v39_v15 = vld [vmem:[#allocation2 + $0x48] sm:$0xff] }
  0x17   :  { %3755 = vmatpush3.bf16.msra.mxu0 %v62_v5  ;;  %v65_v13 = vpack.c.bf16 %v37_v11, %v36_v10  ;;  %v42_v16 = vld [vmem:[#allocation2 + $0x60] sm:$0xff]  ;;  %v43_v17 = vld [vmem:[#allocation2 + $0x68] sm:$0xff]  ;;  %v66_v19 = vpack.c.bf16 %v39_v15, %v38_v14  ;;  %v40_v22 = vld [vmem:[#allocation2 + $0x50] sm:$0xff] }
  0x18   :  { %3763 = vmatpush3.bf16.msra.mxu1 %v64_v9  ;;  %3756 = vmatprep.subr.bf16.mxu0 %v7942_v0  ;;  %v5248_v18 = vld [vmem:[%s7938_s0] sm:$0xff]   ;;  %v68_v21 = vpack.c.bf16 %v43_v17, %v42_v16  ;;  %v41_v23 = vld [vmem:[#allocation2 + $0x58] sm:$0xff]  ;;  %v44_v24 = vld [vmem:[#allocation2 + $0x70] sm:$0xff]  ;;  %s5201_s0 = smov [#allocation5]  }
  0x19   :  { %3764 = vmatprep.subr.bf16.mxu1 %v7942_v0  ;;  %v417_v20 = vld [vmem:[%s7939_s1] sm:$0xff]  ;;  %v45_v25 = vld [vmem:[#allocation2 + $0x78] sm:$0xff]  ;;  %v67_v26 = vpack.c.bf16 %v41_v23, %v40_v22  ;;  %v47_v29 = vld [vmem:[#allocation2 + $0x88] sm:$0xff]  ;;  %s3445_s1 = sshll.u32 %s5201_s0, 4  ;;  %s3446_s1 = int_to_ptr.vmem [resolvable:$true] %s3445_s1 }
  0x1a   :  { %420 = vperm.xlu0 %4305, %v417_v20   ;;  %v69_v27 = vpack.c.bf16 %v45_v25, %v44_v24  ;;  %v46_v28 = vld [vmem:[#allocation2 + $0x80] sm:$0xff]  ;;  %v51_v31 = vld [vmem:[#allocation2 + $0xa8] sm:$0xff]  ;;  %v48_v34 = vld [vmem:[#allocation2 + $0x90] sm:$0xff]  ;;  %s5169_s29 = scalar_lea.vmem %s3446_s1, 1024  ;;  %p5174_p9 = scmp.lt.s32.totalorder %s3446_s1, %s3446_s1 }
  0x1b   :  { %3757 = vmatpush3.bf16.msra.mxu0 %v63_v12  ;;  %v50_v30 = vld [vmem:[#allocation2 + $0xa0] sm:$0xff]  ;;  %v70_v32 = vpack.c.bf16 %v47_v29, %v46_v28  ;;  %v49_v35 = vld [vmem:[#allocation2 + $0x98] sm:$0xff]  ;;  %v52_v36 = vld [vmem:[#allocation2 + $0xb0] sm:$0xff]  ;;  %p5170_p8 = scmp.ne.s32.totalorder %s3446_s1, %s5169_s29  ;;  %p5175_p10 = scmp.lt.s32.totalorder %s5169_s29, %s5169_s29 }
  0x1c   :  { %3765 = vmatpush3.bf16.msra.mxu1 %v65_v13  ;;  %3770 = vmatprep.subr.bf16.mxu0 %v7942_v0  ;;  %v72_v33 = vpack.c.bf16 %v51_v31, %v50_v30  ;;  %v53_v37 = vld [vmem:[#allocation2 + $0xb8] sm:$0xff]  ;;  %v71_v38 = vpack.c.bf16 %v49_v35, %v48_v34  ;;  %v54_v40 = vld [vmem:[#allocation2 + $0xc0] sm:$0xff]  ;;  %v55_v41 = vld [vmem:[#allocation2 + $0xc8] sm:$0xff] }
  0x1d   :  { %3778 = vmatprep.subr.bf16.mxu1 %v7942_v0  ;;  %v73_v39 = vpack.c.bf16 %v53_v37, %v52_v36  ;;  %v58_v42 = vld [vmem:[#allocation2 + $0xe0] sm:$0xff]  ;;  %v59_v43 = vld [vmem:[#allocation2 + $0xe8] sm:$0xff]  ;;  %v74_v44 = vpack.c.bf16 %v55_v41, %v54_v40  ;;  %v56_v46 = vld [vmem:[#allocation2 + $0xd0] sm:$0xff]  ;;  %p5176_p11 = por %p5175_p10, %p5174_p9 }
  0x1e   :  { %3759 = vmatmul.mubr.msk.bf16.vlgmr.msra.gmra.mrb[0].mxu0 %vm85_vm1, %v5248_v18  ;;  %v76_v45 = vpack.c.bf16 %v59_v43, %v58_v42  ;;  %v57_v47 = vld [vmem:[#allocation2 + $0xd8] sm:$0xff]  ;;  %v60_v48 = vld [vmem:[#allocation2 + $0xf0] sm:$0xff] }
  0x1f   :  { %3767 = vmatmul.mubr.msk.bf16.vlgmr.msra.gmra.mrb[0].mxu1 %vm85_vm1, %v5248_v18  ;;  %3771 = vmatpush3.bf16.msra.mxu0 %v66_v19  ;;  %v61_v49 = vld [vmem:[#allocation2 + $0xf8] sm:$0xff]  ;;  %v75_v50 = vpack.c.bf16 %v57_v47, %v56_v46  ;;  %p5177_p12 = pnand %p5176_p11, %p5170_p8 }
  0x20   :  { %3779 = vmatpush3.bf16.msra.mxu1 %v68_v21  ;;  %3772 = vmatprep.subr.bf16.mxu0 %v7942_v0  ;;  %v77_v51 = vpack.c.bf16 %v61_v49, %v60_v48 }
  0x21   :  { %3780 = vmatprep.subr.bf16.mxu1 %v7942_v0  ;;  %3774 = vmatprep.mubr.msk.bf16.mxu0 %vm5199_vm0, %v7942_v0 }
  0x22   :  { %3782 = vmatprep.mubr.msk.bf16.mxu1 %vm5199_vm0, %v7942_v0 }
  0x23   :  { %3773 = vmatpush3.bf16.msra.mxu0 %v67_v26 }
  0x24   :  { %3781 = vmatpush3.bf16.msra.mxu1 %v69_v27  ;;  %3786 = vmatprep.subr.bf16.mxu0 %v7942_v0 }
  0x25   :  { %3794 = vmatprep.subr.bf16.mxu1 %v7942_v0 }
  0x26   :  { %3775 = vmatmul.mubr.msk.bf16.vlgmr.msra.gmra.mrb[4].mxu0 %vm85_vm1, %v5248_v18 }
  0x27   :  { %3783 = vmatmul.mubr.msk.bf16.vlgmr.msra.gmra.mrb[4].mxu1 %vm85_vm1, %v5248_v18  ;;  %3787 = vmatpush3.bf16.msra.mxu0 %v70_v32 }
  0x28   :  { %3795 = vmatpush3.bf16.msra.mxu1 %v72_v33  ;;  %3788 = vmatprep.subr.bf16.mxu0 %v7942_v0 }
  0x29   :  { %3796 = vmatprep.subr.bf16.mxu1 %v7942_v0  ;;  %3790 = vmatprep.mubr.msk.bf16.mxu0 %vm5199_vm0, %v7942_v0 }
  0x2a   :  { %3798 = vmatprep.mubr.msk.bf16.mxu1 %vm5199_vm0, %v7942_v0 }
  0x2b   :  { %3789 = vmatpush3.bf16.msra.mxu0 %v71_v38 }
  0x2c   :  { %3797 = vmatpush3.bf16.msra.mxu1 %v73_v39  ;;  %3802 = vmatprep.subr.bf16.mxu0 %v7942_v0 }
  0x2d   :  { %3810 = vmatprep.subr.bf16.mxu1 %v7942_v0 }
  0x2e   :  { %3791 = vmatmul.mubr.msk.bf16.vlgmr.msra.gmra.mrb[8].mxu0 %vm85_vm1, %v5248_v18 }
  0x2f   :  { %3799 = vmatmul.mubr.msk.bf16.vlgmr.msra.gmra.mrb[8].mxu1 %vm85_vm1, %v5248_v18  ;;  %3803 = vmatpush3.bf16.msra.mxu0 %v74_v44 }
  0x30   :  { %3811 = vmatpush3.bf16.msra.mxu1 %v76_v45  ;;  %3804 = vmatprep.subr.bf16.mxu0 %v7942_v0 }
  0x31   :  { %3812 = vmatprep.subr.bf16.mxu1 %v7942_v0  ;;  %3806 = vmatprep.mubr.msk.bf16.mxu0 %vm5199_vm0, %v7942_v0 }
  0x32   :  { %3814 = vmatprep.mubr.msk.bf16.mxu1 %vm5199_vm0, %v7942_v0 }
  0x33   :  { %3805 = vmatpush3.bf16.msra.mxu0 %v75_v50 }
  0x34   :  { %3813 = vmatpush3.bf16.msra.mxu1 %v77_v51 }
  0x36   :  { %3807 = vmatmul.mubr.msk.bf16.vlgmr.msra.gmra.mrb[12].mxu0 %vm85_vm1, %v5248_v18 }
  0x37   :  { %3815 = vmatmul.mubr.msk.bf16.vlgmr.msra.gmra.mrb[12].mxu1 %vm85_vm1, %v5248_v18 }
  0x99   :  { %v5309_v25 = vpop.permute.xlu0 %420 }
  0x9a   :  { %8233 = vst [vmem:[#allocation16_spill] sm:$0xff] %v5309_v25 }
  0xf1   :  { %v123_v52 = vpop.f32.mrb[0].mxu0 }
  0xf2   :  { %v164_v53 = vpop.f32.mrb[0].mxu1  ;;  %v3760_v54 = vpop.f32.mrb[1].mxu0 }
  0xf3   :  { %v4306_v55 = vpack.i.bf16 %v164_v53, %v123_v52  ;;  %v3768_v56 = vpop.f32.mrb[1].mxu1  ;;  %v5293_v57 = vpop.f32.mrb[2].mxu0 }
  0xf4   :  { %8225 = vst [vmem:[#allocation8_spill] sm:$0xff] %v5293_v57  ;;  %v5295_v58 = vpop.f32.mrb[2].mxu1  ;;  %v3761_v59 = vpop.f32.mrb[3].mxu0 }
  0xf5   :  { %8226 = vst [vmem:[#allocation9_spill] sm:$0xff] %v5295_v58  ;;  %v3769_v60 = vpop.f32.mrb[3].mxu1  ;;  %4307 = vxpose.xlu0.b32.start.end [1/1] (short) %v4306_v55, 128 }
  0xf9   :  { %v205_v61 = vpop.f32.mrb[4].mxu0 }
  0xfa   :  { %v246_v62 = vpop.f32.mrb[4].mxu1  ;;  %v3776_v63 = vpop.f32.mrb[5].mxu0 }
  0xfb   :  { %v4388_v1 = vpack.i.bf16 %v246_v62, %v205_v61  ;;  %v3784_v2 = vpop.f32.mrb[5].mxu1  ;;  %v5297_v3 = vpop.f32.mrb[6].mxu0 }
  0xfc   :  { %8227 = vst [vmem:[#allocation10_spill] sm:$0xff] %v5297_v3  ;;  %v5299_v4 = vpop.f32.mrb[6].mxu1  ;;  %v3777_v5 = vpop.f32.mrb[7].mxu0 }
  0xfd   :  { %8228 = vst [vmem:[#allocation11_spill] sm:$0xff] %v5299_v4  ;;  %4389 = vxpose.xlu1.b32.start.end [1/1] (short) %v4388_v1, 128  ;;  %v3785_v6 = vpop.f32.mrb[7].mxu1 }
 0x101   :  { %v287_v7 = vpop.f32.mrb[8].mxu0 }
 0x102   :  { %v328_v8 = vpop.f32.mrb[8].mxu1  ;;  %v3792_v9 = vpop.f32.mrb[9].mxu0 }
 0x103   :  { %v4470_v10 = vpack.i.bf16 %v328_v8, %v287_v7  ;;  %v3800_v11 = vpop.f32.mrb[9].mxu1  ;;  %v5301_v12 = vpop.f32.mrb[10].mxu0 }
 0x104   :  { %8229 = vst [vmem:[#allocation12_spill] sm:$0xff] %v5301_v12  ;;  %v5303_v13 = vpop.f32.mrb[10].mxu1  ;;  %v3793_v14 = vpop.f32.mrb[11].mxu0 }
 0x105   :  { %8230 = vst [vmem:[#allocation13_spill] sm:$0xff] %v5303_v13  ;;  %v3801_v15 = vpop.f32.mrb[11].mxu1 }
 0x109   :  { %v369_v16 = vpop.f32.mrb[12].mxu0 }
 0x10a   :  { %v410_v17 = vpop.f32.mrb[12].mxu1  ;;  %v3808_v18 = vpop.f32.mrb[13].mxu0 }
 0x10b   :  { %v4552_v19 = vpack.i.bf16 %v410_v17, %v369_v16  ;;  %v3816_v20 = vpop.f32.mrb[13].mxu1  ;;  %v5305_v21 = vpop.f32.mrb[14].mxu0 }
 0x10c   :  { %8231 = vst [vmem:[#allocation14_spill] sm:$0xff] %v5305_v21  ;;  %v5307_v22 = vpop.f32.mrb[14].mxu1  ;;  %v3809_v23 = vpop.f32.mrb[15].mxu0 }
 0x10d   :  { %8232 = vst [vmem:[#allocation15_spill] sm:$0xff] %v5307_v22  ;;  %v3817_v24 = vpop.f32.mrb[15].mxu1 }
 0x132   :  { %4553 = vxpose.xlu0.b32.start.end [1/1] (short) %v4552_v19, 128 }
 0x13a   :  { %4471 = vxpose.xlu1.b32.start.end [1/1] (short) %v4470_v10, 128 }
 0x175   :  { %v4308_v26 = vpop.trf.xlu0 }
 0x176   :  { %v4312_v27 = vunpack.i.h.bf16 %v4308_v26  ;;  %v4309_v28 = vunpack.i.l.bf16 %v4308_v26 }
 0x179   :  { %v4313_v29 = vpop.trf.xlu0 }
 0x17a   :  { %v4317_v30 = vunpack.i.h.bf16 %v4313_v29  ;;  %v4314_v31 = vunpack.i.l.bf16 %v4313_v29 }
 0x17c   :  { %v687_v32 = vpack.c.bf16 %v4314_v31, %v4309_v28  ;;  %v695_v33 = vpack.c.bf16 %v4317_v30, %v4312_v27 }
 0x17d   :  { %v4318_v34 = vpop.trf.xlu0  ;;  %v5311_v35 = vpop.trf.xlu1 }
 0x17e   :  { %4234 = vmatprep.subr.msk.bf16.mxu0 %vm751_vm2, %v687_v32  ;;  %3834 = vmatprep.mubr.msk.bf16.mxu0 %vm751_vm2, %v687_v32  ;;  %v753_v36 = vsel %vm751_vm2, %v687_v32, 0  ;;  %v874_v37 = vsel %vm751_vm2, %v695_v33, 0  ;;  %v4322_v38 = vunpack.i.h.bf16 %v4318_v34  ;;  %v4319_v39 = vunpack.i.l.bf16 %v4318_v34 }
 0x17f   :  { %4242 = vmatprep.subr.msk.bf16.mxu1 %vm751_vm2, %v695_v33  ;;  %3866 = vmatprep.mubr.msk.bf16.mxu1 %vm751_vm2, %v695_v33 }
 0x180   :  { %3819 = vmatpush3.bf16.xpose.msra.mxu0 %v753_v36  ;;  %3851 = vmatpush3.bf16.xpose.msra.mxu1 %v874_v37 }
 0x181   :  { %v4323_v40 = vpop.trf.xlu0  ;;  %v5319_v41 = vpop.trf.xlu1 }
 0x182   :  { %v4327_v42 = vunpack.i.h.bf16 %v4323_v40  ;;  %v4324_v43 = vunpack.i.l.bf16 %v4323_v40 }
 0x184   :  { %v5321_v44 = vpack.c.bf16 %v4324_v43, %v4319_v39  ;;  %v5323_v45 = vpack.c.bf16 %v4327_v42, %v4322_v38 }
 0x185   :  { %v4328_v46 = vpop.trf.xlu0  ;;  %v5325_v47 = vpop.trf.xlu1 }
 0x186   :  { %4235 = vmatprep.subr.msk.bf16.mxu0 %vm751_vm2, %v5321_v44  ;;  %4243 = vmatprep.subr.msk.bf16.mxu1 %vm751_vm2, %v5323_v45  ;;  %v756_v48 = vsel %vm751_vm2, %v5321_v44, 0  ;;  %v877_v49 = vsel %vm751_vm2, %v5323_v45, 0  ;;  %v4332_v50 = vunpack.i.h.bf16 %v4328_v46  ;;  %v4329_v51 = vunpack.i.l.bf16 %v4328_v46 }
 0x188   :  { %3821 = vmatpush3.bf16.xpose.msra.mxu0 %v756_v48  ;;  %3853 = vmatpush3.bf16.xpose.msra.mxu1 %v877_v49 }
 0x189   :  { %v4333_v52 = vpop.trf.xlu0  ;;  %v5335_v53 = vpop.trf.xlu1 }
 0x18a   :  { %v4337_v54 = vunpack.i.h.bf16 %v4333_v52  ;;  %v4334_v55 = vunpack.i.l.bf16 %v4333_v52 }
 0x18c   :  { %v5337_v56 = vpack.c.bf16 %v4334_v55, %v4329_v51  ;;  %v5339_v59 = vpack.c.bf16 %v4337_v54, %v4332_v50 }
 0x18d   :  { %v4338_v60 = vpop.trf.xlu0  ;;  %v5341_v61 = vpop.trf.xlu1 }
 0x18e   :  { %4236 = vmatprep.subr.msk.bf16.mxu0 %vm751_vm2, %v5337_v56  ;;  %4244 = vmatprep.subr.msk.bf16.mxu1 %vm751_vm2, %v5339_v59  ;;  %v759_v62 = vsel %vm751_vm2, %v5337_v56, 0  ;;  %v880_v63 = vsel %vm751_vm2, %v5339_v59, 0  ;;  %v4342_v1 = vunpack.i.h.bf16 %v4338_v60  ;;  %v4339_v2 = vunpack.i.l.bf16 %v4338_v60 }
 0x190   :  { %3823 = vmatpush3.bf16.xpose.msra.mxu0 %v759_v62  ;;  %3855 = vmatpush3.bf16.xpose.msra.mxu1 %v880_v63 }
 0x191   :  { %v4343_v5 = vpop.trf.xlu0  ;;  %v5351_v6 = vpop.trf.xlu1 }
 0x192   :  { %v4347_v7 = vunpack.i.h.bf16 %v4343_v5  ;;  %v4344_v8 = vunpack.i.l.bf16 %v4343_v5 }
 0x194   :  { %v5353_v9 = vpack.c.bf16 %v4344_v8, %v4339_v2  ;;  %v5355_v10 = vpack.c.bf16 %v4347_v7, %v4342_v1  ;;  %v4394_v7 = vunpack.i.h.bf16 %v5311_v35  ;;  %v4391_v8 = vunpack.i.l.bf16 %v5311_v35 }
 0x195   :  { %v4348_v11 = vpop.trf.xlu0  ;;  %v5357_v14 = vpop.trf.xlu1 }
 0x196   :  { %4237 = vmatprep.subr.msk.bf16.mxu0 %vm751_vm2, %v5353_v9  ;;  %4245 = vmatprep.subr.msk.bf16.mxu1 %vm751_vm2, %v5355_v10  ;;  %v762_v15 = vsel %vm751_vm2, %v5353_v9, 0  ;;  %v883_v16 = vsel %vm751_vm2, %v5355_v10, 0  ;;  %v4352_v17 = vunpack.i.h.bf16 %v4348_v11  ;;  %v4349_v18 = vunpack.i.l.bf16 %v4348_v11 }
 0x198   :  { %3825 = vmatpush3.bf16.xpose.msra.mxu0 %v762_v15  ;;  %3857 = vmatpush3.bf16.xpose.msra.mxu1 %v883_v16 }
 0x199   :  { %v4353_v19 = vpop.trf.xlu0  ;;  %v5367_v20 = vpop.trf.xlu1 }
 0x19a   :  { %v4357_v23 = vunpack.i.h.bf16 %v4353_v19  ;;  %v4354_v24 = vunpack.i.l.bf16 %v4353_v19 }
 0x19c   :  { %v5369_v26 = vpack.c.bf16 %v4354_v24, %v4349_v18  ;;  %v5371_v27 = vpack.c.bf16 %v4357_v23, %v4352_v17  ;;  %v4399_v17 = vunpack.i.h.bf16 %v5319_v41  ;;  %v4396_v18 = vunpack.i.l.bf16 %v5319_v41 }
 0x19d   :  { %v4358_v28 = vpop.trf.xlu0  ;;  %v5373_v29 = vpop.trf.xlu1 }
 0x19e   :  { %4238 = vmatprep.subr.msk.bf16.mxu0 %vm751_vm2, %v5369_v26  ;;  %4246 = vmatprep.subr.msk.bf16.mxu1 %vm751_vm2, %v5371_v27  ;;  %v765_v30 = vsel %vm751_vm2, %v5369_v26, 0  ;;  %v886_v31 = vsel %vm751_vm2, %v5371_v27, 0  ;;  %v4362_v32 = vunpack.i.h.bf16 %v4358_v28  ;;  %v4359_v33 = vunpack.i.l.bf16 %v4358_v28 }
 0x1a0   :  { %3827 = vmatpush3.bf16.xpose.msra.mxu0 %v765_v30  ;;  %3859 = vmatpush3.bf16.xpose.msra.mxu1 %v886_v31  ;;  %v5425_v31 = vpack.c.bf16 %v4396_v18, %v4391_v8 }
 0x1a1   :  { %v4363_v34 = vpop.trf.xlu0  ;;  %v5383_v36 = vpop.trf.xlu1 }
 0x1a2   :  { %v4367_v37 = vunpack.i.h.bf16 %v4363_v34  ;;  %v4364_v38 = vunpack.i.l.bf16 %v4363_v34  ;;  %v4404_v34 = vunpack.i.h.bf16 %v5325_v47 }
 0x1a4   :  { %v5385_v39 = vpack.c.bf16 %v4364_v38, %v4359_v33  ;;  %v5387_v40 = vpack.c.bf16 %v4367_v37, %v4362_v32  ;;  %v5427_v32 = vpack.c.bf16 %v4399_v17, %v4394_v7  ;;  %v4401_v37 = vunpack.i.l.bf16 %v5325_v47 }
 0x1a5   :  { %v4368_v42 = vpop.trf.xlu0  ;;  %v5389_v43 = vpop.trf.xlu1  ;;  %v4431_v17 = vunpack.i.l.bf16 %v5373_v29 }
 0x1a6   :  { %4239 = vmatprep.subr.msk.bf16.mxu0 %vm751_vm2, %v5385_v39  ;;  %4247 = vmatprep.subr.msk.bf16.mxu1 %vm751_vm2, %v5387_v40  ;;  %v768_v46 = vsel %vm751_vm2, %v5385_v39, 0  ;;  %v889_v48 = vsel %vm751_vm2, %v5387_v40, 0  ;;  %v4372_v49 = vunpack.i.h.bf16 %v4368_v42  ;;  %v4369_v50 = vunpack.i.l.bf16 %v4368_v42 }
 0x1a7   :  { %v4409_v42 = vunpack.i.h.bf16 %v5335_v53 }
 0x1a8   :  { %3829 = vmatpush3.bf16.xpose.msra.mxu0 %v768_v46  ;;  %3861 = vmatpush3.bf16.xpose.msra.mxu1 %v889_v48  ;;  %v4406_v46 = vunpack.i.l.bf16 %v5335_v53  ;;  %v995_v48 = vsel %vm751_vm2, %v5425_v31, 0  ;;  %v4414_v53 = vunpack.i.h.bf16 %v5341_v61 }
 0x1a9   :  { %v4373_v51 = vpop.trf.xlu0  ;;  %v5399_v52 = vpop.trf.xlu1 }
 0x1aa   :  { %v4377_v54 = vunpack.i.h.bf16 %v4373_v51  ;;  %v4374_v55 = vunpack.i.l.bf16 %v4373_v51  ;;  %v5455_v47 = vpack.c.bf16 %v4406_v46, %v4401_v37  ;;  %v5457_v51 = vpack.c.bf16 %v4409_v42, %v4404_v34 }
 0x1ab   :  { %v4441_v34 = vunpack.i.l.bf16 %v5389_v43 }
 0x1ac   :  { %v5401_v60 = vpack.c.bf16 %v4374_v55, %v4369_v50  ;;  %v5403_v62 = vpack.c.bf16 %v4377_v54, %v4372_v49  ;;  %v1116_v49 = vsel %vm751_vm2, %v5427_v32, 0  ;;  %v4411_v54 = vunpack.i.l.bf16 %v5341_v61 }
 0x1ad   :  { %v4378_v63 = vpop.trf.xlu0  ;;  %v5405_v1 = vpop.trf.xlu1 }
 0x1ae   :  { %4240 = vmatprep.subr.msk.bf16.mxu0 %vm751_vm2, %v5401_v60  ;;  %4248 = vmatprep.subr.msk.bf16.mxu1 %vm751_vm2, %v5403_v62  ;;  %v771_v2 = vsel %vm751_vm2, %v5401_v60, 0  ;;  %v892_v5 = vsel %vm751_vm2, %v5403_v62, 0  ;;  %v4382_v11 = vunpack.i.h.bf16 %v4378_v63  ;;  %v4379_v15 = vunpack.i.l.bf16 %v4378_v63 }
 0x1b0   :  { %3831 = vmatpush3.bf16.xpose.msra.mxu0 %v771_v2  ;;  %3863 = vmatpush3.bf16.xpose.msra.mxu1 %v892_v5  ;;  %v4421_v5 = vunpack.i.l.bf16 %v5357_v14 }
 0x1b1   :  { %v4383_v16 = vpop.trf.xlu0  ;;  %v5419_v19 = vpop.trf.xlu1 }
 0x1b2   :  { %v4387_v23 = vunpack.i.h.bf16 %v4383_v16  ;;  %v4384_v24 = vunpack.i.l.bf16 %v4383_v16 }
 0x1b4   :  { %v5421_v28 = vpack.c.bf16 %v4384_v24, %v4379_v15  ;;  %v5423_v30 = vpack.c.bf16 %v4387_v23, %v4382_v11 }
 0x1b5   :  { %v5429_v35 = vpop.trf.xlu1  ;;  %v5499_v8 = vpop.trf.xlu0 }
 0x1b6   :  { %4241 = vmatprep.subr.msk.bf16.mxu0 %vm751_vm2, %v5421_v28  ;;  %4249 = vmatprep.subr.msk.bf16.mxu1 %vm751_vm2, %v5423_v30  ;;  %v774_v41 = vsel %vm751_vm2, %v5421_v28, 0  ;;  %v895_v33 = vsel %vm751_vm2, %v5423_v30, 0 }
 0x1b8   :  { %3833 = vmatpush3.bf16.xpose.msra.mxu0 %v774_v41  ;;  %3865 = vmatpush3.bf16.xpose.msra.mxu1 %v895_v33 }
 0x1b9   :  { %4250 = vmatprep.subr.msk.bf16.mxu0 %vm751_vm2, %v5425_v31  ;;  %4258 = vmatprep.subr.msk.bf16.mxu1 %vm751_vm2, %v5427_v32  ;;  %v5445_v38 = vpop.trf.xlu1  ;;  %v5513_v11 = vpop.trf.xlu0 }
 0x1bd   :  { %v5453_v50 = vpop.trf.xlu1  ;;  %v5531_v23 = vpop.trf.xlu0 }
 0x1bf   :  { %3835 = vmatmul.mubr.msk.bf16.vlgmr.msra.gmra.mrb[16].mxu0 %vm751_vm2, %v5321_v44  ;;  %3867 = vmatmul.mubr.msk.bf16.vlgmr.msra.gmra.mrb[16].mxu1 %vm751_vm2, %v5323_v45  ;;  %v4419_v44 = vunpack.i.h.bf16 %v5351_v6  ;;  %v4416_v45 = vunpack.i.l.bf16 %v5351_v6  ;;  %v4424_v6 = vunpack.i.h.bf16 %v5357_v14 }
 0x1c0   :  { %3838 = vmatprep.mubr.msk.bf16.mxu0 %vm751_vm2, %v5337_v56  ;;  %3870 = vmatprep.mubr.msk.bf16.mxu1 %vm751_vm2, %v5339_v59  ;;  %v998_v56 = vsel %vm751_vm2, %v5455_v47, 0  ;;  %v1119_v59 = vsel %vm751_vm2, %v5457_v51, 0 }
 0x1c1   :  { %3883 = vmatpush3.bf16.xpose.msra.mxu0 %v995_v48  ;;  %3915 = vmatpush3.bf16.xpose.msra.mxu1 %v1116_v49  ;;  %v5469_v55 = vpop.trf.xlu1  ;;  %v5483_v61 = vpack.c.bf16 %v4416_v45, %v4411_v54  ;;  %v5485_v2 = vpack.c.bf16 %v4419_v44, %v4414_v53  ;;  %v5545_v24 = vpop.trf.xlu0  ;;  %v4454_v53 = vunpack.i.h.bf16 %v5405_v1  ;;  %v4459_v45 = vunpack.i.h.bf16 %v5419_v19 }
 0x1c2   :  { %4251 = vmatprep.subr.msk.bf16.mxu0 %vm751_vm2, %v5455_v47  ;;  %4259 = vmatprep.subr.msk.bf16.mxu1 %vm751_vm2, %v5457_v51 }
 0x1c3   :  { %v1122_v14 = vsel %vm751_vm2, %v5485_v2, 0 }
 0x1c5   :  { %v5481_v63 = vpop.trf.xlu1  ;;  %v5563_v42 = vpop.trf.xlu0 }
 0x1c7   :  { %3839 = vmatmul.mubr.msk.bf16.gmra.mrb[20].mxu0 %vm751_vm2, %v5353_v9  ;;  %3871 = vmatmul.mubr.msk.bf16.gmra.mrb[20].mxu1 %vm751_vm2, %v5355_v10  ;;  %v4429_v9 = vunpack.i.h.bf16 %v5367_v20  ;;  %v4426_v10 = vunpack.i.l.bf16 %v5367_v20  ;;  %v4434_v20 = vunpack.i.h.bf16 %v5373_v29 }
 0x1c8   :  { %3842 = vmatprep.mubr.msk.bf16.mxu0 %vm751_vm2, %v5369_v26  ;;  %3874 = vmatprep.mubr.msk.bf16.mxu1 %vm751_vm2, %v5371_v27  ;;  %v1001_v26 = vsel %vm751_vm2, %v5483_v61, 0 }
 0x1c9   :  { %3885 = vmatpush3.bf16.xpose.msra.mxu0 %v998_v56  ;;  %3917 = vmatpush3.bf16.xpose.msra.mxu1 %v1119_v59  ;;  %v5497_v7 = vpop.trf.xlu1  ;;  %v5515_v15 = vpack.c.bf16 %v4426_v10, %v4421_v5  ;;  %v5517_v16 = vpack.c.bf16 %v4429_v9, %v4424_v6  ;;  %v5577_v46 = vpop.trf.xlu0  ;;  %v4456_v56 = vunpack.i.l.bf16 %v5419_v19  ;;  %v5605_v10 = vpack.c.bf16 %v4459_v45, %v4454_v53 }
 0x1ca   :  { %4252 = vmatprep.subr.msk.bf16.mxu0 %vm751_vm2, %v5483_v61  ;;  %4260 = vmatprep.subr.msk.bf16.mxu1 %vm751_vm2, %v5485_v2  ;;  %v4461_v19 = vunpack.i.l.bf16 %v5429_v35  ;;  %v4478_v53 = vunpack.i.l.bf16 %v5469_v55 }
 0x1cb   :  { %v1125_v29 = vsel %vm751_vm2, %v5517_v16, 0 }
 0x1cd   :  { %v5511_v27 = vpop.trf.xlu1  ;;  %v5587_v44 = vpop.trf.xlu0 }
 0x1cf   :  { %3843 = vmatmul.mubr.msk.bf16.gmra.mrb[24].mxu0 %vm751_vm2, %v5385_v39  ;;  %3875 = vmatmul.mubr.msk.bf16.gmra.mrb[24].mxu1 %vm751_vm2, %v5387_v40  ;;  %v4439_v39 = vunpack.i.h.bf16 %v5383_v36  ;;  %v4436_v40 = vunpack.i.l.bf16 %v5383_v36  ;;  %v4444_v36 = vunpack.i.h.bf16 %v5389_v43 }
 0x1d0   :  { %3846 = vmatprep.mubr.msk.bf16.mxu0 %vm751_vm2, %v5401_v60  ;;  %3878 = vmatprep.mubr.msk.bf16.mxu1 %vm751_vm2, %v5403_v62  ;;  %v1004_v60 = vsel %vm751_vm2, %v5515_v15, 0 }
 0x1d1   :  { %3887 = vmatpush3.bf16.xpose.msra.mxu0 %v1001_v26  ;;  %3919 = vmatpush3.bf16.xpose.msra.mxu1 %v1122_v14  ;;  %v5529_v18 = vpop.trf.xlu1  ;;  %v5547_v41 = vpack.c.bf16 %v4436_v40, %v4431_v17  ;;  %v5549_v33 = vpack.c.bf16 %v4439_v39, %v4434_v20  ;;  %v5601_v5 = vpop.trf.xlu0  ;;  %v4464_v26 = vunpack.i.h.bf16 %v5429_v35  ;;  %v4469_v17 = vunpack.i.h.bf16 %v5445_v38 }
 0x1d2   :  { %4253 = vmatprep.subr.msk.bf16.mxu0 %vm751_vm2, %v5515_v15  ;;  %4261 = vmatprep.subr.msk.bf16.mxu1 %vm751_vm2, %v5517_v16  ;;  %v4466_v39 = vunpack.i.l.bf16 %v5445_v38  ;;  %v1134_v35 = vsel %vm751_vm2, %v5605_v10, 0  ;;  %v4473_v38 = vunpack.i.l.bf16 %v5453_v50 }
 0x1d3   :  { %v1128_v43 = vsel %vm751_vm2, %v5549_v33, 0 }
 0x1d5   :  { %v5543_v62 = vpop.trf.xlu1  ;;  %v5611_v20 = vpop.trf.xlu0 }
 0x1d7   :  { %3847 = vmatmul.mubr.msk.bf16.gmra.mrb[28].mxu0 %vm751_vm2, %v5421_v28  ;;  %3879 = vmatmul.mubr.msk.bf16.gmra.mrb[28].mxu1 %vm751_vm2, %v5423_v30  ;;  %v4449_v28 = vunpack.i.h.bf16 %v5399_v52  ;;  %v4446_v30 = vunpack.i.l.bf16 %v5399_v52  ;;  %v4451_v52 = vunpack.i.l.bf16 %v5405_v1 }
 0x1d8   :  { %3898 = vmatprep.mubr.msk.bf16.mxu0 %vm751_vm2, %v5425_v31  ;;  %3930 = vmatprep.mubr.msk.bf16.mxu1 %vm751_vm2, %v5427_v32  ;;  %v1007_v31 = vsel %vm751_vm2, %v5547_v41, 0 }
 0x1d9   :  { %3889 = vmatpush3.bf16.xpose.msra.mxu0 %v1004_v60  ;;  %3921 = vmatpush3.bf16.xpose.msra.mxu1 %v1125_v29  ;;  %v5561_v37 = vpop.trf.xlu1  ;;  %v5579_v48 = vpack.c.bf16 %v4446_v30, %v4441_v34  ;;  %v5581_v49 = vpack.c.bf16 %v4449_v28, %v4444_v36  ;;  %v5603_v9 = vpack.c.bf16 %v4456_v56, %v4451_v52  ;;  %v5625_v29 = vpop.trf.xlu0  ;;  %v4476_v28 = vunpack.i.h.bf16 %v5453_v50 }
 0x1da   :  { %4254 = vmatprep.subr.msk.bf16.mxu0 %vm751_vm2, %v5547_v41  ;;  %4262 = vmatprep.subr.msk.bf16.mxu1 %vm751_vm2, %v5549_v33  ;;  %v5627_v36 = vpack.c.bf16 %v4466_v39, %v4461_v19  ;;  %v5629_v34 = vpack.c.bf16 %v4469_v17, %v4464_v26  ;;  %v4483_v17 = vunpack.i.l.bf16 %v5481_v63  ;;  %v4491_v39 = vunpack.i.h.bf16 %v5497_v7 }
 0x1db   :  { %v1010_v59 = vsel %vm751_vm2, %v5579_v48, 0  ;;  %v1131_v1 = vsel %vm751_vm2, %v5581_v49, 0  ;;  %v1013_v40 = vsel %vm751_vm2, %v5603_v9, 0 }
 0x1dc   :  { %v1016_v52 = vsel %vm751_vm2, %v5627_v36, 0  ;;  %v1137_v50 = vsel %vm751_vm2, %v5629_v34, 0 }
 0x1dd   :  { %v5575_v32 = vpop.trf.xlu1 }
 0x1e1   :  { %3891 = vmatpush3.bf16.xpose.msra.mxu0 %v1007_v31  ;;  %3923 = vmatpush3.bf16.xpose.msra.mxu1 %v1128_v43  ;;  %v5585_v54 = vpop.trf.xlu1  ;;  %v5635_v31 = vpop.trf.xlu0  ;;  %v4481_v43 = vunpack.i.h.bf16 %v5469_v55  ;;  %v4486_v55 = vunpack.i.h.bf16 %v5481_v63 }
 0x1e2   :  { %4255 = vmatprep.subr.msk.bf16.mxu0 %vm751_vm2, %v5579_v48  ;;  %4263 = vmatprep.subr.msk.bf16.mxu1 %vm751_vm2, %v5581_v49 }
 0x1e3   :  { %v5675_v63 = vpack.c.bf16 %v4491_v39, %v4486_v55 }
 0x1e5   :  { %v5599_v6 = vpop.trf.xlu1  ;;  %v5649_v56 = vpop.trf.xlu0 }
 0x1e9   :  { %3893 = vmatpush3.bf16.xpose.msra.mxu0 %v1010_v59  ;;  %3925 = vmatpush3.bf16.xpose.msra.mxu1 %v1131_v1  ;;  %v5609_v14 = vpop.trf.xlu1  ;;  %v5651_v59 = vpack.c.bf16 %v4478_v53, %v4473_v38  ;;  %v5653_v1 = vpack.c.bf16 %v4481_v43, %v4476_v28  ;;  %v5657_v19 = vpop.trf.xlu0  ;;  %v4496_v53 = vunpack.i.h.bf16 %v5511_v27 }
 0x1ea   :  { %4256 = vmatprep.subr.msk.bf16.mxu0 %vm751_vm2, %v5603_v9  ;;  %4264 = vmatprep.subr.msk.bf16.mxu1 %vm751_vm2, %v5605_v10 }
 0x1eb   :  { %v1237_v28 = vsel %vm751_vm2, %v5651_v59, 0  ;;  %v1358_v38 = vsel %vm751_vm2, %v5653_v1, 0 }
 0x1ed   :  { %v5623_v60 = vpop.trf.xlu1 }
 0x1f1   :  { %3895 = vmatpush3.bf16.xpose.msra.mxu0 %v1013_v40  ;;  %3927 = vmatpush3.bf16.xpose.msra.mxu1 %v1134_v35  ;;  %v5633_v30 = vpop.trf.xlu1  ;;  %v4488_v40 = vunpack.i.l.bf16 %v5497_v7  ;;  %v5667_v35 = vpop.trf.xlu0 }
 0x1f2   :  { %4257 = vmatprep.subr.msk.bf16.mxu0 %vm751_vm2, %v5627_v36  ;;  %4265 = vmatprep.subr.msk.bf16.mxu1 %vm751_vm2, %v5629_v34 }
 0x1f3   :  { %v5673_v43 = vpack.c.bf16 %v4488_v40, %v4483_v17  ;;  %v4503_v17 = vunpack.i.l.bf16 %v5543_v62 }
 0x1f5   :  { %v5647_v45 = vpop.trf.xlu1  ;;  %v5685_v7 = vpop.trf.xlu0 }
 0x1f9   :  { %3897 = vmatpush3.bf16.xpose.msra.mxu0 %v1016_v52  ;;  %3929 = vmatpush3.bf16.xpose.msra.mxu1 %v1137_v50  ;;  %v5655_v26 = vpop.trf.xlu1  ;;  %v4493_v52 = vunpack.i.l.bf16 %v5511_v27  ;;  %v1361_v50 = vsel %vm751_vm2, %v5675_v63, 0 }
 0x1fa   :  { %4266 = vmatprep.subr.msk.bf16.mxu0 %vm751_vm2, %v5651_v59  ;;  %4274 = vmatprep.subr.msk.bf16.mxu1 %vm751_vm2, %v5653_v1 }
 0x200   :  { %3899 = vmatmul.mubr.msk.bf16.vlgmr.msra.gmra.mrb[32].mxu0 %vm751_vm2, %v5455_v47  ;;  %3931 = vmatmul.mubr.msk.bf16.vlgmr.msra.gmra.mrb[32].mxu1 %vm751_vm2, %v5457_v51  ;;  %v4501_v47 = vunpack.i.h.bf16 %v5529_v18  ;;  %v4498_v51 = vunpack.i.l.bf16 %v5529_v18  ;;  %v4506_v18 = vunpack.i.h.bf16 %v5543_v62  ;;  %v4516_v62 = vunpack.i.h.bf16 %v5575_v32 }
 0x201   :  { %3902 = vmatprep.mubr.msk.bf16.mxu0 %vm751_vm2, %v5483_v61  ;;  %3934 = vmatprep.mubr.msk.bf16.mxu1 %vm751_vm2, %v5485_v2  ;;  %v5695_v61 = vpop.trf.xlu0  ;;  %v1240_v2 = vsel %vm751_vm2, %v5673_v43, 0 }
 0x202   :  { %3947 = vmatpush3.bf16.xpose.msra.mxu0 %v1237_v28  ;;  %3979 = vmatpush3.bf16.xpose.msra.mxu1 %v1358_v38  ;;  %v5701_v55 = vpack.c.bf16 %v4498_v51, %v4493_v52  ;;  %v5703_v27 = vpack.c.bf16 %v4501_v47, %v4496_v53  ;;  %v4533_v47 = vunpack.i.l.bf16 %v5623_v60  ;;  %v4538_v51 = vunpack.i.l.bf16 %v5633_v30 }
 0x203   :  { %4267 = vmatprep.subr.msk.bf16.mxu0 %vm751_vm2, %v5673_v43  ;;  %4275 = vmatprep.subr.msk.bf16.mxu1 %vm751_vm2, %v5675_v63 }
 0x208   :  { %3903 = vmatmul.mubr.msk.bf16.gmra.mrb[36].mxu0 %vm751_vm2, %v5515_v15  ;;  %3935 = vmatmul.mubr.msk.bf16.gmra.mrb[36].mxu1 %vm751_vm2, %v5517_v16  ;;  %v4511_v15 = vunpack.i.h.bf16 %v5561_v37  ;;  %v4508_v16 = vunpack.i.l.bf16 %v5561_v37  ;;  %v4513_v37 = vunpack.i.l.bf16 %v5575_v32  ;;  %v4526_v32 = vunpack.i.h.bf16 %v5599_v6 }
 0x209   :  { %3906 = vmatprep.mubr.msk.bf16.mxu0 %vm751_vm2, %v5547_v41  ;;  %3938 = vmatprep.mubr.msk.bf16.mxu1 %vm751_vm2, %v5549_v33  ;;  %v1243_v41 = vsel %vm751_vm2, %v5701_v55, 0  ;;  %v1364_v33 = vsel %vm751_vm2, %v5703_v27, 0 }
 0x20a   :  { %3949 = vmatpush3.bf16.xpose.msra.mxu0 %v1240_v2  ;;  %3981 = vmatpush3.bf16.xpose.msra.mxu1 %v1361_v50  ;;  %v5725_v39 = vpack.c.bf16 %v4508_v16, %v4503_v17  ;;  %v5727_v40 = vpack.c.bf16 %v4511_v15, %v4506_v18  ;;  %v5789_v18 = vpack.c.bf16 %v4538_v51, %v4533_v47  ;;  %v4543_v15 = vunpack.i.l.bf16 %v5647_v45 }
 0x20b   :  { %4268 = vmatprep.subr.msk.bf16.mxu0 %vm751_vm2, %v5701_v55  ;;  %4276 = vmatprep.subr.msk.bf16.mxu1 %vm751_vm2, %v5703_v27  ;;  %v4548_v16 = vunpack.i.l.bf16 %v5655_v26 }
 0x210   :  { %3907 = vmatmul.mubr.msk.bf16.gmra.mrb[40].mxu0 %vm751_vm2, %v5579_v48  ;;  %3939 = vmatmul.mubr.msk.bf16.gmra.mrb[40].mxu1 %vm751_vm2, %v5581_v49  ;;  %v4521_v48 = vunpack.i.h.bf16 %v5585_v54  ;;  %v4518_v49 = vunpack.i.l.bf16 %v5585_v54  ;;  %v4523_v54 = vunpack.i.l.bf16 %v5599_v6  ;;  %v4536_v6 = vunpack.i.h.bf16 %v5623_v60 }
 0x211   :  { %3910 = vmatprep.mubr.msk.bf16.mxu0 %vm751_vm2, %v5603_v9  ;;  %3942 = vmatprep.mubr.msk.bf16.mxu1 %vm751_vm2, %v5605_v10  ;;  %v1246_v9 = vsel %vm751_vm2, %v5725_v39, 0  ;;  %v1367_v10 = vsel %vm751_vm2, %v5727_v40, 0  ;;  %v4546_v60 = vunpack.i.h.bf16 %v5647_v45  ;;  %v4558_v45 = vunpack.i.h.bf16 %v5499_v8 }
 0x212   :  { %3951 = vmatpush3.bf16.xpose.msra.mxu0 %v1243_v41  ;;  %3983 = vmatpush3.bf16.xpose.msra.mxu1 %v1364_v33  ;;  %v5749_v28 = vpack.c.bf16 %v4518_v49, %v4513_v37  ;;  %v5751_v38 = vpack.c.bf16 %v4521_v48, %v4516_v62  ;;  %v1255_v41 = vsel %vm751_vm2, %v5789_v18, 0  ;;  %v5805_v62 = vpack.c.bf16 %v4548_v16, %v4543_v15 }
 0x213   :  { %4269 = vmatprep.subr.msk.bf16.mxu0 %vm751_vm2, %v5725_v39  ;;  %4277 = vmatprep.subr.msk.bf16.mxu1 %vm751_vm2, %v5727_v40  ;;  %v4563_v48 = vunpack.i.h.bf16 %v5513_v11  ;;  %v4560_v49 = vunpack.i.l.bf16 %v5513_v11  ;;  %v4565_v11 = vunpack.i.l.bf16 %v5531_v23  ;;  %v4610_v16 = vunpack.i.l.bf16 %v5649_v56 }
 0x218   :  { %3911 = vmatmul.mubr.msk.bf16.gmra.mrb[44].mxu0 %vm751_vm2, %v5627_v36  ;;  %3943 = vmatmul.mubr.msk.bf16.gmra.mrb[44].mxu1 %vm751_vm2, %v5629_v34  ;;  %v4531_v36 = vunpack.i.h.bf16 %v5609_v14  ;;  %v4528_v34 = vunpack.i.l.bf16 %v5609_v14  ;;  %v4541_v14 = vunpack.i.h.bf16 %v5633_v30  ;;  %v4551_v30 = vunpack.i.h.bf16 %v5655_v26 }
 0x219   :  { %3962 = vmatprep.mubr.msk.bf16.mxu0 %vm751_vm2, %v5651_v59  ;;  %3994 = vmatprep.mubr.msk.bf16.mxu1 %vm751_vm2, %v5653_v1  ;;  %v1249_v59 = vsel %vm751_vm2, %v5749_v28, 0  ;;  %v1370_v1 = vsel %vm751_vm2, %v5751_v38, 0  ;;  %v4555_v26 = vunpack.i.l.bf16 %v5499_v8  ;;  %v4568_v8 = vunpack.i.h.bf16 %v5531_v23 }
 0x21a   :  { %3953 = vmatpush3.bf16.xpose.msra.mxu0 %v1246_v9  ;;  %3985 = vmatpush3.bf16.xpose.msra.mxu1 %v1367_v10  ;;  %v5773_v53 = vpack.c.bf16 %v4528_v34, %v4523_v54  ;;  %v5775_v52 = vpack.c.bf16 %v4531_v36, %v4526_v32  ;;  %v5791_v17 = vpack.c.bf16 %v4541_v14, %v4536_v6  ;;  %v1258_v9 = vsel %vm751_vm2, %v5805_v62, 0 }
 0x21b   :  { %4270 = vmatprep.subr.msk.bf16.mxu0 %vm751_vm2, %v5749_v28  ;;  %4278 = vmatprep.subr.msk.bf16.mxu1 %vm751_vm2, %v5751_v38  ;;  %v5807_v37 = vpack.c.bf16 %v4551_v30, %v4546_v60  ;;  %v5821_v32 = vpack.c.bf16 %v4560_v49, %v4555_v26  ;;  %v5823_v54 = vpack.c.bf16 %v4563_v48, %v4558_v45  ;;  %v4573_v36 = vunpack.i.h.bf16 %v5545_v24 }
 0x21c   :  { %v1252_v2 = vsel %vm751_vm2, %v5773_v53, 0  ;;  %v1373_v50 = vsel %vm751_vm2, %v5775_v52, 0  ;;  %v1376_v33 = vsel %vm751_vm2, %v5791_v17, 0  ;;  %v4570_v34 = vunpack.i.l.bf16 %v5545_v24 }
 0x21d   :  { %v1379_v10 = vsel %vm751_vm2, %v5807_v37, 0  ;;  %v5839_v47 = vpack.c.bf16 %v4573_v36, %v4568_v8  ;;  %v4578_v23 = vunpack.i.h.bf16 %v5563_v42  ;;  %v4575_v24 = vunpack.i.l.bf16 %v5563_v42 }
 0x21e   :  { %v5837_v6 = vpack.c.bf16 %v4570_v34, %v4565_v11  ;;  %v4588_v42 = vunpack.i.h.bf16 %v5587_v44  ;;  %v4613_v30 = vunpack.i.h.bf16 %v5649_v56  ;;  %v4618_v45 = vunpack.i.h.bf16 %v5657_v19 }
 0x21f   :  { %v4623_v26 = vunpack.i.h.bf16 %v5667_v35  ;;  %v4620_v56 = vunpack.i.l.bf16 %v5667_v35  ;;  %v4630_v35 = vunpack.i.l.bf16 %v5695_v61 }
 0x222   :  { %3955 = vmatpush3.bf16.xpose.msra.mxu0 %v1249_v59  ;;  %3987 = vmatpush3.bf16.xpose.msra.mxu1 %v1370_v1  ;;  %v1479_v59 = vsel %vm751_vm2, %v5821_v32, 0  ;;  %v1600_v1 = vsel %vm751_vm2, %v5823_v54, 0 }
 0x223   :  { %4271 = vmatprep.subr.msk.bf16.mxu0 %vm751_vm2, %v5773_v53  ;;  %4279 = vmatprep.subr.msk.bf16.mxu1 %vm751_vm2, %v5775_v52 }
 0x22a   :  { %3957 = vmatpush3.bf16.xpose.msra.mxu0 %v1252_v2  ;;  %3989 = vmatpush3.bf16.xpose.msra.mxu1 %v1373_v50 }
 0x22b   :  { %4272 = vmatprep.subr.msk.bf16.mxu0 %vm751_vm2, %v5789_v18  ;;  %4280 = vmatprep.subr.msk.bf16.mxu1 %vm751_vm2, %v5791_v17 }
 0x232   :  { %3959 = vmatpush3.bf16.xpose.msra.mxu0 %v1255_v41  ;;  %3991 = vmatpush3.bf16.xpose.msra.mxu1 %v1376_v33 }
 0x233   :  { %4273 = vmatprep.subr.msk.bf16.mxu0 %vm751_vm2, %v5805_v62  ;;  %4281 = vmatprep.subr.msk.bf16.mxu1 %vm751_vm2, %v5807_v37 }
 0x23a   :  { %3961 = vmatpush3.bf16.xpose.msra.mxu0 %v1258_v9  ;;  %3993 = vmatpush3.bf16.xpose.msra.mxu1 %v1379_v10  ;;  %v749_v10 = vpack.c.bf16 %v4623_v26, %v4618_v45 }
 0x23b   :  { %4282 = vmatprep.subr.msk.bf16.mxu0 %vm751_vm2, %v5821_v32  ;;  %4290 = vmatprep.subr.msk.bf16.mxu1 %vm751_vm2, %v5823_v54 }
 0x23c   :  { %v1618_v11 = vsel %vm751_vm2, %v749_v10, 0 }
 0x241   :  { %3963 = vmatmul.mubr.msk.bf16.vlgmr.msra.gmra.mrb[48].mxu0 %vm751_vm2, %v5673_v43  ;;  %3995 = vmatmul.mubr.msk.bf16.vlgmr.msra.gmra.mrb[48].mxu1 %vm751_vm2, %v5675_v63  ;;  %v4583_v43 = vunpack.i.h.bf16 %v5577_v46  ;;  %v4580_v63 = vunpack.i.l.bf16 %v5577_v46  ;;  %v4585_v46 = vunpack.i.l.bf16 %v5587_v44  ;;  %v4598_v44 = vunpack.i.h.bf16 %v5611_v20 }
 0x242   :  { %3966 = vmatprep.mubr.msk.bf16.mxu0 %vm751_vm2, %v5701_v55  ;;  %3998 = vmatprep.mubr.msk.bf16.mxu1 %vm751_vm2, %v5703_v27  ;;  %v1482_v55 = vsel %vm751_vm2, %v5837_v6, 0  ;;  %v1603_v27 = vsel %vm751_vm2, %v5839_v47, 0 }
 0x243   :  { %4011 = vmatpush3.bf16.xpose.msra.mxu0 %v1479_v59  ;;  %4043 = vmatpush3.bf16.xpose.msra.mxu1 %v1600_v1  ;;  %v5861_v14 = vpack.c.bf16 %v4580_v63, %v4575_v24  ;;  %v5863_v51 = vpack.c.bf16 %v4583_v43, %v4578_v23 }
 0x244   :  { %4283 = vmatprep.subr.msk.bf16.mxu0 %vm751_vm2, %v5837_v6  ;;  %4291 = vmatprep.subr.msk.bf16.mxu1 %vm751_vm2, %v5839_v47 }
 0x249   :  { %3967 = vmatmul.mubr.msk.bf16.gmra.mrb[52].mxu0 %vm751_vm2, %v5725_v39  ;;  %3999 = vmatmul.mubr.msk.bf16.gmra.mrb[52].mxu1 %vm751_vm2, %v5727_v40  ;;  %v4593_v39 = vunpack.i.h.bf16 %v5601_v5  ;;  %v4590_v40 = vunpack.i.l.bf16 %v5601_v5  ;;  %v4595_v5 = vunpack.i.l.bf16 %v5611_v20  ;;  %v4608_v20 = vunpack.i.h.bf16 %v5635_v31 }
 0x24a   :  { %3970 = vmatprep.mubr.msk.bf16.mxu0 %vm751_vm2, %v5749_v28  ;;  %4002 = vmatprep.mubr.msk.bf16.mxu1 %vm751_vm2, %v5751_v38  ;;  %v1485_v28 = vsel %vm751_vm2, %v5861_v14, 0  ;;  %v1606_v38 = vsel %vm751_vm2, %v5863_v51, 0 }
 0x24b   :  { %4013 = vmatpush3.bf16.xpose.msra.mxu0 %v1482_v55  ;;  %4045 = vmatpush3.bf16.xpose.msra.mxu1 %v1603_v27  ;;  %v5885_v2 = vpack.c.bf16 %v4590_v40, %v4585_v46  ;;  %v5887_v50 = vpack.c.bf16 %v4593_v39, %v4588_v42 }
 0x24c   :  { %4284 = vmatprep.subr.msk.bf16.mxu0 %vm751_vm2, %v5861_v14  ;;  %4292 = vmatprep.subr.msk.bf16.mxu1 %vm751_vm2, %v5863_v51 }
 0x251   :  { %3971 = vmatmul.mubr.msk.bf16.gmra.mrb[56].mxu0 %vm751_vm2, %v5773_v53  ;;  %4003 = vmatmul.mubr.msk.bf16.gmra.mrb[56].mxu1 %vm751_vm2, %v5775_v52  ;;  %v4603_v53 = vunpack.i.h.bf16 %v5625_v29  ;;  %v4600_v52 = vunpack.i.l.bf16 %v5625_v29  ;;  %v4605_v29 = vunpack.i.l.bf16 %v5635_v31  ;;  %v4615_v31 = vunpack.i.l.bf16 %v5657_v19 }
 0x252   :  { %3974 = vmatprep.mubr.msk.bf16.mxu0 %vm751_vm2, %v5789_v18  ;;  %4006 = vmatprep.mubr.msk.bf16.mxu1 %vm751_vm2, %v5791_v17  ;;  %v1488_v18 = vsel %vm751_vm2, %v5885_v2, 0  ;;  %v1609_v17 = vsel %vm751_vm2, %v5887_v50, 0  ;;  %v4625_v19 = vunpack.i.l.bf16 %v5685_v7 }
 0x253   :  { %4015 = vmatpush3.bf16.xpose.msra.mxu0 %v1485_v28  ;;  %4047 = vmatpush3.bf16.xpose.msra.mxu1 %v1606_v38  ;;  %v739_v60 = vpack.c.bf16 %v4600_v52, %v4595_v5  ;;  %v747_v15 = vpack.c.bf16 %v4603_v53, %v4598_v44  ;;  %v741_v9 = vpack.c.bf16 %v4620_v56, %v4615_v31 }
 0x254   :  { %4285 = vmatprep.subr.msk.bf16.mxu0 %vm751_vm2, %v5885_v2  ;;  %4293 = vmatprep.subr.msk.bf16.mxu1 %vm751_vm2, %v5887_v50  ;;  %v742_v36 = vpack.c.bf16 %v4630_v35, %v4625_v19 }
 0x255   :  { %v1491_v41 = vsel %vm751_vm2, %v739_v60, 0  ;;  %v1612_v33 = vsel %vm751_vm2, %v747_v15, 0  ;;  %v1497_v8 = vsel %vm751_vm2, %v741_v9, 0 }
 0x259   :  { %3975 = vmatmul.mubr.msk.bf16.gmra.mrb[60].mxu0 %vm751_vm2, %v5805_v62  ;;  %4007 = vmatmul.mubr.msk.bf16.gmra.mrb[60].mxu1 %vm751_vm2, %v5807_v37  ;;  %v740_v62 = vpack.c.bf16 %v4610_v16, %v4605_v29  ;;  %v748_v37 = vpack.c.bf16 %v4613_v30, %v4608_v20 }
 0x25a   :  { %4026 = vmatprep.mubr.msk.bf16.mxu0 %vm751_vm2, %v5821_v32  ;;  %4058 = vmatprep.mubr.msk.bf16.mxu1 %vm751_vm2, %v5823_v54  ;;  %v4628_v32 = vunpack.i.h.bf16 %v5685_v7  ;;  %v4633_v54 = vunpack.i.h.bf16 %v5695_v61  ;;  %v1500_v7 = vsel %vm751_vm2, %v742_v36, 0 }
 0x25b   :  { %4017 = vmatpush3.bf16.xpose.msra.mxu0 %v1488_v18  ;;  %4049 = vmatpush3.bf16.xpose.msra.mxu1 %v1609_v17  ;;  %v1494_v48 = vsel %vm751_vm2, %v740_v62, 0  ;;  %v1615_v49 = vsel %vm751_vm2, %v748_v37, 0 }
 0x25c   :  { %4286 = vmatprep.subr.msk.bf16.mxu0 %vm751_vm2, %v739_v60  ;;  %4294 = vmatprep.subr.msk.bf16.mxu1 %vm751_vm2, %v747_v15  ;;  %v750_v34 = vpack.c.bf16 %v4633_v54, %v4628_v32 }
 0x25e   :  { %v1621_v59 = vsel %vm751_vm2, %v750_v34, 0 }
 0x263   :  { %4019 = vmatpush3.bf16.xpose.msra.mxu0 %v1491_v41  ;;  %4051 = vmatpush3.bf16.xpose.msra.mxu1 %v1612_v33 }
 0x264   :  { %4287 = vmatprep.subr.msk.bf16.mxu0 %vm751_vm2, %v740_v62  ;;  %4295 = vmatprep.subr.msk.bf16.mxu1 %vm751_vm2, %v748_v37 }
 0x26b   :  { %4021 = vmatpush3.bf16.xpose.msra.mxu0 %v1494_v48  ;;  %4053 = vmatpush3.bf16.xpose.msra.mxu1 %v1615_v49 }
 0x26c   :  { %4288 = vmatprep.subr.msk.bf16.mxu0 %vm751_vm2, %v741_v9  ;;  %4296 = vmatprep.subr.msk.bf16.mxu1 %vm751_vm2, %v749_v10 }
 0x273   :  { %4023 = vmatpush3.bf16.xpose.msra.mxu0 %v1497_v8  ;;  %4055 = vmatpush3.bf16.xpose.msra.mxu1 %v1618_v11 }
 0x274   :  { %4289 = vmatprep.subr.msk.bf16.mxu0 %vm751_vm2, %v742_v36  ;;  %4297 = vmatprep.subr.msk.bf16.mxu1 %vm751_vm2, %v750_v34 }
 0x27b   :  { %4025 = vmatpush3.bf16.xpose.msra.mxu0 %v1500_v7  ;;  %4057 = vmatpush3.bf16.xpose.msra.mxu1 %v1621_v59 }
 0x27c   :  { %4074 = vmatprep.subr.bf16.mxu0 %v7942_v0  ;;  %4094 = vmatprep.subr.bf16.mxu1 %v7942_v0 }
 0x282   :  { %4027 = vmatmul.mubr.msk.bf16.vlgmr.msra.gmra.mrb[64].mxu0 %vm751_vm2, %v5837_v6  ;;  %4059 = vmatmul.mubr.msk.bf16.vlgmr.msra.gmra.mrb[64].mxu1 %vm751_vm2, %v5839_v47 }
 0x283   :  { %4030 = vmatprep.mubr.msk.bf16.mxu0 %vm751_vm2, %v5861_v14  ;;  %4062 = vmatprep.mubr.msk.bf16.mxu1 %vm751_vm2, %v5863_v51 }
 0x28a   :  { %4031 = vmatmul.mubr.msk.bf16.gmra.mrb[68].mxu0 %vm751_vm2, %v5885_v2  ;;  %4063 = vmatmul.mubr.msk.bf16.gmra.mrb[68].mxu1 %vm751_vm2, %v5887_v50 }
 0x28b   :  { %4034 = vmatprep.mubr.msk.bf16.mxu0 %vm751_vm2, %v739_v60  ;;  %4066 = vmatprep.mubr.msk.bf16.mxu1 %vm751_vm2, %v747_v15 }
 0x292   :  { %v5961_v61 = vpop.f32.mrb[16].mxu0  ;;  %v5963_v1 = vpop.f32.mrb[16].mxu1  ;;  %4035 = vmatmul.mubr.msk.bf16.gmra.mrb[72].mxu0 %vm751_vm2, %v740_v62  ;;  %4067 = vmatmul.mubr.msk.bf16.gmra.mrb[72].mxu1 %vm751_vm2, %v748_v37 }
 0x293   :  { %v5967_v6 = vpop.f32.mrb[17].mxu1  ;;  %1724 = vmax.xlane.f32.xlu1 %v5961_v61  ;;  %v5970_v47 = vpop.f32.mrb[17].mxu0  ;;  %4038 = vmatprep.mubr.msk.bf16.mxu0 %vm751_vm2, %v741_v9 }
 0x294   :  { %v5973_v23 = vpop.f32.mrb[18].mxu0  ;;  %v5975_v24 = vpop.f32.mrb[18].mxu1  ;;  %4070 = vmatprep.mubr.msk.bf16.mxu1 %vm751_vm2, %v749_v10 }
 0x295   :  { %v5978_v43 = vpop.f32.mrb[19].mxu1  ;;  %1758 = vmax.xlane.f32.xlu0 %v5975_v24  ;;  %v5981_v63 = vpop.f32.mrb[19].mxu0 }
 0x297   :  { %1756 = vmax.xlane.f32.xlu1 %v5963_v1 }
 0x299   :  { %1722 = vmax.xlane.f32.xlu0 %v5981_v63 }
 0x29a   :  { %v5985_v55 = vpop.f32.mrb[20].mxu0  ;;  %v5987_v27 = vpop.f32.mrb[20].mxu1  ;;  %4039 = vmatmul.mubr.msk.bf16.gmra.mrb[76].mxu0 %vm751_vm2, %v742_v36  ;;  %4071 = vmatmul.mubr.msk.bf16.gmra.mrb[76].mxu1 %vm751_vm2, %v750_v34 }
 0x29b   :  { %v5991_v14 = vpop.f32.mrb[21].mxu1  ;;  %1720 = vmax.xlane.f32.xlu1 %v5970_v47  ;;  %v5994_v51 = vpop.f32.mrb[21].mxu0  ;;  %4110 = vmatprep.mubr.msk.bf16.mxu1 %vm5199_vm0, %v7942_v0 }
 0x29c   :  { %v5998_v42 = vpop.f32.mrb[22].mxu0  ;;  %v6000_v46 = vpop.f32.mrb[22].mxu1  ;;  %4090 = vmatprep.mubr.msk.bf16.mxu0 %vm5199_vm0, %v7942_v0 }
 0x29d   :  { %v6004_v39 = vpop.f32.mrb[23].mxu1  ;;  %1754 = vmax.xlane.f32.xlu0 %v5978_v43  ;;  %v6007_v40 = vpop.f32.mrb[23].mxu0 }
 0x29f   :  { %1752 = vmax.xlane.f32.xlu1 %v5967_v6 }
 0x2a1   :  { %1766 = vmax.xlane.f32.xlu0 %v6000_v46 }
 0x2a2   :  { %v6011_v28 = vpop.f32.mrb[24].mxu0  ;;  %v6013_v38 = vpop.f32.mrb[24].mxu1 }
 0x2a3   :  { %v6015_v2 = vpop.f32.mrb[25].mxu1  ;;  %1726 = vmax.xlane.f32.xlu1 %v5973_v23  ;;  %v6018_v50 = vpop.f32.mrb[25].mxu0 }
 0x2a4   :  { %v6020_v44 = vpop.f32.mrb[26].mxu0  ;;  %v6022_v5 = vpop.f32.mrb[26].mxu1 }
 0x2a5   :  { %v6024_v53 = vpop.f32.mrb[27].mxu1  ;;  %1762 = vmax.xlane.f32.xlu0 %v6004_v39  ;;  %v6027_v52 = vpop.f32.mrb[27].mxu0 }
 0x2a7   :  { %1732 = vmax.xlane.f32.xlu1 %v5985_v55 }
 0x2a9   :  { %1742 = vmax.xlane.f32.xlu0 %v6020_v44 }
 0x2aa   :  { %v6031_v18 = vpop.f32.mrb[28].mxu0  ;;  %v6033_v17 = vpop.f32.mrb[28].mxu1 }
 0x2ab   :  { %v6035_v60 = vpop.f32.mrb[29].mxu1  ;;  %1764 = vmax.xlane.f32.xlu1 %v5987_v27  ;;  %v6038_v15 = vpop.f32.mrb[29].mxu0 }
 0x2ac   :  { %v6040_v20 = vpop.f32.mrb[30].mxu0  ;;  %v6042_v29 = vpop.f32.mrb[30].mxu1 }
 0x2ad   :  { %v6044_v30 = vpop.f32.mrb[31].mxu1  ;;  %1774 = vmax.xlane.f32.xlu0 %v6022_v5  ;;  %v6047_v16 = vpop.f32.mrb[31].mxu0 }
 0x2af   :  { %1728 = vmax.xlane.f32.xlu1 %v5994_v51 }
 0x2b1   :  { %1770 = vmax.xlane.f32.xlu0 %v6024_v53 }
 0x2b3   :  { %1760 = vmax.xlane.f32.xlu1 %v5991_v14 }
 0x2b5   :  { %1750 = vmax.xlane.f32.xlu0 %v6040_v20 }
 0x2b7   :  { %1734 = vmax.xlane.f32.xlu1 %v5998_v42 }
 0x2b9   :  { %1782 = vmax.xlane.f32.xlu0 %v6042_v29 }
 0x2bb   :  { %1730 = vmax.xlane.f32.xlu1 %v6007_v40 }
 0x2bd   :  { %1746 = vmax.xlane.f32.xlu0 %v6047_v16 }
 0x2bf   :  { %1740 = vmax.xlane.f32.xlu1 %v6011_v28 }
 0x2c1   :  { %1778 = vmax.xlane.f32.xlu0 %v6044_v30 }
 0x2c3   :  { %1772 = vmax.xlane.f32.xlu1 %v6013_v38 }
 0x2c7   :  { %1736 = vmax.xlane.f32.xlu1 %v6018_v50 }
 0x2cb   :  { %1768 = vmax.xlane.f32.xlu1 %v6015_v2 }
 0x2cf   :  { %1738 = vmax.xlane.f32.xlu1 %v6027_v52 }
 0x2d3   :  { %v6063_v41 = vpop.f32.mrb[32].mxu0  ;;  %v6065_v33 = vpop.f32.mrb[32].mxu1  ;;  %1748 = vmax.xlane.f32.xlu1 %v6031_v18 }
 0x2d4   :  { %8234 = vst [vmem:[#allocation17_spill] sm:$0xff] %v6063_v41  ;;  %8235 = vst [vmem:[#allocation18_spill] sm:$0xff] %v6065_v33  ;;  %v6068_v62 = vpop.f32.mrb[33].mxu1  ;;  %v6070_v37 = vpop.f32.mrb[33].mxu0 }
 0x2d5   :  { %8236 = vst [vmem:[#allocation19_spill] sm:$0xff] %v6068_v62  ;;  %8237 = vst [vmem:[#allocation20_spill] sm:$0xff] %v6070_v37  ;;  %v6072_v45 = vpop.f32.mrb[34].mxu0  ;;  %v6074_v31 = vpop.f32.mrb[34].mxu1 }
 0x2d6   :  { %v6076_v26 = vpop.f32.mrb[35].mxu1  ;;  %1790 = vmax.xlane.f32.xlu0 %v6072_v45  ;;  %v6079_v56 = vpop.f32.mrb[35].mxu0 }
 0x2d7   :  { %8238 = vst [vmem:[#allocation21_spill] sm:$0xff] %v6076_v26  ;;  %8239 = vst [vmem:[#allocation22_spill] sm:$0xff] %v6079_v56  ;;  %1780 = vmax.xlane.f32.xlu1 %v6033_v17 }
 0x2da   :  { %1822 = vmax.xlane.f32.xlu0 %v6074_v31 }
 0x2db   :  { %v6083_v48 = vpop.f32.mrb[36].mxu0  ;;  %v6085_v49 = vpop.f32.mrb[36].mxu1  ;;  %1744 = vmax.xlane.f32.xlu1 %v6038_v15 }
 0x2dc   :  { %8240 = vst [vmem:[#allocation23_spill] sm:$0xff] %v6083_v48  ;;  %8241 = vst [vmem:[#allocation24_spill] sm:$0xff] %v6085_v49  ;;  %v6088_v9 = vpop.f32.mrb[37].mxu1  ;;  %v6090_v10 = vpop.f32.mrb[37].mxu0 }
 0x2dd   :  { %8242 = vst [vmem:[#allocation25_spill] sm:$0xff] %v6088_v9  ;;  %8243 = vst [vmem:[#allocation26_spill] sm:$0xff] %v6090_v10  ;;  %v6092_v32 = vpop.f32.mrb[38].mxu0  ;;  %v6094_v19 = vpop.f32.mrb[38].mxu1 }
 0x2de   :  { %8244 = vst [vmem:[#allocation27_spill] sm:$0xff] %v6092_v32  ;;  %8245 = vst [vmem:[#allocation28_spill] sm:$0xff] %v6094_v19  ;;  %v6096_v54 = vpop.f32.mrb[39].mxu1  ;;  %1786 = vmax.xlane.f32.xlu0 %v6079_v56  ;;  %v6099_v35 = vpop.f32.mrb[39].mxu0 }
 0x2df   :  { %8246 = vst [vmem:[#allocation29_spill] sm:$0xff] %v6096_v54  ;;  %8247 = vst [vmem:[#allocation30_spill] sm:$0xff] %v6099_v35  ;;  %1776 = vmax.xlane.f32.xlu1 %v6035_v60 }
 0x2e2   :  { %1818 = vmax.xlane.f32.xlu0 %v6076_v26 }
 0x2e3   :  { %v6103_v8 = vpop.f32.mrb[40].mxu0  ;;  %v6105_v11 = vpop.f32.mrb[40].mxu1  ;;  %1788 = vmax.xlane.f32.xlu1 %v6063_v41 }
 0x2e4   :  { %8248 = vst [vmem:[#allocation31_spill] sm:$0xff] %v6103_v8  ;;  %8249 = vst [vmem:[#allocation32_spill] sm:$0xff] %v6105_v11  ;;  %v6108_v36 = vpop.f32.mrb[41].mxu1  ;;  %v6110_v34 = vpop.f32.mrb[41].mxu0 }
 0x2e5   :  { %8250 = vst [vmem:[#allocation33_spill] sm:$0xff] %v6108_v36  ;;  %8251 = vst [vmem:[#allocation34_spill] sm:$0xff] %v6110_v34  ;;  %v6112_v7 = vpop.f32.mrb[42].mxu0  ;;  %v6114_v59 = vpop.f32.mrb[42].mxu1 }
 0x2e6   :  { %8252 = vst [vmem:[#allocation35_spill] sm:$0xff] %v6112_v7  ;;  %8253 = vst [vmem:[#allocation36_spill] sm:$0xff] %v6114_v59  ;;  %v6116_v0 = vpop.f32.mrb[43].mxu1  ;;  %1798 = vmax.xlane.f32.xlu0 %v6092_v32  ;;  %v6119_v22 = vpop.f32.mrb[43].mxu0 }
 0x2e7   :  { %8254 = vst [vmem:[#allocation37_spill] sm:$0xff] %v6116_v0  ;;  %8255 = vst [vmem:[#allocation38_spill] sm:$0xff] %v6119_v22  ;;  %1820 = vmax.xlane.f32.xlu1 %v6065_v33 }
 0x2ea   :  { %1830 = vmax.xlane.f32.xlu0 %v6094_v19 }
 0x2eb   :  { %v6123_v21 = vpop.f32.mrb[44].mxu0  ;;  %v6125_v13 = vpop.f32.mrb[44].mxu1  ;;  %1784 = vmax.xlane.f32.xlu1 %v6070_v37 }
 0x2ec   :  { %8256 = vst [vmem:[#allocation39_spill] sm:$0xff] %v6123_v21  ;;  %8257 = vst [vmem:[#allocation40_spill] sm:$0xff] %v6125_v13  ;;  %v6128_v12 = vpop.f32.mrb[45].mxu1  ;;  %v6130_v3 = vpop.f32.mrb[45].mxu0 }
 0x2ed   :  { %8258 = vst [vmem:[#allocation41_spill] sm:$0xff] %v6128_v12  ;;  %8259 = vst [vmem:[#allocation42_spill] sm:$0xff] %v6130_v3  ;;  %v6132_v4 = vpop.f32.mrb[46].mxu0  ;;  %v6134_v57 = vpop.f32.mrb[46].mxu1 }
 0x2ee   :  { %8260 = vst [vmem:[#allocation43_spill] sm:$0xff] %v6132_v4  ;;  %8261 = vst [vmem:[#allocation44_spill] sm:$0xff] %v6134_v57  ;;  %v6136_v25 = vpop.f32.mrb[47].mxu1  ;;  %1794 = vmax.xlane.f32.xlu0 %v6099_v35  ;;  %v6139_v58 = vpop.f32.mrb[47].mxu0 }
 0x2ef   :  { %8262 = vst [vmem:[#allocation45_spill] sm:$0xff] %v6136_v25  ;;  %8263 = vst [vmem:[#allocation46_spill] sm:$0xff] %v6139_v58  ;;  %1816 = vmax.xlane.f32.xlu1 %v6068_v62 }
 0x2f2   :  { %1826 = vmax.xlane.f32.xlu0 %v6096_v54 }
 0x2f3   :  { %1796 = vmax.xlane.f32.xlu1 %v6083_v48 }
 0x2f6   :  { %1806 = vmax.xlane.f32.xlu0 %v6112_v7 }
 0x2f7   :  { %1828 = vmax.xlane.f32.xlu1 %v6085_v49 }
 0x2fa   :  { %1838 = vmax.xlane.f32.xlu0 %v6114_v59 }
 0x2fb   :  { %1792 = vmax.xlane.f32.xlu1 %v6090_v10 }
 0x2fe   :  { %1802 = vmax.xlane.f32.xlu0 %v6119_v22 }
 0x2ff   :  { %1824 = vmax.xlane.f32.xlu1 %v6088_v9 }
 0x302   :  { %1834 = vmax.xlane.f32.xlu0 %v6116_v0 }
 0x303   :  { %1804 = vmax.xlane.f32.xlu1 %v6103_v8 }
 0x306   :  { %1814 = vmax.xlane.f32.xlu0 %v6132_v4 }
 0x307   :  { %1836 = vmax.xlane.f32.xlu1 %v6105_v11 }
 0x30a   :  { %1846 = vmax.xlane.f32.xlu0 %v6134_v57 }
 0x30b   :  { %1800 = vmax.xlane.f32.xlu1 %v6110_v34 }
 0x30e   :  { %1810 = vmax.xlane.f32.xlu0 %v6139_v58 }
 0x30f   :  { %1832 = vmax.xlane.f32.xlu1 %v6108_v36 }
 0x312   :  { %1842 = vmax.xlane.f32.xlu0 %v6136_v25 }
 0x313   :  { %1812 = vmax.xlane.f32.xlu1 %v6123_v21 }
 0x314   :  { %v6160_v9 = vpop.f32.mrb[48].mxu0  ;;  %v6162_v0 = vpop.f32.mrb[48].mxu1 }
 0x315   :  { %8264 = vst [vmem:[#allocation47_spill] sm:$0xff] %v6160_v9  ;;  %8265 = vst [vmem:[#allocation48_spill] sm:$0xff] %v6162_v0  ;;  %v6164_v8 = vpop.f32.mrb[49].mxu1  ;;  %v6166_v4 = vpop.f32.mrb[49].mxu0 }
 0x316   :  { %8266 = vst [vmem:[#allocation49_spill] sm:$0xff] %v6164_v8  ;;  %8267 = vst [vmem:[#allocation50_spill] sm:$0xff] %v6166_v4  ;;  %v6168_v11 = vpop.f32.mrb[50].mxu0  ;;  %v6170_v57 = vpop.f32.mrb[50].mxu1 }
 0x317   :  { %8268 = vst [vmem:[#allocation51_spill] sm:$0xff] %v6168_v11  ;;  %8269 = vst [vmem:[#allocation52_spill] sm:$0xff] %v6170_v57  ;;  %v6172_v34 = vpop.f32.mrb[51].mxu1  ;;  %1854 = vmax.xlane.f32.xlu0 %v6168_v11  ;;  %v6175_v36 = vpop.f32.mrb[51].mxu0  ;;  %1844 = vmax.xlane.f32.xlu1 %v6125_v13 }
 0x318   :  { %8270 = vst [vmem:[#allocation53_spill] sm:$0xff] %v6172_v34  ;;  %8271 = vst [vmem:[#allocation54_spill] sm:$0xff] %v6175_v36 }
 0x31b   :  { %1886 = vmax.xlane.f32.xlu0 %v6170_v57  ;;  %1808 = vmax.xlane.f32.xlu1 %v6130_v3 }
 0x31c   :  { %v6180_v21 = vpop.f32.mrb[52].mxu0  ;;  %v6182_v25 = vpop.f32.mrb[52].mxu1 }
 0x31d   :  { %8272 = vst [vmem:[#allocation55_spill] sm:$0xff] %v6180_v21  ;;  %8273 = vst [vmem:[#allocation56_spill] sm:$0xff] %v6182_v25  ;;  %v6184_v58 = vpop.f32.mrb[53].mxu1  ;;  %v6186_v22 = vpop.f32.mrb[53].mxu0 }
 0x31e   :  { %8274 = vst [vmem:[#allocation57_spill] sm:$0xff] %v6184_v58  ;;  %8275 = vst [vmem:[#allocation58_spill] sm:$0xff] %v6186_v22  ;;  %v6188_v10 = vpop.f32.mrb[54].mxu0  ;;  %v6190_v59 = vpop.f32.mrb[54].mxu1 }
 0x31f   :  { %8276 = vst [vmem:[#allocation59_spill] sm:$0xff] %v6188_v10  ;;  %v6192_v11 = vpop.f32.mrb[55].mxu1  ;;  %1850 = vmax.xlane.f32.xlu0 %v6175_v36  ;;  %v6195_v13 = vpop.f32.mrb[55].mxu0  ;;  %1840 = vmax.xlane.f32.xlu1 %v6128_v12 }
 0x320   :  { %8277 = vst [vmem:[#allocation60_spill] sm:$0xff] %v6192_v11  ;;  %8278 = vst [vmem:[#allocation61_spill] sm:$0xff] %v6195_v13  ;;  %v1725_v3 = vpop.xlane.xlu1 %1724 }
 0x322   :  { %v1759_v57 = vpop.xlane.xlu0 %1758 }
 0x323   :  { %1882 = vmax.xlane.f32.xlu0 %v6172_v34  ;;  %v1995_v49 = vsub.f32 %v5975_v24, %v1759_v57  ;;  %1852 = vmax.xlane.f32.xlu1 %v6160_v9 }
 0x324   :  { %v6201_v7 = vpop.f32.mrb[56].mxu1  ;;  %v6203_v48 = vpop.f32.mrb[56].mxu0 }
 0x325   :  { %8279 = vst [vmem:[#allocation62_spill] sm:$0xff] %v6201_v7  ;;  %8280 = vst [vmem:[#allocation63_spill] sm:$0xff] %v6203_v48  ;;  %v6205_v54 = vpop.f32.mrb[57].mxu1  ;;  %v6207_v62 = vpop.f32.mrb[57].mxu0  ;;  %v2142_v36 = vmul.f32 1.442695, %v1995_v49 }
 0x326   :  { %8281 = vst [vmem:[#allocation64_spill] sm:$0xff] %v6205_v54  ;;  %8282 = vst [vmem:[#allocation65_spill] sm:$0xff] %v6207_v62  ;;  %v6209_v35 = vpop.f32.mrb[58].mxu1  ;;  %v1757_v12 = vpop.xlane.xlu1 %1756 }
 0x327   :  { %8283 = vst [vmem:[#allocation66_spill] sm:$0xff] %v6209_v35  ;;  %v1994_v37 = vsub.f32 %v5963_v1, %v1757_v12  ;;  %v6212_v19 = vpop.f32.mrb[58].mxu0  ;;  %v6214_v34 = vpop.f32.mrb[59].mxu1  ;;  %1862 = vmax.xlane.f32.xlu0 %v6188_v10  ;;  %1884 = vmax.xlane.f32.xlu1 %v6162_v0  ;;  %4635 = vpow2.f32 %v2142_v36 }
 0x328   :  { %8284 = vst [vmem:[#allocation67_spill] sm:$0xff] %v6212_v19  ;;  %8285 = vst [vmem:[#allocation68_spill] sm:$0xff] %v6214_v34  ;;  %v6218_v57 = vpop.f32.mrb[59].mxu0  ;;  %v1723_v24 = vpop.xlane.xlu0 %1722 }
 0x329   :  { %8286 = vst [vmem:[#allocation69_spill] sm:$0xff] %v6218_v57  ;;  %v2140_v9 = vmul.f32 1.442695, %v1994_v37  ;;  %v1977_v33 = vsub.f32 %v5981_v63, %v1723_v24 }
 0x32a   :  { %v1721_v49 = vpop.xlane.xlu1 %1720 }
 0x32b   :  { %4637 = vpow2.f32 %v2140_v9  ;;  %v2106_v32 = vmul.f32 1.442695, %v1977_v33  ;;  %v1976_v12 = vsub.f32 %v5970_v47, %v1721_v49  ;;  %1894 = vmax.xlane.f32.xlu0 %v6190_v59  ;;  %1848 = vmax.xlane.f32.xlu1 %v6166_v4  ;;  %v1978_v47 = vsub.f32 %v5961_v61, %v1725_v3 }
 0x32c   :  { %v6224_v1 = vpop.f32.mrb[60].mxu1  ;;  %v1755_v10 = vpop.xlane.xlu0 %1754 }
 0x32d   :  { %8287 = vst [vmem:[#allocation70_spill] sm:$0xff] %v6224_v1  ;;  %v2104_v0 = vmul.f32 1.442695, %v1976_v12  ;;  %v1993_v41 = vsub.f32 %v5978_v43, %v1755_v10  ;;  %v6227_v26 = vpop.f32.mrb[60].mxu0  ;;  %v6229_v37 = vpop.f32.mrb[61].mxu1  ;;  %4639 = vpow2.f32 %v2106_v32 }
 0x32e   :  { %8288 = vst [vmem:[#allocation71_spill] sm:$0xff] %v6227_v26  ;;  %8289 = vst [vmem:[#allocation72_spill] sm:$0xff] %v6229_v37  ;;  %v6231_v63 = vpop.f32.mrb[61].mxu0  ;;  %v6233_v33 = vpop.f32.mrb[62].mxu1  ;;  %v2108_v4 = vmul.f32 1.442695, %v1978_v47 }
 0x32f   :  { %8290 = vst [vmem:[#allocation73_spill] sm:$0xff] %v6231_v63  ;;  %8291 = vst [vmem:[#allocation74_spill] sm:$0xff] %v6233_v33  ;;  %4641 = vpow2.f32 %v2104_v0  ;;  %v2138_v9 = vmul.f32 1.442695, %v1993_v41  ;;  %v1753_v36 = vpop.xlane.xlu1 %1752  ;;  %v6236_v24 = vpop.f32.mrb[62].mxu0  ;;  %1858 = vmax.xlane.f32.xlu0 %v6195_v13  ;;  %1880 = vmax.xlane.f32.xlu1 %v6164_v8 }
 0x330   :  { %8292 = vst [vmem:[#allocation75_spill] sm:$0xff] %v6236_v24  ;;  %v1992_v43 = vsub.f32 %v5967_v6, %v1753_v36  ;;  %v6241_v10 = vpop.f32.mrb[63].mxu1  ;;  %v6243_v32 = vpop.f32.mrb[63].mxu0 }
 0x331   :  { %8293 = vst [vmem:[#allocation76_spill] sm:$0xff] %v6241_v10  ;;  %8294 = vst [vmem:[#allocation77_spill] sm:$0xff] %v6243_v32  ;;  %v1767_v49 = vpop.xlane.xlu0 %1766  ;;  %4643 = vpow2.f32 %v2138_v9  ;;  %v6247_v0 = vpop.eup %4635 }
 0x332   :  { %v2136_v12 = vmul.f32 1.442695, %v1992_v43  ;;  %v1999_v47 = vsub.f32 %v6000_v46, %v1767_v49 }
 0x333   :  { %v1727_v3 = vpop.xlane.xlu1 %1726  ;;  %1890 = vmax.xlane.f32.xlu0 %v6192_v11  ;;  %1860 = vmax.xlane.f32.xlu1 %v6180_v21 }
 0x334   :  { %4645 = vpow2.f32 %v2136_v12  ;;  %v1979_v61 = vsub.f32 %v5973_v23, %v1727_v3 }
 0x335   :  { %v6250_v41 = vpop.eup %4637  ;;  %v1763_v6 = vpop.xlane.xlu0 %1762  ;;  %4647 = vpow2.f32 %v2108_v4 }
 0x336   :  { %v2110_v36 = vmul.f32 1.442695, %v1979_v61  ;;  %v3057_v8 = vpack.c.bf16 %v6247_v0, %v6250_v41  ;;  %v2150_v61 = vmul.f32 1.442695, %v1999_v47  ;;  %v1997_v47 = vsub.f32 %v6004_v39, %v1763_v6 }
 0x337   :  { %v1733_v9 = vpop.xlane.xlu1 %1732  ;;  %1870 = vmax.xlane.f32.xlu0 %v6212_v19  ;;  %1892 = vmax.xlane.f32.xlu1 %v6182_v25  ;;  %v6257_v43 = vpop.eup %4639 }
 0x338   :  { %4649 = vpow2.f32 %v2110_v36  ;;  %v8295_v36 = vmov 0.0   ;;  %v1982_v39 = vsub.f32 %v5985_v55, %v1733_v9 }
 0x339   :  { %v6259_v12 = vpop.eup %4641  ;;  %v1743_v23 = vpop.xlane.xlu0 %1742  ;;  %4651 = vpow2.f32 %v2150_v61  ;;  %v2146_v61 = vmul.f32 1.442695, %v1997_v47 }
 0x33a   :  { %v3048_v3 = vpack.c.bf16 %v6257_v43, %v6259_v12  ;;  %v2116_v47 = vmul.f32 1.442695, %v1982_v39 }
 0x33b   :  { %v1765_v21 = vpop.xlane.xlu1 %1764  ;;  %1902 = vmax.xlane.f32.xlu0 %v6209_v35  ;;  %1856 = vmax.xlane.f32.xlu1 %v6186_v22  ;;  %v6266_v46 = vpop.eup %4643 }
 0x33c   :  { %v1998_v4 = vsub.f32 %v5987_v27, %v1765_v21  ;;  %4075 = vmatpush3.bf16.msra.mxu0 %v3048_v3 }
 0x33d   :  { %v6268_v49 = vpop.xlane.xlu0 %1774  ;;  %4076 = vmatprep.subr.bf16.mxu0 %v8295_v36 }
 0x33e   :  { %v6271_v25 = vpop.eup %4645  ;;  %v2148_v19 = vmul.f32 1.442695, %v1998_v4 }
 0x33f   :  { %v1729_v11 = vpop.xlane.xlu1 %1728  ;;  %1866 = vmax.xlane.f32.xlu0 %v6218_v57  ;;  %v3056_v22 = vpack.c.bf16 %v6266_v46, %v6271_v25  ;;  %1888 = vmax.xlane.f32.xlu1 %v6184_v58  ;;  %v6278_v21 = vpop.eup %4647 }
 0x340   :  { %4653 = vpow2.f32 %v2148_v19  ;;  %v1980_v55 = vsub.f32 %v5994_v51, %v1729_v11 }
 0x341   :  { %4095 = vmatpush3.bf16.msra.mxu1 %v3056_v22  ;;  %v6282_v3 = vpop.xlane.xlu0 %1770  ;;  %4655 = vpow2.f32 %v2146_v61  ;;  %v1987_v61 = vsub.f32 %v6020_v44, %v1743_v23 }
 0x342   :  { %v6280_v27 = vpop.eup %4649  ;;  %4096 = vmatprep.subr.bf16.mxu1 %v8295_v36  ;;  %v2112_v39 = vmul.f32 1.442695, %v1980_v55 }
 0x343   :  { %v1761_v6 = vpop.xlane.xlu1 %1760  ;;  %1898 = vmax.xlane.f32.xlu0 %v6214_v34  ;;  %v3049_v4 = vpack.c.bf16 %v6280_v27, %v6278_v21  ;;  %1868 = vmax.xlane.f32.xlu1 %v6203_v48 }
 0x344   :  { %v1996_v19 = vsub.f32 %v5991_v14, %v1761_v6 }
 0x345   :  { %4077 = vmatpush3.bf16.msra.mxu0 %v3049_v4  ;;  %4097 = vmatpush3.bf16.msra.mxu1 %v3057_v8  ;;  %v6296_v48 = vpop.xlane.xlu0 %1750  ;;  %v6299_v8 = vpop.eup %4651 }
 0x346   :  { %v2144_v22 = vmul.f32 1.442695, %v1996_v19  ;;  %4098 = vmatprep.subr.bf16.mxu1 %v8295_v36  ;;  %4078 = vmatprep.subr.bf16.mxu0 %v8295_v36 }
 0x347   :  { %v1735_v9 = vpop.xlane.xlu1 %1734  ;;  %1878 = vmax.xlane.f32.xlu0 %v6236_v24  ;;  %1900 = vmax.xlane.f32.xlu1 %v6201_v7 }
 0x348   :  { %4657 = vpow2.f32 %v2144_v22  ;;  %v1983_v14 = vsub.f32 %v5998_v42, %v1735_v9  ;;  %v2126_v9 = vmul.f32 1.442695, %v1987_v61 }
 0x349   :  { %4659 = vpow2.f32 %v2116_v47  ;;  %v6309_v19 = vpop.xlane.xlu0 %1782  ;;  %v2003_v47 = vsub.f32 %v6022_v5, %v6268_v49 }
 0x34a   :  { %v6301_v6 = vpop.eup %4653  ;;  %v2118_v4 = vmul.f32 1.442695, %v1983_v14 }
 0x34b   :  { %v1731_v51 = vpop.xlane.xlu1 %1730  ;;  %1910 = vmax.xlane.f32.xlu0 %v6233_v33  ;;  %1864 = vmax.xlane.f32.xlu1 %v6207_v62  ;;  %v3059_v11 = vpack.c.bf16 %v6299_v8, %v6301_v6  ;;  %v6316_v55 = vpop.eup %4655 }
 0x34c   :  { %4661 = vpow2.f32 %v2118_v4  ;;  %v1981_v42 = vsub.f32 %v6007_v40, %v1731_v51  ;;  %v2158_v4 = vmul.f32 1.442695, %v2003_v47 }
 0x34d   :  { %4663 = vpow2.f32 %v2112_v39  ;;  %v6324_v49 = vpop.xlane.xlu0 %1746 }
 0x34e   :  { %v2114_v22 = vmul.f32 1.442695, %v1981_v42 }
 0x34f   :  { %v1741_v44 = vpop.xlane.xlu1 %1740  ;;  %1874 = vmax.xlane.f32.xlu0 %v6243_v32  ;;  %1896 = vmax.xlane.f32.xlu1 %v6205_v54 }
 0x350   :  { %4665 = vpow2.f32 %v2114_v22  ;;  %v1986_v23 = vsub.f32 %v6011_v28, %v1741_v44 }
 0x351   :  { %4667 = vpow2.f32 %v2126_v9 }
 0x352   :  { %v6318_v14 = vpop.eup %4657  ;;  %v2124_v40 = vmul.f32 1.442695, %v1986_v23 }
 0x353   :  { %v1773_v61 = vpop.xlane.xlu1 %1772  ;;  %1906 = vmax.xlane.f32.xlu0 %v6241_v10  ;;  %v3058_v5 = vpack.c.bf16 %v6316_v55, %v6318_v14  ;;  %1876 = vmax.xlane.f32.xlu1 %v6227_v26  ;;  %v6327_v39 = vpop.eup %4659 }
 0x354   :  { %4669 = vpow2.f32 %v2124_v40  ;;  %v2002_v28 = vsub.f32 %v6013_v38, %v1773_v61  ;;  %v2001_v38 = vsub.f32 %v6024_v53, %v6282_v3  ;;  %v6364_v10 = vpop.xlane.xlu0 %1778 }
 0x355   :  { %4099 = vmatpush3.bf16.msra.mxu1 %v3058_v5  ;;  %v6329_v51 = vpop.f32.mrb[64].mxu1  ;;  %v6331_v42 = vpop.f32.mrb[64].mxu0  ;;  %4671 = vpow2.f32 %v2158_v4 }
 0x356   :  { %8296 = vst [vmem:[#allocation78_spill] sm:$0xff] %v6329_v51  ;;  %8297 = vst [vmem:[#allocation79_spill] sm:$0xff] %v6331_v42  ;;  %v6333_v22 = vpop.eup %4661  ;;  %v2156_v9 = vmul.f32 1.442695, %v2002_v28  ;;  %4100 = vmatprep.subr.bf16.mxu1 %v8295_v36  ;;  %v6336_v47 = vpop.f32.mrb[65].mxu1 }
 0x357   :  { %8298 = vst [vmem:[#allocation80_spill] sm:$0xff] %v6336_v47  ;;  %v6338_v44 = vpop.f32.mrb[65].mxu0  ;;  %v1737_v23 = vpop.xlane.xlu1 %1736  ;;  %2366 = vadd.xlane.f32.xlu0 %v6280_v27  ;;  %1908 = vmax.xlane.f32.xlu1 %v6224_v1  ;;  %v3051_v40 = vpack.c.bf16 %v6333_v22, %v6327_v39  ;;  %v2154_v27 = vmul.f32 1.442695, %v2001_v38 }
 0x358   :  { %8299 = vst [vmem:[#allocation81_spill] sm:$0xff] %v6338_v44  ;;  %v6346_v61 = vpop.f32.mrb[66].mxu1  ;;  %4673 = vpow2.f32 %v2156_v9  ;;  %v6348_v5 = vpop.f32.mrb[66].mxu0  ;;  %v1984_v3 = vsub.f32 %v6018_v50, %v1737_v23 }
 0x359   :  { %8300 = vst [vmem:[#allocation82_spill] sm:$0xff] %v6346_v61  ;;  %8301 = vst [vmem:[#allocation83_spill] sm:$0xff] %v6348_v5  ;;  %v6350_v28 = vpop.f32.mrb[67].mxu1  ;;  %v6352_v26 = vpop.eup %4663  ;;  %4101 = vmatpush3.bf16.msra.mxu1 %v3059_v11  ;;  %4675 = vpow2.f32 %v2154_v27 }
 0x35a   :  { %8302 = vst [vmem:[#allocation84_spill] sm:$0xff] %v6350_v28  ;;  %v6354_v4 = vpop.f32.mrb[67].mxu0  ;;  %v6356_v53 = vpop.eup %4665  ;;  %4102 = vmatprep.subr.bf16.mxu1 %v8295_v36 }
 0x35b   :  { %8303 = vst [vmem:[#allocation85_spill] sm:$0xff] %v6354_v4  ;;  %v1769_v1 = vpop.xlane.xlu1 %1768  ;;  %2398 = vadd.xlane.f32.xlu0 %v6247_v0  ;;  %v3050_v9 = vpack.c.bf16 %v6356_v53, %v6352_v26  ;;  %1872 = vmax.xlane.f32.xlu1 %v6231_v63  ;;  %v6367_v54 = vpop.eup %4667 }
 0x35c   :  { %v2000_v11 = vsub.f32 %v6015_v2, %v1769_v1  ;;  %v1991_v2 = vsub.f32 %v6040_v20, %v6296_v48  ;;  %v2120_v1 = vmul.f32 1.442695, %v1984_v3 }
 0x35d   :  { %4079 = vmatpush3.bf16.msra.mxu0 %v3050_v9  ;;  %v6369_v32 = vpop.f32.mrb[68].mxu1  ;;  %v6371_v38 = vpop.f32.mrb[68].mxu0 }
 0x35e   :  { %8304 = vst [vmem:[#allocation86_spill] sm:$0xff] %v6369_v32  ;;  %8305 = vst [vmem:[#allocation87_spill] sm:$0xff] %v6371_v38  ;;  %v6373_v50 = vpop.eup %4669  ;;  %v2152_v23 = vmul.f32 1.442695, %v2000_v11  ;;  %4080 = vmatprep.subr.bf16.mxu0 %v8295_v36  ;;  %v6376_v0 = vpop.f32.mrb[69].mxu1 }
 0x35f   :  { %8306 = vst [vmem:[#allocation88_spill] sm:$0xff] %v6376_v0  ;;  %v6378_v62 = vpop.f32.mrb[69].mxu0  ;;  %v1739_v63 = vpop.xlane.xlu1 %1738  ;;  %2362 = vadd.xlane.f32.xlu0 %v6257_v43  ;;  %1904 = vmax.xlane.f32.xlu1 %v6229_v37  ;;  %v2134_v3 = vmul.f32 1.442695, %v1991_v2  ;;  %v1989_v37 = vsub.f32 %v6047_v16, %v6324_v49 }
 0x360   :  { %8307 = vst [vmem:[#allocation89_spill] sm:$0xff] %v6378_v62  ;;  %v6386_v11 = vpop.f32.mrb[70].mxu1  ;;  %4677 = vpow2.f32 %v2152_v23  ;;  %v1985_v33 = vsub.f32 %v6027_v52, %v1739_v63  ;;  %v6389_v7 = vpop.f32.mrb[70].mxu0  ;;  %v2007_v23 = vsub.f32 %v6042_v29, %v6309_v19 }
 0x361   :  { %8308 = vst [vmem:[#allocation90_spill] sm:$0xff] %v6386_v11  ;;  %8309 = vst [vmem:[#allocation91_spill] sm:$0xff] %v6389_v7  ;;  %v6391_v27 = vpop.f32.mrb[71].mxu1  ;;  %v6393_v24 = vpop.eup %4671  ;;  %4081 = vmatpush3.bf16.msra.mxu0 %v3051_v40  ;;  %4679 = vpow2.f32 %v2120_v1 }
 0x362   :  { %8310 = vst [vmem:[#allocation92_spill] sm:$0xff] %v6391_v27  ;;  %v6395_v20 = vpop.f32.mrb[71].mxu0  ;;  %v6397_v48 = vpop.eup %4673  ;;  %v2122_v43 = vmul.f32 1.442695, %v1985_v33  ;;  %4082 = vmatprep.subr.bf16.mxu0 %v8295_v36 }
 0x363   :  { %8311 = vst [vmem:[#allocation93_spill] sm:$0xff] %v6395_v20  ;;  %v1749_v52 = vpop.xlane.xlu1 %1748  ;;  %2394 = vadd.xlane.f32.xlu0 %v6266_v46  ;;  %v6403_v63 = vpop.xlane.xlu0 %1790  ;;  %2364 = vadd.xlane.f32.xlu1 %v6278_v21  ;;  %v3061_v40 = vpack.c.bf16 %v6393_v24, %v6397_v48  ;;  %v2166_v21 = vmul.f32 1.442695, %v2007_v23 }
 0x364   :  { %4681 = vpow2.f32 %v2122_v43  ;;  %v1990_v33 = vsub.f32 %v6031_v18, %v1749_v52  ;;  %v6432_v23 = vpop.eup %4675 }
 0x365   :  { %v6411_v9 = vpop.f32.mrb[72].mxu1  ;;  %v6413_v29 = vpop.f32.mrb[72].mxu0  ;;  %4683 = vpow2.f32 %v2134_v3 }
 0x366   :  { %8312 = vst [vmem:[#allocation94_spill] sm:$0xff] %v6411_v9  ;;  %8313 = vst [vmem:[#allocation95_spill] sm:$0xff] %v6413_v29  ;;  %v2132_v19 = vmul.f32 1.442695, %v1990_v33  ;;  %v6415_v1 = vpop.f32.mrb[73].mxu1  ;;  %v6417_v46 = vpop.f32.mrb[73].mxu0 }
 0x367   :  { %8314 = vst [vmem:[#allocation96_spill] sm:$0xff] %v6415_v1  ;;  %8315 = vst [vmem:[#allocation97_spill] sm:$0xff] %v6417_v46  ;;  %v1781_v43 = vpop.xlane.xlu1 %1780  ;;  %2374 = vadd.xlane.f32.xlu0 %v6333_v22  ;;  %v6422_v18 = vpop.xlane.xlu0 %1822  ;;  %2396 = vadd.xlane.f32.xlu1 %v6250_v41  ;;  %v2130_v41 = vmul.f32 1.442695, %v1989_v37 }
 0x368   :  { %4685 = vpow2.f32 %v2132_v19  ;;  %v2006_v52 = vsub.f32 %v6033_v17, %v1781_v43  ;;  %v6428_v2 = vpop.f32.mrb[74].mxu1  ;;  %v6430_v3 = vpop.f32.mrb[74].mxu0  ;;  %v2005_v17 = vsub.f32 %v6044_v30, %v6364_v10  ;;  %v8400_v13 = vsub.f32 %v6074_v31, %v6422_v18 }
 0x369   :  { %8316 = vst [vmem:[#allocation98_spill] sm:$0xff] %v6428_v2  ;;  %8317 = vst [vmem:[#allocation99_spill] sm:$0xff] %v6430_v3  ;;  %v6434_v16 = vpop.f32.mrb[75].mxu1  ;;  %v6436_v49 = vpop.f32.mrb[75].mxu0  ;;  %4687 = vpow2.f32 %v2166_v21 }
 0x36a   :  { %8318 = vst [vmem:[#allocation100_spill] sm:$0xff] %v6434_v16  ;;  %8319 = vst [vmem:[#allocation101_spill] sm:$0xff] %v6436_v49  ;;  %v6438_v22 = vpop.eup %4677  ;;  %v2164_v34 = vmul.f32 1.442695, %v2006_v52 }
 0x36b   :  { %v1745_v19 = vpop.xlane.xlu1 %1744  ;;  %2406 = vadd.xlane.f32.xlu0 %v6299_v8  ;;  %v3060_v43 = vpack.c.bf16 %v6432_v23, %v6438_v22  ;;  %v6445_v33 = vpop.xlane.xlu0 %1786  ;;  %2360 = vadd.xlane.f32.xlu1 %v6259_v12 }
 0x36c   :  { %8320 = vst [vmem:[#allocation102_spill] sm:$0xff] %v6445_v33  ;;  %4689 = vpow2.f32 %v2164_v34  ;;  %v1988_v58 = vsub.f32 %v6038_v15, %v1745_v19  ;;  %v6451_v37 = vpop.eup %4679  ;;  %v2162_v15 = vmul.f32 1.442695, %v2005_v17  ;;  %v8356_v33 = vld [vmem:[#allocation25_spill] sm:$0xff] }
 0x36d   :  { %4103 = vmatpush3.bf16.msra.mxu1 %v3060_v43  ;;  %v6453_v30 = vpop.f32.mrb[76].mxu1  ;;  %v6455_v10 = vpop.f32.mrb[76].mxu0  ;;  %4691 = vpow2.f32 %v2130_v41 }
 0x36e   :  { %8321 = vst [vmem:[#allocation103_spill] sm:$0xff] %v6453_v30  ;;  %8322 = vst [vmem:[#allocation104_spill] sm:$0xff] %v6455_v10  ;;  %v4682_v8 = vpop.eup %4681  ;;  %v2128_v52 = vmul.f32 1.442695, %v1988_v58  ;;  %4104 = vmatprep.subr.bf16.mxu1 %v8295_v36  ;;  %v6458_v1 = vpop.f32.mrb[77].mxu1 }
 0x36f   :  { %8323 = vst [vmem:[#allocation105_spill] sm:$0xff] %v6458_v1  ;;  %v6460_v12 = vpop.f32.mrb[77].mxu0  ;;  %v1777_v34 = vpop.xlane.xlu1 %1776  ;;  %2370 = vadd.xlane.f32.xlu0 %v6356_v53  ;;  %v3052_v19 = vpack.c.bf16 %v4682_v8, %v6451_v37  ;;  %2392 = vadd.xlane.f32.xlu1 %v6271_v25 }
 0x370   :  { %8324 = vst [vmem:[#allocation106_spill] sm:$0xff] %v6460_v12  ;;  %v6464_v43 = vpop.xlane.xlu0 %1818  ;;  %4693 = vpow2.f32 %v2128_v52  ;;  %v2004_v58 = vsub.f32 %v6035_v60, %v1777_v34  ;;  %v6470_v1 = vpop.f32.mrb[78].mxu1 }
 0x371   :  { %8325 = vst [vmem:[#allocation107_spill] sm:$0xff] %v6464_v43  ;;  %8327 = vst [vmem:[#allocation108_spill] sm:$0xff] %v6470_v1  ;;  %v6472_v12 = vpop.f32.mrb[78].mxu0  ;;  %v4684_v41 = vpop.eup %4683  ;;  %4083 = vmatpush3.bf16.msra.mxu0 %v3052_v19  ;;  %4105 = vmatpush3.bf16.msra.mxu1 %v3061_v40  ;;  %4695 = vpow2.f32 %v2162_v15  ;;  %v8335_v15 = vpack.c.bf16 %v6367_v54, %v6373_v50  ;;  %v8342_v19 = vld [vmem:[#allocation30_spill] sm:$0xff] }
 0x372   :  { %8328 = vst [vmem:[#allocation109_spill] sm:$0xff] %v6472_v12  ;;  %v6474_v53 = vpop.f32.mrb[79].mxu1  ;;  %v6476_v17 = vpop.f32.mrb[79].mxu0  ;;  %v2160_v25 = vmul.f32 1.442695, %v2004_v58  ;;  %4084 = vmatprep.subr.bf16.mxu0 %v8295_v36  ;;  %4106 = vmatprep.subr.bf16.mxu1 %v8295_v36 }
 0x373   :  { %8329 = vst [vmem:[#allocation110_spill] sm:$0xff] %v6474_v53  ;;  %8330 = vst [vmem:[#allocation111_spill] sm:$0xff] %v6476_v17  ;;  %v6478_v10 = vpop.eup %4685  ;;  %v6482_v60 = vpop.xlane.xlu1 %1788  ;;  %2402 = vadd.xlane.f32.xlu0 %v6316_v55  ;;  %2372 = vadd.xlane.f32.xlu1 %v6327_v39 }
 0x374   :  { %8331 = vst [vmem:[#allocation112_spill] sm:$0xff] %v6482_v60  ;;  %v6485_v52 = vpop.xlane.xlu0 %1798  ;;  %v3055_v40 = vpack.c.bf16 %v4684_v41, %v6478_v10  ;;  %4697 = vpow2.f32 %v2160_v25  ;;  %v4688_v53 = vpop.eup %4687 }
 0x375   :  { %8332 = vst [vmem:[#allocation113_spill] sm:$0xff] %v6485_v52  ;;  %4085 = vmatpush3.bf16.msra.mxu0 %v8335_v15 }
 0x376   :  { %v6496_v43 = vpop.eup %4689  ;;  %4086 = vmatprep.subr.bf16.mxu0 %v8295_v36 }
 0x377   :  { %v6499_v55 = vpop.xlane.xlu1 %1820  ;;  %2382 = vadd.xlane.f32.xlu0 %v6367_v54  ;;  %2404 = vadd.xlane.f32.xlu1 %v6301_v6  ;;  %v3063_v25 = vpack.c.bf16 %v4688_v53, %v6496_v43  ;;  %v4692_v58 = vpop.eup %4691  ;;  %v8341_v6 = vld [vmem:[#allocation20_spill] sm:$0xff] }
 0x378   :  { %8336 = vst [vmem:[#allocation114_spill] sm:$0xff] %v6499_v55  ;;  %v6502_v39 = vpop.xlane.xlu0 %1830  ;;  %v8348_v55 = vld [vmem:[#allocation35_spill] sm:$0xff] }
 0x379   :  { %8337 = vst [vmem:[#allocation115_spill] sm:$0xff] %v6502_v39 }
 0x37a   :  { %v6510_v60 = vpop.eup %4693 }
 0x37b   :  { %v6512_v34 = vpop.xlane.xlu1 %1784  ;;  %2414 = vadd.xlane.f32.xlu0 %v6393_v24  ;;  %v3054_v54 = vpack.c.bf16 %v4692_v58, %v6510_v60  ;;  %2368 = vadd.xlane.f32.xlu1 %v6352_v26  ;;  %v4696_v15 = vpop.eup %4695  ;;  %v8344_v26 = vld [vmem:[#allocation19_spill] sm:$0xff] }
 0x37c   :  { %8340 = vst [vmem:[#allocation116_spill] sm:$0xff] %v6512_v34  ;;  %v6516_v21 = vpop.xlane.xlu0 %1794 }
 0x37d   :  { %4087 = vmatpush3.bf16.msra.mxu0 %v3054_v54 }
 0x37e   :  { %v4698_v39 = vpop.eup %4697  ;;  %4088 = vmatprep.subr.bf16.mxu0 %v8295_v36 }
 0x37f   :  { %v6524_v52 = vpop.xlane.xlu1 %1816  ;;  %2378 = vadd.xlane.f32.xlu0 %v4682_v8  ;;  %v3062_v24 = vpack.c.bf16 %v4696_v15, %v4698_v39  ;;  %2400 = vadd.xlane.f32.xlu1 %v6318_v14  ;;  %v8347_v14 = vld [vmem:[#allocation23_spill] sm:$0xff] }
 0x380   :  { %v6526_v30 = vpop.xlane.xlu0 %1826 }
 0x381   :  { %8343 = vst [vmem:[#allocation20_spill] sm:$0xff] %v6526_v30  ;;  %4089 = vmatpush3.bf16.msra.mxu0 %v3055_v40  ;;  %4107 = vmatpush3.bf16.msra.mxu1 %v3062_v24 }
 0x382   :  { %4108 = vmatprep.subr.bf16.mxu1 %v8295_v36  ;;  %4114 = vmatprep.subr.bf16.mxu0 %v8295_v36 }
 0x383   :  { %v6535_v54 = vpop.xlane.xlu1 %1796  ;;  %2410 = vadd.xlane.f32.xlu0 %v6432_v23  ;;  %2380 = vadd.xlane.f32.xlu1 %v6373_v50  ;;  %v8350_v23 = vld [vmem:[#allocation24_spill] sm:$0xff] }
 0x384   :  { %v6538_v8 = vpop.xlane.xlu0 %1806 }
 0x385   :  { %8346 = vst [vmem:[#allocation30_spill] sm:$0xff] %v6538_v8  ;;  %4109 = vmatpush3.bf16.msra.mxu1 %v3063_v25  ;;  %v8353_v25 = vld [vmem:[#allocation26_spill] sm:$0xff]  ;;  %v8359_v8 = vld [vmem:[#allocation31_spill] sm:$0xff] }
 0x386   :  { %4134 = vmatprep.subr.bf16.mxu1 %v8295_v36  ;;  %v8365_v36 = vld [vmem:[#allocation34_spill] sm:$0xff] }
 0x387   :  { %v6546_v40 = vpop.xlane.xlu1 %1828  ;;  %2390 = vadd.xlane.f32.xlu0 %v4684_v41  ;;  %2412 = vadd.xlane.f32.xlu1 %v6397_v48 }
 0x388   :  { %v6548_v24 = vpop.xlane.xlu0 %1838 }
 0x389   :  { %8349 = vst [vmem:[#allocation19_spill] sm:$0xff] %v6548_v24 }
 0x38b   :  { %v6555_v56 = vpop.xlane.xlu1 %1792  ;;  %2422 = vadd.xlane.f32.xlu0 %v4688_v53  ;;  %2376 = vadd.xlane.f32.xlu1 %v6451_v37 }
 0x38c   :  { %v6557_v34 = vpop.xlane.xlu0 %1802 }
 0x38d   :  { %8352 = vst [vmem:[#allocation23_spill] sm:$0xff] %v6557_v34 }
 0x38f   :  { %v6564_v48 = vpop.xlane.xlu1 %1824  ;;  %2386 = vadd.xlane.f32.xlu0 %v4692_v58  ;;  %2408 = vadd.xlane.f32.xlu1 %v6438_v22 }
 0x390   :  { %v6566_v30 = vpop.xlane.xlu0 %1834 }
 0x391   :  { %8355 = vst [vmem:[#allocation35_spill] sm:$0xff] %v6566_v30  ;;  %v8373_v30 = vld [vmem:[#allocation40_spill] sm:$0xff] }
 0x393   :  { %v6573_v37 = vpop.xlane.xlu1 %1804  ;;  %2418 = vadd.xlane.f32.xlu0 %v4696_v15  ;;  %2388 = vadd.xlane.f32.xlu1 %v6478_v10  ;;  %v8362_v15 = vld [vmem:[#allocation32_spill] sm:$0xff]  ;;  %v8368_v10 = vld [vmem:[#allocation33_spill] sm:$0xff] }
 0x394   :  { %v6575_v41 = vpop.xlane.xlu0 %1814 }
 0x395   :  { %8358 = vst [vmem:[#allocation24_spill] sm:$0xff] %v6575_v41 }
 0x397   :  { %v6582_v22 = vpop.xlane.xlu1 %1836  ;;  %1918 = vmax.xlane.f32.xlu0 %v6348_v5  ;;  %2420 = vadd.xlane.f32.xlu1 %v6496_v43  ;;  %v8370_v43 = vld [vmem:[#allocation39_spill] sm:$0xff] }
 0x398   :  { %v6585_v53 = vpop.xlane.xlu0 %1846 }
 0x399   :  { %8361 = vst [vmem:[#allocation26_spill] sm:$0xff] %v6585_v53  ;;  %v8369_v53 = vld [vmem:[#allocation45_spill] sm:$0xff] }
 0x39b   :  { %v6592_v24 = vpop.xlane.xlu1 %1800  ;;  %1950 = vmax.xlane.f32.xlu0 %v6346_v61  ;;  %2384 = vadd.xlane.f32.xlu1 %v6510_v60 }
 0x39c   :  { %v6595_v58 = vpop.xlane.xlu0 %1810 }
 0x39d   :  { %8364 = vst [vmem:[#allocation25_spill] sm:$0xff] %v6595_v58 }
 0x39f   :  { %v6602_v34 = vpop.xlane.xlu1 %1832  ;;  %1914 = vmax.xlane.f32.xlu0 %v6354_v4  ;;  %2416 = vadd.xlane.f32.xlu1 %v4698_v39  ;;  %v8376_v39 = vld [vmem:[#allocation42_spill] sm:$0xff]  ;;  %v8382_v4 = vld [vmem:[#allocation47_spill] sm:$0xff] }
 0x3a0   :  { %v6605_v50 = vpop.xlane.xlu0 %1842 }
 0x3a1   :  { %8367 = vst [vmem:[#allocation31_spill] sm:$0xff] %v6605_v50  ;;  %v8379_v50 = vld [vmem:[#allocation41_spill] sm:$0xff] }
 0x3a3   :  { %v6611_v60 = vpop.xlane.xlu1 %1812  ;;  %1946 = vmax.xlane.f32.xlu0 %v6350_v28  ;;  %1916 = vmax.xlane.f32.xlu1 %v6331_v42  ;;  %v8385_v42 = vld [vmem:[#allocation48_spill] sm:$0xff] }
 0x3a4   :  { %v6617_v58 = vpop.xlane.xlu0 %1854 }
 0x3a5   :  { %8371 = vst [vmem:[#allocation32_spill] sm:$0xff] %v6617_v58 }
 0x3a7   :  { %v6621_v41 = vpop.xlane.xlu1 %1844  ;;  %1926 = vmax.xlane.f32.xlu0 %v6389_v7  ;;  %1948 = vmax.xlane.f32.xlu1 %v6329_v51  ;;  %v8387_v51 = vld [vmem:[#allocation50_spill] sm:$0xff] }
 0x3a8   :  { %v6627_v28 = vpop.xlane.xlu0 %1886 }
 0x3a9   :  { %8374 = vst [vmem:[#allocation34_spill] sm:$0xff] %v6627_v28 }
 0x3ab   :  { %v6631_v5 = vpop.xlane.xlu1 %1808  ;;  %1958 = vmax.xlane.f32.xlu0 %v6386_v11  ;;  %1912 = vmax.xlane.f32.xlu1 %v6338_v44  ;;  %v8381_v44 = vld [vmem:[#allocation53_spill] sm:$0xff] }
 0x3ac   :  { %v6637_v7 = vpop.xlane.xlu0 %1850 }
 0x3ad   :  { %8377 = vst [vmem:[#allocation33_spill] sm:$0xff] %v6637_v7 }
 0x3af   :  { %v6641_v61 = vpop.xlane.xlu1 %1840  ;;  %1922 = vmax.xlane.f32.xlu0 %v6395_v20  ;;  %1944 = vmax.xlane.f32.xlu1 %v6336_v47 }
 0x3b0   :  { %v6647_v11 = vpop.xlane.xlu0 %1882 }
 0x3b1   :  { %8380 = vst [vmem:[#allocation45_spill] sm:$0xff] %v6647_v11 }
 0x3b3   :  { %v6651_v58 = vpop.xlane.xlu1 %1852  ;;  %1954 = vmax.xlane.f32.xlu0 %v6391_v27  ;;  %1924 = vmax.xlane.f32.xlu1 %v6371_v38  ;;  %v8389_v38 = vld [vmem:[#allocation49_spill] sm:$0xff] }
 0x3b4   :  { %v6657_v20 = vpop.xlane.xlu0 %1862 }
 0x3b5   :  { %8383 = vst [vmem:[#allocation39_spill] sm:$0xff] %v6657_v20 }
 0x3b7   :  { %v6661_v28 = vpop.xlane.xlu1 %1884  ;;  %1934 = vmax.xlane.f32.xlu0 %v6430_v3  ;;  %1956 = vmax.xlane.f32.xlu1 %v6369_v32  ;;  %v8393_v32 = vld [vmem:[#allocation55_spill] sm:$0xff] }
 0x3b8   :  { %v6667_v27 = vpop.xlane.xlu0 %1894 }
 0x3b9   :  { %8386 = vst [vmem:[#allocation40_spill] sm:$0xff] %v6667_v27  ;;  %v8396_v27 = vsub.f32 %v6072_v45, %v6403_v63  ;;  %v2206_v45 = vmul.f32 1.442695, %v8400_v13  ;;  %v8407_v13 = vld [vmem:[#allocation57_spill] sm:$0xff] }
 0x3bb   :  { %v6671_v7 = vpop.xlane.xlu1 %1848  ;;  %1966 = vmax.xlane.f32.xlu0 %v6428_v2  ;;  %1920 = vmax.xlane.f32.xlu1 %v6378_v62 }
 0x3bc   :  { %v6677_v3 = vpop.xlane.xlu0 %1858 }
 0x3bd   :  { %8388 = vst [vmem:[#allocation42_spill] sm:$0xff] %v6677_v3 }
 0x3bf   :  { %v6681_v11 = vpop.xlane.xlu1 %1880  ;;  %1930 = vmax.xlane.f32.xlu0 %v6436_v49  ;;  %1952 = vmax.xlane.f32.xlu1 %v6376_v0 }
 0x3c0   :  { %v6687_v2 = vpop.xlane.xlu0 %1890 }
 0x3c1   :  { %8390 = vst [vmem:[#allocation41_spill] sm:$0xff] %v6687_v2 }
 0x3c3   :  { %v6691_v20 = vpop.xlane.xlu1 %1860  ;;  %1962 = vmax.xlane.f32.xlu0 %v6434_v16  ;;  %1932 = vmax.xlane.f32.xlu1 %v6413_v29  ;;  %v2174_v16 = vmul.f32 1.442695, %v8396_v27  ;;  %v8397_v29 = vld [vmem:[#allocation56_spill] sm:$0xff] }
 0x3c4   :  { %8392 = vst [vmem:[#allocation53_spill] sm:$0xff] %v6691_v20  ;;  %v6697_v49 = vpop.xlane.xlu0 %1870 }
 0x3c5   :  { %8394 = vst [vmem:[#allocation47_spill] sm:$0xff] %v6697_v49  ;;  %4699 = vpow2.f32 %v2174_v16  ;;  %v8404_v16 = vld [vmem:[#allocation22_spill] sm:$0xff]  ;;  %v8409_v49 = vld [vmem:[#allocation68_spill] sm:$0xff] }
 0x3c6   :  { %4701 = vpow2.f32 %v2206_v45  ;;  %v8415_v45 = vld [vmem:[#allocation104_spill] sm:$0xff] }
 0x3c7   :  { %v6701_v47 = vpop.xlane.xlu1 %1892  ;;  %1942 = vmax.xlane.f32.xlu0 %v6472_v12  ;;  %1964 = vmax.xlane.f32.xlu1 %v6411_v9  ;;  %v8410_v12 = vld [vmem:[#allocation21_spill] sm:$0xff] }
 0x3c8   :  { %v6710_v62 = vpop.xlane.xlu0 %1902 }
 0x3c9   :  { %8398 = vst [vmem:[#allocation48_spill] sm:$0xff] %v6710_v62 }
 0x3cb   :  { %v6714_v20 = vpop.xlane.xlu1 %1856  ;;  %1974 = vmax.xlane.f32.xlu0 %v6470_v1  ;;  %1928 = vmax.xlane.f32.xlu1 %v6417_v46  ;;  %v8403_v1 = vld [vmem:[#allocation96_spill] sm:$0xff]  ;;  %v8405_v46 = vld [vmem:[#allocation102_spill] sm:$0xff] }
 0x3cc   :  { %8399 = vst [vmem:[#allocation50_spill] sm:$0xff] %v6714_v20  ;;  %v6723_v2 = vpop.xlane.xlu0 %1866  ;;  %v8406_v9 = vsub.f32 %v8404_v16, %v8405_v46  ;;  %v8417_v46 = vld [vmem:[#allocation112_spill] sm:$0xff] }
 0x3cd   :  { %8402 = vst [vmem:[#allocation49_spill] sm:$0xff] %v6723_v2  ;;  %v8411_v2 = vld [vmem:[#allocation107_spill] sm:$0xff] }
 0x3ce   :  { %v2170_v31 = vmul.f32 1.442695, %v8406_v9  ;;  %v8412_v57 = vsub.f32 %v8410_v12, %v8411_v2  ;;  %v8416_v9 = vld [vmem:[#allocation17_spill] sm:$0xff]  ;;  %v8423_v12 = vld [vmem:[#allocation27_spill] sm:$0xff]  ;;  %v8430_v2 = vld [vmem:[#allocation62_spill] sm:$0xff] }
 0x3cf   :  { %v6727_v3 = vpop.xlane.xlu1 %1888  ;;  %1938 = vmax.xlane.f32.xlu0 %v6476_v17  ;;  %1960 = vmax.xlane.f32.xlu1 %v8403_v1  ;;  %v8414_v1 = vld [vmem:[#allocation110_spill] sm:$0xff]  ;;  %v8418_v16 = vsub.f32 %v8416_v9, %v8417_v46  ;;  %v8426_v9 = vld [vmem:[#allocation103_spill] sm:$0xff] }
 0x3d0   :  { %v6736_v63 = vpop.xlane.xlu0 %1898  ;;  %v2202_v62 = vmul.f32 1.442695, %v8412_v57  ;;  %4703 = vpow2.f32 %v2170_v31  ;;  %v6756_v57 = vpop.eup %4699  ;;  %v8427_v46 = vld [vmem:[#allocation18_spill] sm:$0xff] }
 0x3d1   :  { %8408 = vst [vmem:[#allocation55_spill] sm:$0xff] %v6736_v63  ;;  %v2172_v18 = vmul.f32 1.442695, %v8418_v16  ;;  %8422 = vst [vmem:[#allocation102_spill] sm:$0xff] %v6756_v57  ;;  %v8428_v16 = vld [vmem:[#allocation114_spill] sm:$0xff] }
 0x3d2   :  { %4705 = vpow2.f32 %v2202_v62  ;;  %v8429_v20 = vsub.f32 %v8427_v46, %v8428_v16  ;;  %v8438_v46 = vld [vmem:[#allocation116_spill] sm:$0xff] }
 0x3d3   :  { %v6743_v17 = vpop.xlane.xlu1 %1868  ;;  %1970 = vmax.xlane.f32.xlu0 %v8414_v1  ;;  %1940 = vmax.xlane.f32.xlu1 %v8415_v45  ;;  %v8424_v1 = vld [vmem:[#allocation113_spill] sm:$0xff]  ;;  %4707 = vpow2.f32 %v2172_v18  ;;  %v8439_v16 = vsub.f32 %v8341_v6, %v8438_v46  ;;  %v8446_v46 = vsub.f32 %v8344_v26, %v6524_v52  ;;  %v8454_v52 = vsub.f32 %v8347_v14, %v6535_v54 }
 0x3d4   :  { %8413 = vst [vmem:[#allocation56_spill] sm:$0xff] %v6743_v17  ;;  %v6752_v27 = vpop.xlane.xlu0 %1878  ;;  %v8425_v63 = vsub.f32 %v8423_v12, %v8424_v1  ;;  %v2204_v17 = vmul.f32 1.442695, %v8429_v20  ;;  %v8434_v12 = vld [vmem:[#allocation28_spill] sm:$0xff]  ;;  %v8437_v20 = vld [vmem:[#allocation106_spill] sm:$0xff]  ;;  %v8440_v1 = vld [vmem:[#allocation65_spill] sm:$0xff]  ;;  %v8461_v54 = vsub.f32 %v8350_v23, %v6546_v40  ;;  %v8469_v40 = vsub.f32 %v8353_v25, %v6555_v56 }
 0x3d5   :  { %8420 = vst [vmem:[#allocation22_spill] sm:$0xff] %v6752_v27  ;;  %v2168_v27 = vmul.f32 1.442695, %v8439_v16  ;;  %v8445_v6 = vld [vmem:[#allocation105_spill] sm:$0xff]  ;;  %v2200_v16 = vmul.f32 1.442695, %v8446_v46  ;;  %v8477_v56 = vsub.f32 %v8356_v33, %v6564_v48  ;;  %v8485_v33 = vsub.f32 %v8359_v8, %v6573_v37 }
 0x3d6   :  { %v2182_v45 = vmul.f32 1.442695, %v8425_v63  ;;  %v6774_v63 = vpop.eup %4701  ;;  %v2180_v26 = vmul.f32 1.442695, %v8454_v52  ;;  %v8455_v46 = vld [vmem:[#allocation71_spill] sm:$0xff]  ;;  %v8491_v8 = vsub.f32 %v8362_v15, %v6582_v22  ;;  %v8497_v22 = vsub.f32 %v8365_v36, %v6592_v24 }
 0x3d7   :  { %v6761_v31 = vpop.xlane.xlu1 %1900  ;;  %2430 = vadd.xlane.f32.xlu0 %v6756_v57  ;;  %1972 = vmax.xlane.f32.xlu1 %v8426_v9  ;;  %8433 = vst [vmem:[#allocation68_spill] sm:$0xff] %v6774_v63  ;;  %v8435_v57 = vld [vmem:[#allocation115_spill] sm:$0xff]  ;;  %v2212_v14 = vmul.f32 1.442695, %v8461_v54  ;;  %v2176_v23 = vmul.f32 1.442695, %v8469_v40  ;;  %v8502_v36 = vsub.f32 %v8368_v10, %v6602_v34  ;;  %v8507_v34 = vsub.f32 %v8370_v43, %v6611_v60 }
 0x3d8   :  { %v6770_v0 = vpop.xlane.xlu0 %1910  ;;  %4709 = vpow2.f32 %v2182_v45  ;;  %v8436_v35 = vsub.f32 %v8434_v12, %v8435_v57  ;;  %v8444_v12 = vsub.f32 %v8342_v19, %v6516_v21  ;;  %v8447_v57 = vld [vmem:[#allocation64_spill] sm:$0xff]  ;;  %v2208_v25 = vmul.f32 1.442695, %v8477_v56 }
 0x3d9   :  { %8431 = vst [vmem:[#allocation57_spill] sm:$0xff] %v6770_v0  ;;  %4711 = vpow2.f32 %v2204_v17  ;;  %v8449_v21 = vld [vmem:[#allocation76_spill] sm:$0xff]  ;;  %v2188_v48 = vmul.f32 1.442695, %v8485_v33  ;;  %v2220_v37 = vmul.f32 1.442695, %v8491_v8  ;;  %v8511_v43 = vsub.f32 %v8385_v42, %v6661_v28 }
 0x3da   :  { %v2214_v9 = vmul.f32 1.442695, %v8436_v35  ;;  %v6792_v35 = vpop.eup %4703  ;;  %v2184_v15 = vmul.f32 1.442695, %v8497_v22  ;;  %v2216_v24 = vmul.f32 1.442695, %v8502_v36  ;;  %v8515_v42 = vsub.f32 %v8389_v38, %v6681_v11 }
 0x3db   :  { %v6779_v18 = vpop.xlane.xlu1 %1864  ;;  %2462 = vadd.xlane.f32.xlu0 %v6774_v63  ;;  %1936 = vmax.xlane.f32.xlu1 %v8437_v20  ;;  %8443 = vst [vmem:[#allocation107_spill] sm:$0xff] %v6792_v35  ;;  %v2178_v63 = vmul.f32 1.442695, %v8444_v12  ;;  %v2196_v10 = vmul.f32 1.442695, %v8507_v34  ;;  %v8521_v38 = vsub.f32 %v8379_v50, %v6641_v61  ;;  %v8527_v61 = vsub.f32 %v8382_v4, %v6651_v58 }
 0x3dc   :  { %v6788_v62 = vpop.xlane.xlu0 %1874  ;;  %4713 = vpow2.f32 %v2214_v9  ;;  %v6808_v9 = vpop.eup %4705  ;;  %v2268_v60 = vmul.f32 1.442695, %v8511_v43  ;;  %v2264_v28 = vmul.f32 1.442695, %v8515_v42  ;;  %v8531_v4 = vsub.f32 %v8397_v29, %v6701_v47 }
 0x3dd   :  { %8441 = vst [vmem:[#allocation21_spill] sm:$0xff] %v6788_v62  ;;  %4715 = vpow2.f32 %v2168_v27  ;;  %8448 = vst [vmem:[#allocation17_spill] sm:$0xff] %v6808_v9  ;;  %v6812_v12 = vpop.eup %4707  ;;  %v2224_v11 = vmul.f32 1.442695, %v8521_v38  ;;  %v2236_v50 = vmul.f32 1.442695, %v8527_v61  ;;  %v8537_v47 = vsub.f32 %v8407_v13, %v6727_v3 }
 0x3de   :  { %8450 = vst [vmem:[#allocation112_spill] sm:$0xff] %v6812_v12  ;;  %4717 = vpow2.f32 %v2178_v63  ;;  %v2276_v58 = vmul.f32 1.442695, %v8531_v4  ;;  %v8542_v3 = vld [vmem:[#allocation40_spill] sm:$0xff] }
 0x3df   :  { %v6797_v17 = vpop.xlane.xlu1 %1896  ;;  %2426 = vadd.xlane.f32.xlu0 %v6792_v35  ;;  %1968 = vmax.xlane.f32.xlu1 %v8445_v6  ;;  %v8451_v35 = vld [vmem:[#allocation29_spill] sm:$0xff]  ;;  %v8452_v6 = vld [vmem:[#allocation20_spill] sm:$0xff]  ;;  %4719 = vpow2.f32 %v2200_v16  ;;  %v8462_v16 = vld [vmem:[#allocation70_spill] sm:$0xff]  ;;  %v2272_v29 = vmul.f32 1.442695, %v8537_v47  ;;  %v8543_v13 = vsub.f32 %v6190_v59, %v8542_v3 }
 0x3e0   :  { %v6806_v20 = vpop.xlane.xlu0 %1906  ;;  %v8453_v27 = vsub.f32 %v8451_v35, %v8452_v6  ;;  %v8459_v6 = vld [vmem:[#allocation30_spill] sm:$0xff]  ;;  %v8549_v59 = vld [vmem:[#allocation53_spill] sm:$0xff] }
 0x3e2   :  { %v2210_v62 = vmul.f32 1.442695, %v8453_v27  ;;  %v6828_v63 = vpop.eup %4709  ;;  %v8460_v27 = vsub.f32 %v8348_v55, %v8459_v6  ;;  %v8466_v6 = vld [vmem:[#allocation36_spill] sm:$0xff] }
 0x3e3   :  { %v6817_v45 = vpop.xlane.xlu1 %1876  ;;  %2458 = vadd.xlane.f32.xlu0 %v6808_v9  ;;  %2428 = vadd.xlane.f32.xlu1 %v6812_v12  ;;  %8457 = vst [vmem:[#allocation113_spill] sm:$0xff] %v6828_v63  ;;  %v6830_v35 = vpop.eup %4711 }
 0x3e4   :  { %v6826_v0 = vpop.xlane.xlu0 %2366  ;;  %8458 = vst [vmem:[#allocation18_spill] sm:$0xff] %v6830_v35  ;;  %4721 = vpow2.f32 %v2210_v62  ;;  %v2190_v9 = vmul.f32 1.442695, %v8460_v27  ;;  %v8467_v27 = vld [vmem:[#allocation19_spill] sm:$0xff] }
 0x3e5   :  { %8456 = vst [vmem:[#allocation27_spill] sm:$0xff] %v6826_v0  ;;  %4723 = vpow2.f32 %v2180_v26  ;;  %v8470_v26 = vld [vmem:[#allocation73_spill] sm:$0xff] }
 0x3e6   :  { %v6846_v62 = vpop.eup %4713  ;;  %4725 = vpow2.f32 %v2190_v9 }
 0x3e7   :  { %v6835_v12 = vpop.xlane.xlu1 %1908  ;;  %2438 = vadd.xlane.f32.xlu0 %v6828_v63  ;;  %2460 = vadd.xlane.f32.xlu1 %v6830_v35  ;;  %8464 = vst [vmem:[#allocation62_spill] sm:$0xff] %v6846_v62  ;;  %v6848_v55 = vpop.eup %4715  ;;  %v8468_v63 = vsub.f32 %v8466_v6, %v8467_v27  ;;  %4727 = vpow2.f32 %v2212_v14  ;;  %v8475_v27 = vld [vmem:[#allocation23_spill] sm:$0xff]  ;;  %v8478_v14 = vld [vmem:[#allocation72_spill] sm:$0xff] }
 0x3e8   :  { %v6844_v19 = vpop.xlane.xlu0 %2398  ;;  %8465 = vst [vmem:[#allocation28_spill] sm:$0xff] %v6848_v55  ;;  %v6864_v9 = vpop.eup %4717 }
 0x3e9   :  { %8463 = vst [vmem:[#allocation114_spill] sm:$0xff] %v6844_v19  ;;  %v2222_v0 = vmul.f32 1.442695, %v8468_v63  ;;  %8472 = vst [vmem:[#allocation116_spill] sm:$0xff] %v6864_v9  ;;  %v6866_v6 = vpop.eup %4719  ;;  %v8474_v63 = vld [vmem:[#allocation38_spill] sm:$0xff] }
 0x3ea   :  { %8473 = vst [vmem:[#allocation65_spill] sm:$0xff] %v6866_v6 }
 0x3eb   :  { %v6853_v35 = vpop.xlane.xlu1 %1872  ;;  %2470 = vadd.xlane.f32.xlu0 %v6846_v62  ;;  %2424 = vadd.xlane.f32.xlu1 %v6848_v55  ;;  %4729 = vpow2.f32 %v2222_v0  ;;  %v8476_v62 = vsub.f32 %v8474_v63, %v8475_v27  ;;  %v8482_v27 = vld [vmem:[#allocation35_spill] sm:$0xff] }
 0x3ec   :  { %v6862_v52 = vpop.xlane.xlu0 %2362  ;;  %4731 = vpow2.f32 %v2176_v23 }
 0x3ed   :  { %8471 = vst [vmem:[#allocation115_spill] sm:$0xff] %v6862_v52  ;;  %v2186_v19 = vmul.f32 1.442695, %v8476_v62  ;;  %v8481_v62 = vld [vmem:[#allocation37_spill] sm:$0xff] }
 0x3ee   :  { %v6882_v0 = vpop.eup %4721 }
 0x3ef   :  { %v6871_v55 = vpop.xlane.xlu1 %1904  ;;  %2434 = vadd.xlane.f32.xlu0 %v6864_v9  ;;  %2456 = vadd.xlane.f32.xlu1 %v6866_v6  ;;  %8479 = vst [vmem:[#allocation64_spill] sm:$0xff] %v6882_v0  ;;  %v6884_v63 = vpop.eup %4723  ;;  %4733 = vpow2.f32 %v2186_v19  ;;  %v8483_v9 = vsub.f32 %v8481_v62, %v8482_v27  ;;  %v8488_v62 = vld [vmem:[#allocation43_spill] sm:$0xff] }
 0x3f0   :  { %v6880_v54 = vpop.xlane.xlu0 %2394  ;;  %8480 = vst [vmem:[#allocation76_spill] sm:$0xff] %v6884_v63  ;;  %4735 = vpow2.f32 %v2208_v25  ;;  %v6898_v56 = vpop.eup %4725 }
 0x3f1   :  { %v2218_v52 = vmul.f32 1.442695, %v8483_v9  ;;  %8486 = vst [vmem:[#allocation20_spill] sm:$0xff] %v6898_v56  ;;  %v6900_v19 = vpop.eup %4727  ;;  %v8489_v9 = vld [vmem:[#allocation24_spill] sm:$0xff] }
 0x3f2   :  { %8487 = vst [vmem:[#allocation71_spill] sm:$0xff] %v6900_v19  ;;  %v8490_v27 = vsub.f32 %v8488_v62, %v8489_v9  ;;  %v8494_v62 = vld [vmem:[#allocation44_spill] sm:$0xff]  ;;  %v8495_v9 = vld [vmem:[#allocation26_spill] sm:$0xff] }
 0x3f3   :  { %v6889_v6 = vpop.xlane.xlu1 %2364  ;;  %2466 = vadd.xlane.f32.xlu0 %v6882_v0  ;;  %2436 = vadd.xlane.f32.xlu1 %v6884_v63  ;;  %4737 = vpow2.f32 %v2218_v52 }
 0x3f4   :  { %8484 = vst [vmem:[#allocation29_spill] sm:$0xff] %v6889_v6  ;;  %v6896_v23 = vpop.xlane.xlu0 %2374  ;;  %v2198_v40 = vmul.f32 1.442695, %v8490_v27  ;;  %4739 = vpow2.f32 %v2188_v48  ;;  %v8496_v27 = vsub.f32 %v8494_v62, %v8495_v9  ;;  %v8499_v62 = vld [vmem:[#allocation46_spill] sm:$0xff]  ;;  %v8500_v9 = vld [vmem:[#allocation25_spill] sm:$0xff] }
 0x3f5   :  { %v6914_v33 = vpop.eup %4729 }
 0x3f6   :  { %8492 = vst [vmem:[#allocation30_spill] sm:$0xff] %v6914_v33  ;;  %v6916_v52 = vpop.eup %4731  ;;  %4741 = vpow2.f32 %v2198_v40  ;;  %v2230_v63 = vmul.f32 1.442695, %v8496_v27  ;;  %v8501_v27 = vsub.f32 %v8499_v62, %v8500_v9  ;;  %v8505_v62 = vld [vmem:[#allocation31_spill] sm:$0xff] }
 0x3f7   :  { %v6905_v6 = vpop.xlane.xlu1 %2396  ;;  %2446 = vadd.xlane.f32.xlu0 %v6898_v56  ;;  %2468 = vadd.xlane.f32.xlu1 %v6900_v19  ;;  %8493 = vst [vmem:[#allocation70_spill] sm:$0xff] %v6916_v52  ;;  %4743 = vpow2.f32 %v2220_v37  ;;  %v8506_v9 = vsub.f32 %v8369_v53, %v8505_v62  ;;  %v8510_v53 = vsub.f32 %v8373_v30, %v6621_v41 }
 0x3f8   :  { %v6912_v25 = vpop.xlane.xlu0 %2406  ;;  %4745 = vpow2.f32 %v2230_v63  ;;  %v2194_v56 = vmul.f32 1.442695, %v8501_v27  ;;  %v8514_v30 = vsub.f32 %v8376_v39, %v6631_v5  ;;  %v8519_v5 = vld [vmem:[#allocation34_spill] sm:$0xff] }
 0x3f9   :  { %v6930_v8 = vpop.eup %4733  ;;  %4747 = vpow2.f32 %v2184_v15  ;;  %v2226_v27 = vmul.f32 1.442695, %v8506_v9  ;;  %v2228_v62 = vmul.f32 1.442695, %v8510_v53 }
 0x3fa   :  { %8498 = vst [vmem:[#allocation36_spill] sm:$0xff] %v6930_v8  ;;  %v6932_v40 = vpop.eup %4735  ;;  %4749 = vpow2.f32 %v2194_v56  ;;  %v2192_v41 = vmul.f32 1.442695, %v8514_v30 }
 0x3fb   :  { %v6921_v0 = vpop.xlane.xlu1 %2360  ;;  %2478 = vadd.xlane.f32.xlu0 %v6914_v33  ;;  %2432 = vadd.xlane.f32.xlu1 %v6916_v52  ;;  %4751 = vpow2.f32 %v2216_v24 }
 0x3fc   :  { %v6928_v48 = vpop.xlane.xlu0 %2370  ;;  %4753 = vpow2.f32 %v2226_v27 }
 0x3fd   :  { %v6946_v22 = vpop.eup %4737  ;;  %4755 = vpow2.f32 %v2196_v10 }
 0x3fe   :  { %8503 = vst [vmem:[#allocation19_spill] sm:$0xff] %v6946_v22  ;;  %v6948_v63 = vpop.eup %4739  ;;  %4757 = vpow2.f32 %v2228_v62 }
 0x3ff   :  { %v6937_v19 = vpop.xlane.xlu1 %2392  ;;  %2442 = vadd.xlane.f32.xlu0 %v6930_v8  ;;  %2464 = vadd.xlane.f32.xlu1 %v6932_v40  ;;  %8504 = vst [vmem:[#allocation73_spill] sm:$0xff] %v6948_v63  ;;  %4759 = vpow2.f32 %v2268_v60 }
 0x400   :  { %v6944_v37 = vpop.xlane.xlu0 %2402  ;;  %v6962_v36 = vpop.eup %4741  ;;  %4761 = vpow2.f32 %v2192_v41  ;;  %v8525_v41 = vld [vmem:[#allocation33_spill] sm:$0xff] }
 0x401   :  { %8508 = vst [vmem:[#allocation38_spill] sm:$0xff] %v6962_v36  ;;  %v6964_v56 = vpop.eup %4743  ;;  %4763 = vpow2.f32 %v2264_v28 }
 0x402   :  { %8509 = vst [vmem:[#allocation23_spill] sm:$0xff] %v6964_v56  ;;  %v6978_v34 = vpop.eup %4745 }
 0x403   :  { %v6953_v52 = vpop.xlane.xlu1 %2372  ;;  %2474 = vadd.xlane.f32.xlu0 %v6946_v22  ;;  %2444 = vadd.xlane.f32.xlu1 %v6948_v63  ;;  %8512 = vst [vmem:[#allocation72_spill] sm:$0xff] %v6978_v34  ;;  %v6980_v27 = vpop.eup %4747  ;;  %v8579_v22 = vld [vmem:[#allocation82_spill] sm:$0xff] }
 0x404   :  { %v6960_v15 = vpop.xlane.xlu0 %2382  ;;  %8513 = vst [vmem:[#allocation37_spill] sm:$0xff] %v6980_v27  ;;  %v6994_v43 = vpop.eup %4749 }
 0x405   :  { %8516 = vst [vmem:[#allocation35_spill] sm:$0xff] %v6994_v43  ;;  %v6996_v62 = vpop.eup %4751 }
 0x406   :  { %8517 = vst [vmem:[#allocation43_spill] sm:$0xff] %v6996_v62  ;;  %v7010_v42 = vpop.eup %4753 }
 0x407   :  { %v6969_v9 = vpop.xlane.xlu1 %2404  ;;  %2454 = vadd.xlane.f32.xlu0 %v6962_v36  ;;  %2476 = vadd.xlane.f32.xlu1 %v6964_v56  ;;  %v8518_v36 = vld [vmem:[#allocation52_spill] sm:$0xff]  ;;  %8522 = vst [vmem:[#allocation24_spill] sm:$0xff] %v7010_v42  ;;  %v7012_v8 = vpop.eup %4755 }
 0x408   :  { %v6976_v24 = vpop.xlane.xlu0 %2414  ;;  %v8520_v39 = vsub.f32 %v8518_v36, %v8519_v5  ;;  %8523 = vst [vmem:[#allocation44_spill] sm:$0xff] %v7012_v8  ;;  %v8524_v36 = vld [vmem:[#allocation54_spill] sm:$0xff]  ;;  %v7026_v38 = vpop.eup %4757 }
 0x409   :  { %v8526_v5 = vsub.f32 %v8524_v36, %v8525_v41  ;;  %8528 = vst [vmem:[#allocation26_spill] sm:$0xff] %v7026_v38  ;;  %v8530_v36 = vsub.f32 %v8387_v51, %v6671_v7  ;;  %v8535_v7 = vld [vmem:[#allocation32_spill] sm:$0xff] }
 0x40a   :  { %v2270_v30 = vmul.f32 1.442695, %v8520_v39 }
 0x40b   :  { %v6985_v53 = vpop.xlane.xlu1 %2368  ;;  %2486 = vadd.xlane.f32.xlu0 %v6978_v34  ;;  %2440 = vadd.xlane.f32.xlu1 %v6980_v27  ;;  %v2234_v39 = vmul.f32 1.442695, %v8526_v5  ;;  %v2232_v41 = vmul.f32 1.442695, %v8530_v36 }
 0x40c   :  { %v6992_v10 = vpop.xlane.xlu0 %2378  ;;  %4765 = vpow2.f32 %v2270_v30  ;;  %v7028_v30 = vpop.eup %4759 }
 0x40d   :  { %4767 = vpow2.f32 %v2224_v11  ;;  %8529 = vst [vmem:[#allocation46_spill] sm:$0xff] %v7028_v30  ;;  %v7042_v61 = vpop.eup %4761 }
 0x40e   :  { %4769 = vpow2.f32 %v2234_v39  ;;  %8532 = vst [vmem:[#allocation25_spill] sm:$0xff] %v7042_v61  ;;  %v7044_v39 = vpop.eup %4763 }
 0x40f   :  { %v7001_v63 = vpop.xlane.xlu1 %2400  ;;  %2450 = vadd.xlane.f32.xlu0 %v6994_v43  ;;  %2472 = vadd.xlane.f32.xlu1 %v6996_v62  ;;  %4771 = vpow2.f32 %v2236_v50  ;;  %8533 = vst [vmem:[#allocation31_spill] sm:$0xff] %v7044_v39 }
 0x410   :  { %v7008_v60 = vpop.xlane.xlu0 %2410  ;;  %4773 = vpow2.f32 %v2232_v41 }
 0x411   :  { %4775 = vpow2.f32 %v2276_v58  ;;  %v2278_v58 = vmul.f32 1.442695, %v8543_v13 }
 0x413   :  { %v7017_v27 = vpop.xlane.xlu1 %2380  ;;  %2482 = vadd.xlane.f32.xlu0 %v7010_v42  ;;  %2452 = vadd.xlane.f32.xlu1 %v7012_v8  ;;  %v8534_v8 = vld [vmem:[#allocation51_spill] sm:$0xff] }
 0x414   :  { %v7024_v28 = vpop.xlane.xlu0 %2390  ;;  %v8536_v51 = vsub.f32 %v8534_v8, %v8535_v7  ;;  %v8540_v8 = vld [vmem:[#allocation45_spill] sm:$0xff] }
 0x415   :  { %v8541_v41 = vsub.f32 %v8381_v44, %v8540_v8  ;;  %v8546_v44 = vld [vmem:[#allocation60_spill] sm:$0xff]  ;;  %v8547_v8 = vld [vmem:[#allocation41_spill] sm:$0xff] }
 0x416   :  { %v2238_v36 = vmul.f32 1.442695, %v8536_v51  ;;  %v7058_v4 = vpop.eup %4765 }
 0x417   :  { %v7033_v5 = vpop.xlane.xlu1 %2412  ;;  %2524 = vadd.xlane.f32.xlu0 %v7028_v30  ;;  %2484 = vadd.xlane.f32.xlu1 %v7026_v38  ;;  %8538 = vst [vmem:[#allocation52_spill] sm:$0xff] %v7058_v4  ;;  %v7060_v30 = vpop.eup %4767  ;;  %v2266_v7 = vmul.f32 1.442695, %v8541_v41  ;;  %v8548_v41 = vsub.f32 %v8546_v44, %v8547_v8  ;;  %v8554_v44 = vld [vmem:[#allocation50_spill] sm:$0xff] }
 0x418   :  { %v7040_v11 = vpop.xlane.xlu0 %2422  ;;  %8539 = vst [vmem:[#allocation34_spill] sm:$0xff] %v7060_v30  ;;  %4777 = vpow2.f32 %v2238_v36 }
 0x419   :  { %4779 = vpow2.f32 %v2272_v29  ;;  %v8550_v29 = vsub.f32 %v8393_v32, %v8549_v59  ;;  %v8556_v32 = vsub.f32 %v8430_v2, %v6761_v31  ;;  %v8562_v2 = vsub.f32 %v8447_v57, %v6797_v17  ;;  %v8569_v57 = vld [vmem:[#allocation66_spill] sm:$0xff]  ;;  %v8570_v17 = vld [vmem:[#allocation48_spill] sm:$0xff] }
 0x41a   :  { %4781 = vpow2.f32 %v2266_v7  ;;  %v8553_v7 = vld [vmem:[#allocation58_spill] sm:$0xff] }
 0x41b   :  { %v7049_v43 = vpop.xlane.xlu1 %2376  ;;  %2520 = vadd.xlane.f32.xlu0 %v7044_v39  ;;  %2448 = vadd.xlane.f32.xlu1 %v7042_v61  ;;  %v7074_v39 = vpop.eup %4769  ;;  %v2274_v61 = vmul.f32 1.442695, %v8548_v41  ;;  %4783 = vpow2.f32 %v2278_v58  ;;  %v2244_v3 = vmul.f32 1.442695, %v8550_v29  ;;  %v8555_v8 = vsub.f32 %v8553_v7, %v8554_v44 }
 0x41c   :  { %v7056_v50 = vpop.xlane.xlu0 %2386  ;;  %8544 = vst [vmem:[#allocation54_spill] sm:$0xff] %v7074_v39  ;;  %v7076_v36 = vpop.eup %4771  ;;  %v2284_v58 = vmul.f32 1.442695, %v8556_v32  ;;  %v2280_v31 = vmul.f32 1.442695, %v8562_v2 }
 0x41d   :  { %8545 = vst [vmem:[#allocation33_spill] sm:$0xff] %v7076_v36  ;;  %4785 = vpow2.f32 %v2274_v61  ;;  %v2240_v41 = vmul.f32 1.442695, %v8555_v8  ;;  %v8559_v61 = vld [vmem:[#allocation59_spill] sm:$0xff] }
 0x41e   :  { %4787 = vpow2.f32 %v2244_v3 }
 0x41f   :  { %v7065_v51 = vpop.xlane.xlu1 %2408  ;;  %2526 = vadd.xlane.f32.xlu0 %v7058_v4  ;;  %2480 = vadd.xlane.f32.xlu1 %v7060_v30  ;;  %v7088_v4 = vpop.eup %4773  ;;  %4789 = vpow2.f32 %v2240_v41 }
 0x420   :  { %v7072_v47 = vpop.xlane.xlu0 %2418  ;;  %8551 = vst [vmem:[#allocation51_spill] sm:$0xff] %v7088_v4  ;;  %v7090_v38 = vpop.eup %4775  ;;  %4791 = vpow2.f32 %v2284_v58  ;;  %v8571_v58 = vsub.f32 %v8569_v57, %v8570_v17 }
 0x421   :  { %8552 = vst [vmem:[#allocation32_spill] sm:$0xff] %v7090_v38 }
 0x422   :  { %v7102_v29 = vpop.eup %4777  ;;  %v2286_v2 = vmul.f32 1.442695, %v8571_v58 }
 0x423   :  { %v7081_v34 = vpop.xlane.xlu1 %2388  ;;  %2490 = vadd.xlane.f32.xlu0 %v7074_v39  ;;  %2492 = vadd.xlane.f32.xlu1 %v7076_v36  ;;  %8557 = vst [vmem:[#allocation45_spill] sm:$0xff] %v7102_v29  ;;  %v7104_v36 = vpop.eup %4779  ;;  %v8560_v39 = vld [vmem:[#allocation39_spill] sm:$0xff] }
 0x424   :  { %v1919_v13 = vpop.xlane.xlu0 %1918  ;;  %8558 = vst [vmem:[#allocation40_spill] sm:$0xff] %v7104_v36  ;;  %v8561_v7 = vsub.f32 %v8559_v61, %v8560_v39  ;;  %v7116_v32 = vpop.eup %4781  ;;  %v8565_v39 = vld [vmem:[#allocation61_spill] sm:$0xff]  ;;  %v8566_v61 = vld [vmem:[#allocation42_spill] sm:$0xff] }
 0x425   :  { %8563 = vst [vmem:[#allocation60_spill] sm:$0xff] %v7116_v32  ;;  %v8567_v41 = vsub.f32 %v8565_v39, %v8566_v61 }
 0x426   :  { %v2246_v44 = vmul.f32 1.442695, %v8561_v7 }
 0x427   :  { %v7095_v42 = vpop.xlane.xlu1 %2420  ;;  %2532 = vadd.xlane.f32.xlu0 %v7090_v38  ;;  %2488 = vadd.xlane.f32.xlu1 %v7088_v4  ;;  %v7118_v4 = vpop.eup %4783  ;;  %v2242_v7 = vmul.f32 1.442695, %v8567_v41  ;;  %v8568_v38 = vld [vmem:[#allocation83_spill] sm:$0xff] }
 0x428   :  { %v1951_v59 = vpop.xlane.xlu0 %1950  ;;  %8564 = vst [vmem:[#allocation41_spill] sm:$0xff] %v7118_v4  ;;  %4793 = vpow2.f32 %v2246_v44  ;;  %v2075_v30 = vsub.f32 %v8568_v38, %v1919_v13  ;;  %v7131_v33 = vpop.eup %4785  ;;  %v8573_v44 = vld [vmem:[#allocation55_spill] sm:$0xff]  ;;  %v8577_v13 = vld [vmem:[#allocation56_spill] sm:$0xff] }
 0x429   :  { %4795 = vpow2.f32 %v2280_v31  ;;  %8572 = vst [vmem:[#allocation53_spill] sm:$0xff] %v7131_v33  ;;  %v8574_v39 = vsub.f32 %v8409_v49, %v8573_v44  ;;  %v7136_v41 = vpop.eup %4787  ;;  %v8576_v38 = vld [vmem:[#allocation63_spill] sm:$0xff]  ;;  %v2091_v62 = vsub.f32 %v8579_v22, %v1951_v59  ;;  %v8582_v44 = vsub.f32 %v8440_v1, %v6779_v18  ;;  %v8586_v1 = vld [vmem:[#allocation78_spill] sm:$0xff] }
 0x42a   :  { %8575 = vst [vmem:[#allocation58_spill] sm:$0xff] %v7136_v41  ;;  %v8578_v56 = vsub.f32 %v8576_v38, %v8577_v13  ;;  %4797 = vpow2.f32 %v2242_v7  ;;  %v8580_v31 = vld [vmem:[#allocation79_spill] sm:$0xff]  ;;  %v7145_v58 = vpop.eup %4789  ;;  %v8584_v22 = vsub.f32 %v8462_v16, %v6835_v12 }
 0x42b   :  { %v7109_v8 = vpop.xlane.xlu1 %2384  ;;  %2528 = vadd.xlane.f32.xlu0 %v7104_v36  ;;  %2494 = vadd.xlane.f32.xlu1 %v7102_v29  ;;  %v2282_v61 = vmul.f32 1.442695, %v8574_v39  ;;  %4799 = vpow2.f32 %v2286_v2  ;;  %8581 = vst [vmem:[#allocation50_spill] sm:$0xff] %v7145_v58  ;;  %v7150_v7 = vpop.eup %4791  ;;  %v2334_v2 = vmul.f32 1.442695, %v2091_v62  ;;  %v8585_v39 = vld [vmem:[#allocation85_spill] sm:$0xff]  ;;  %v8592_v62 = vsub.f32 %v8478_v14, %v6871_v55 }
 0x42c   :  { %v1915_v3 = vpop.xlane.xlu0 %1914  ;;  %8583 = vst [vmem:[#allocation59_spill] sm:$0xff] %v7150_v7  ;;  %v8596_v55 = vld [vmem:[#allocation69_spill] sm:$0xff] }
 0x42d   :  { %4801 = vpow2.f32 %v2282_v61  ;;  %v2073_v38 = vsub.f32 %v8585_v39, %v1915_v3  ;;  %v2288_v3 = vmul.f32 1.442695, %v8592_v62  ;;  %v8597_v14 = vld [vmem:[#allocation49_spill] sm:$0xff] }
 0x42f   :  { %v7124_v36 = vpop.xlane.xlu1 %2416  ;;  %2534 = vadd.xlane.f32.xlu0 %v7118_v4  ;;  %2522 = vadd.xlane.f32.xlu1 %v7116_v32  ;;  %v2252_v4 = vmul.f32 1.442695, %v8578_v56  ;;  %v2302_v32 = vmul.f32 1.442695, %v2075_v30  ;;  %v2248_v56 = vmul.f32 1.442695, %v8582_v44 }
 0x430   :  { %v1947_v29 = vpop.xlane.xlu0 %1946  ;;  %v2292_v30 = vmul.f32 1.442695, %v8584_v22  ;;  %v2298_v44 = vmul.f32 1.442695, %v2073_v38  ;;  %v8593_v22 = vld [vmem:[#allocation84_spill] sm:$0xff] }
 0x431   :  { %4803 = vpow2.f32 %v2252_v4  ;;  %v8588_v4 = vld [vmem:[#allocation67_spill] sm:$0xff] }
 0x432   :  { %4805 = vpow2.f32 %v2302_v32 }
 0x433   :  { %v1917_v57 = vpop.xlane.xlu1 %1916  ;;  %2530 = vadd.xlane.f32.xlu0 %v7131_v33  ;;  %2500 = vadd.xlane.f32.xlu1 %v7136_v41 }
 0x434   :  { %v2074_v17 = vsub.f32 %v8580_v31, %v1917_v57  ;;  %v1927_v49 = vpop.xlane.xlu0 %1926  ;;  %v7159_v57 = vpop.eup %4793  ;;  %v8589_v31 = vld [vmem:[#allocation47_spill] sm:$0xff] }
 0x435   :  { %8587 = vst [vmem:[#allocation39_spill] sm:$0xff] %v7159_v57  ;;  %v8590_v12 = vsub.f32 %v8588_v4, %v8589_v31  ;;  %v7164_v32 = vpop.eup %4795  ;;  %v8601_v4 = vld [vmem:[#allocation57_spill] sm:$0xff] }
 0x436   :  { %v2300_v59 = vmul.f32 1.442695, %v2074_v17  ;;  %8591 = vst [vmem:[#allocation61_spill] sm:$0xff] %v7164_v32 }
 0x437   :  { %v1949_v13 = vpop.xlane.xlu1 %1948  ;;  %2540 = vadd.xlane.f32.xlu0 %v7150_v7  ;;  %2496 = vadd.xlane.f32.xlu1 %v7145_v58  ;;  %v2254_v16 = vmul.f32 1.442695, %v8590_v12 }
 0x438   :  { %4807 = vpow2.f32 %v2300_v59  ;;  %v2090_v18 = vsub.f32 %v8586_v1, %v1949_v13  ;;  %v1959_v61 = vpop.xlane.xlu0 %1958  ;;  %v2089_v59 = vsub.f32 %v8593_v22, %v1947_v29  ;;  %v8594_v13 = vld [vmem:[#allocation81_spill] sm:$0xff]  ;;  %v8600_v29 = vld [vmem:[#allocation74_spill] sm:$0xff] }
 0x439   :  { %4809 = vpow2.f32 %v2248_v56  ;;  %v8602_v31 = vsub.f32 %v8600_v29, %v8601_v4 }
 0x43a   :  { %4811 = vpow2.f32 %v2292_v30  ;;  %v2332_v17 = vmul.f32 1.442695, %v2090_v18  ;;  %v7175_v30 = vpop.eup %4797  ;;  %v8598_v18 = vsub.f32 %v8596_v55, %v8597_v14  ;;  %v2330_v22 = vmul.f32 1.442695, %v2089_v59  ;;  %v8606_v55 = vld [vmem:[#allocation80_spill] sm:$0xff] }
 0x43b   :  { %4813 = vpow2.f32 %v2334_v2  ;;  %v1913_v39 = vpop.xlane.xlu1 %1912  ;;  %2536 = vadd.xlane.f32.xlu0 %v7164_v32  ;;  %2502 = vadd.xlane.f32.xlu1 %v7159_v57  ;;  %8595 = vst [vmem:[#allocation42_spill] sm:$0xff] %v7175_v30  ;;  %v7180_v38 = vpop.eup %4799  ;;  %v2294_v12 = vmul.f32 1.442695, %v8602_v31 }
 0x43c   :  { %4815 = vpow2.f32 %v2332_v17  ;;  %v2072_v56 = vsub.f32 %v8594_v13, %v1913_v39  ;;  %v7173_v1 = vpop.xlane.xlu0 %1922  ;;  %v2250_v2 = vmul.f32 1.442695, %v8598_v18  ;;  %8599 = vst [vmem:[#allocation83_spill] sm:$0xff] %v7180_v38  ;;  %v7185_v17 = vpop.eup %4801  ;;  %v8604_v39 = vld [vmem:[#allocation91_spill] sm:$0xff] }
 0x43d   :  { %4817 = vpow2.f32 %v2254_v16  ;;  %8603 = vst [vmem:[#allocation66_spill] sm:$0xff] %v7185_v17  ;;  %v2079_v13 = vsub.f32 %v8604_v39, %v1927_v49  ;;  %v7190_v16 = vpop.eup %4803  ;;  %v8610_v49 = vsub.f32 %v8455_v46, %v6817_v45  ;;  %v8614_v45 = vld [vmem:[#allocation87_spill] sm:$0xff] }
 0x43e   :  { %4819 = vpow2.f32 %v2288_v3  ;;  %v2296_v62 = vmul.f32 1.442695, %v2072_v56  ;;  %8605 = vst [vmem:[#allocation48_spill] sm:$0xff] %v7190_v16  ;;  %v7193_v29 = vpop.eup %4805  ;;  %v8608_v3 = vsub.f32 %v8449_v21, %v6806_v20 }
 0x43f   :  { %4821 = vpow2.f32 %v2298_v44  ;;  %v1945_v57 = vpop.xlane.xlu1 %1944  ;;  %2542 = vadd.xlane.f32.xlu0 %v7180_v38  ;;  %2498 = vadd.xlane.f32.xlu1 %v7175_v30  ;;  %8607 = vst [vmem:[#allocation55_spill] sm:$0xff] %v7193_v29  ;;  %v2260_v56 = vmul.f32 1.442695, %v8610_v49  ;;  %v8637_v30 = vld [vmem:[#allocation99_spill] sm:$0xff] }
 0x440   :  { %4823 = vpow2.f32 %v2296_v62  ;;  %v2088_v14 = vsub.f32 %v8606_v55, %v1945_v57  ;;  %v1955_v18 = vpop.xlane.xlu0 %1954  ;;  %v2290_v44 = vmul.f32 1.442695, %v8608_v3  ;;  %v2310_v57 = vmul.f32 1.442695, %v2079_v13  ;;  %v8612_v62 = vld [vmem:[#allocation90_spill] sm:$0xff] }
 0x441   :  { %4825 = vpow2.f32 %v2250_v2  ;;  %v2095_v39 = vsub.f32 %v8612_v62, %v1959_v61  ;;  %v8617_v61 = vsub.f32 %v8470_v26, %v6853_v35  ;;  %v8621_v35 = vld [vmem:[#allocation86_spill] sm:$0xff] }
 0x442   :  { %v7198_v59 = vpop.eup %4807  ;;  %4827 = vpow2.f32 %v2294_v12  ;;  %v2328_v4 = vmul.f32 1.442695, %v2088_v14 }
 0x443   :  { %8609 = vst [vmem:[#allocation63_spill] sm:$0xff] %v7198_v59  ;;  %v7203_v31 = vpop.eup %4809  ;;  %4829 = vpow2.f32 %v2330_v22  ;;  %v1925_v55 = vpop.xlane.xlu1 %1924  ;;  %2538 = vadd.xlane.f32.xlu0 %v7185_v17  ;;  %2508 = vadd.xlane.f32.xlu1 %v7190_v16  ;;  %v2256_v13 = vmul.f32 1.442695, %v8617_v61  ;;  %v2342_v49 = vmul.f32 1.442695, %v2095_v39  ;;  %v8624_v39 = vld [vmem:[#allocation75_spill] sm:$0xff] }
 0x444   :  { %8611 = vst [vmem:[#allocation56_spill] sm:$0xff] %v7203_v31  ;;  %v7210_v21 = vpop.eup %4811  ;;  %4831 = vpow2.f32 %v2328_v4  ;;  %v2078_v46 = vsub.f32 %v8614_v45, %v1925_v55  ;;  %v1935_v2 = vpop.xlane.xlu0 %1934  ;;  %v8619_v4 = vld [vmem:[#allocation93_spill] sm:$0xff] }
 0x445   :  { %8613 = vst [vmem:[#allocation82_spill] sm:$0xff] %v7210_v21  ;;  %v7213_v12 = vpop.eup %4813  ;;  %4833 = vpow2.f32 %v2290_v44  ;;  %v2077_v62 = vsub.f32 %v8619_v4, %v7173_v1  ;;  %v8625_v1 = vld [vmem:[#allocation22_spill] sm:$0xff]  ;;  %v2083_v58 = vsub.f32 %v8637_v30, %v1935_v2 }
 0x446   :  { %8615 = vst [vmem:[#allocation79_spill] sm:$0xff] %v7213_v12  ;;  %v7215_v22 = vpop.eup %4815  ;;  %4835 = vpow2.f32 %v2260_v56  ;;  %v2308_v14 = vmul.f32 1.442695, %v2078_v46  ;;  %v8626_v61 = vsub.f32 %v8624_v39, %v8625_v1  ;;  %v8630_v39 = vld [vmem:[#allocation89_spill] sm:$0xff]  ;;  %v8642_v2 = vld [vmem:[#allocation98_spill] sm:$0xff] }
 0x447   :  { %8616 = vst [vmem:[#allocation85_spill] sm:$0xff] %v7215_v22  ;;  %v7220_v3 = vpop.eup %4817  ;;  %4837 = vpow2.f32 %v2310_v57  ;;  %v1957_v55 = vpop.xlane.xlu1 %1956  ;;  %2548 = vadd.xlane.f32.xlu0 %v7210_v21  ;;  %2504 = vadd.xlane.f32.xlu1 %v7203_v31  ;;  %v2306_v44 = vmul.f32 1.442695, %v2077_v62  ;;  %v8628_v31 = vld [vmem:[#allocation92_spill] sm:$0xff]  ;;  %v2318_v30 = vmul.f32 1.442695, %v2083_v58 }
 0x448   :  { %8618 = vst [vmem:[#allocation78_spill] sm:$0xff] %v7220_v3  ;;  %v7228_v56 = vpop.eup %4819  ;;  %4839 = vpow2.f32 %v2308_v14  ;;  %v2094_v26 = vsub.f32 %v8621_v35, %v1957_v55  ;;  %v1967_v45 = vpop.xlane.xlu0 %1966  ;;  %v2262_v4 = vmul.f32 1.442695, %v8626_v61  ;;  %v2093_v41 = vsub.f32 %v8628_v31, %v1955_v18  ;;  %v8633_v18 = vld [vmem:[#allocation77_spill] sm:$0xff] }
 0x449   :  { %8620 = vst [vmem:[#allocation67_spill] sm:$0xff] %v7228_v56  ;;  %v7231_v46 = vpop.eup %4821  ;;  %4841 = vpow2.f32 %v2256_v13  ;;  %v8634_v31 = vld [vmem:[#allocation21_spill] sm:$0xff] }
 0x44a   :  { %8622 = vst [vmem:[#allocation47_spill] sm:$0xff] %v7231_v46  ;;  %v7233_v57 = vpop.eup %4823  ;;  %v2340_v20 = vmul.f32 1.442695, %v2094_v26  ;;  %4843 = vpow2.f32 %v2342_v49  ;;  %v8635_v62 = vsub.f32 %v8633_v18, %v8634_v31  ;;  %v2338_v55 = vmul.f32 1.442695, %v2093_v41 }
 0x44b   :  { %8623 = vst [vmem:[#allocation84_spill] sm:$0xff] %v7233_v57  ;;  %v7238_v16 = vpop.eup %4825  ;;  %v1921_v14 = vpop.xlane.xlu1 %1920  ;;  %2544 = vadd.xlane.f32.xlu0 %v7228_v56  ;;  %2510 = vadd.xlane.f32.xlu1 %v7220_v3 }
 0x44c   :  { %8627 = vst [vmem:[#allocation81_spill] sm:$0xff] %v7238_v16  ;;  %v7245_v35 = vpop.eup %4827  ;;  %4845 = vpow2.f32 %v2340_v20  ;;  %v2076_v13 = vsub.f32 %v8630_v39, %v1921_v14  ;;  %v1931_v26 = vpop.xlane.xlu0 %1930  ;;  %v2258_v61 = vmul.f32 1.442695, %v8635_v62  ;;  %v8639_v39 = vld [vmem:[#allocation88_spill] sm:$0xff]  ;;  %v2099_v62 = vsub.f32 %v8642_v2, %v1967_v45 }
 0x44d   :  { %8629 = vst [vmem:[#allocation69_spill] sm:$0xff] %v7245_v35  ;;  %v7248_v1 = vpop.eup %4829  ;;  %4847 = vpow2.f32 %v2262_v4 }
 0x44e   :  { %8631 = vst [vmem:[#allocation49_spill] sm:$0xff] %v7248_v1  ;;  %v7250_v49 = vpop.eup %4831  ;;  %v2304_v21 = vmul.f32 1.442695, %v2076_v13  ;;  %4849 = vpow2.f32 %v2306_v44 }
 0x44f   :  { %8632 = vst [vmem:[#allocation74_spill] sm:$0xff] %v7250_v49  ;;  %v7255_v3 = vpop.eup %4833  ;;  %v1953_v20 = vpop.xlane.xlu1 %1952  ;;  %2550 = vadd.xlane.f32.xlu0 %v7245_v35  ;;  %2506 = vadd.xlane.f32.xlu1 %v7238_v16 }
 0x450   :  { %8636 = vst [vmem:[#allocation57_spill] sm:$0xff] %v7255_v3  ;;  %v7262_v4 = vpop.eup %4835  ;;  %4851 = vpow2.f32 %v2304_v21  ;;  %v2092_v18 = vsub.f32 %v8639_v39, %v1953_v20  ;;  %v1963_v13 = vpop.xlane.xlu0 %1962  ;;  %v8644_v39 = vld [vmem:[#allocation95_spill] sm:$0xff] }
 0x451   :  { %8638 = vst [vmem:[#allocation91_spill] sm:$0xff] %v7262_v4  ;;  %v7265_v31 = vpop.eup %4837  ;;  %4853 = vpow2.f32 %v2258_v61 }
 0x452   :  { %8640 = vst [vmem:[#allocation80_spill] sm:$0xff] %v7265_v31  ;;  %v7267_v44 = vpop.eup %4839  ;;  %v2336_v41 = vmul.f32 1.442695, %v2092_v18  ;;  %4855 = vpow2.f32 %v2338_v55  ;;  %v2350_v55 = vmul.f32 1.442695, %v2099_v62  ;;  %v8647_v18 = vld [vmem:[#allocation101_spill] sm:$0xff] }
 0x453   :  { %8641 = vst [vmem:[#allocation90_spill] sm:$0xff] %v7267_v44  ;;  %v1933_v16 = vpop.xlane.xlu1 %1932  ;;  %2546 = vadd.xlane.f32.xlu0 %v7255_v3  ;;  %2516 = vadd.xlane.f32.xlu1 %v7262_v4  ;;  %v7274_v20 = vpop.eup %4841  ;;  %v2081_v2 = vsub.f32 %v8647_v18, %v1931_v26  ;;  %v8652_v18 = vld [vmem:[#allocation100_spill] sm:$0xff] }
 0x454   :  { %8643 = vst [vmem:[#allocation87_spill] sm:$0xff] %v7274_v20  ;;  %4857 = vpow2.f32 %v2336_v41  ;;  %v2082_v14 = vsub.f32 %v8644_v39, %v1933_v16  ;;  %v7277_v35 = vpop.xlane.xlu0 %1942  ;;  %v7279_v61 = vpop.eup %4843  ;;  %v8649_v39 = vld [vmem:[#allocation94_spill] sm:$0xff] }
 0x455   :  { %8645 = vst [vmem:[#allocation93_spill] sm:$0xff] %v7279_v61  ;;  %4859 = vpow2.f32 %v2318_v30  ;;  %v2314_v62 = vmul.f32 1.442695, %v2081_v2 }
 0x456   :  { %v7281_v58 = vpop.eup %4845  ;;  %v2316_v45 = vmul.f32 1.442695, %v2082_v14 }
 0x457   :  { %8646 = vst [vmem:[#allocation86_spill] sm:$0xff] %v7281_v58  ;;  %v1965_v4 = vpop.xlane.xlu1 %1964  ;;  %2588 = vadd.xlane.f32.xlu0 %v7215_v22  ;;  %2512 = vadd.xlane.f32.xlu1 %v7274_v20  ;;  %v7288_v16 = vpop.eup %4847  ;;  %v2097_v22 = vsub.f32 %v8652_v18, %v1963_v13 }
 0x458   :  { %8648 = vst [vmem:[#allocation75_spill] sm:$0xff] %v7288_v16  ;;  %4861 = vpow2.f32 %v2316_v45  ;;  %v2098_v21 = vsub.f32 %v8649_v39, %v1965_v4  ;;  %v7291_v3 = vpop.xlane.xlu0 %1974  ;;  %v7293_v14 = vpop.eup %4849  ;;  %v8654_v39 = vld [vmem:[#allocation97_spill] sm:$0xff] }
 0x459   :  { %8650 = vst [vmem:[#allocation22_spill] sm:$0xff] %v7293_v14  ;;  %4863 = vpow2.f32 %v2350_v55  ;;  %v2346_v2 = vmul.f32 1.442695, %v2097_v22 }
 0x45a   :  { %v7295_v30 = vpop.eup %4851  ;;  %v2348_v26 = vmul.f32 1.442695, %v2098_v21 }
 0x45b   :  { %8651 = vst [vmem:[#allocation92_spill] sm:$0xff] %v7295_v30  ;;  %v1929_v20 = vpop.xlane.xlu1 %1928  ;;  %2584 = vadd.xlane.f32.xlu0 %v7250_v49  ;;  %2518 = vadd.xlane.f32.xlu1 %v7288_v16  ;;  %v7302_v4 = vpop.eup %4853 }
 0x45c   :  { %8653 = vst [vmem:[#allocation89_spill] sm:$0xff] %v7302_v4  ;;  %4865 = vpow2.f32 %v2348_v26  ;;  %v2080_v41 = vsub.f32 %v8654_v39, %v1929_v20  ;;  %v7305_v56 = vpop.xlane.xlu0 %1938  ;;  %v7307_v21 = vpop.eup %4855  ;;  %v8657_v26 = vld [vmem:[#allocation96_spill] sm:$0xff] }
 0x45d   :  { %8655 = vst [vmem:[#allocation77_spill] sm:$0xff] %v7307_v21  ;;  %4867 = vpow2.f32 %v2314_v62 }
 0x45e   :  { %v7309_v55 = vpop.eup %4857  ;;  %v2312_v13 = vmul.f32 1.442695, %v2080_v41 }
 0x45f   :  { %8656 = vst [vmem:[#allocation21_spill] sm:$0xff] %v7309_v55  ;;  %v1961_v18 = vpop.xlane.xlu1 %1960  ;;  %2590 = vadd.xlane.f32.xlu0 %v7213_v12  ;;  %2514 = vadd.xlane.f32.xlu1 %v7302_v4  ;;  %v7318_v49 = vpop.eup %4859 }
 0x460   :  { %4869 = vpow2.f32 %v2312_v13  ;;  %v2096_v20 = vsub.f32 %v8657_v26, %v1961_v18  ;;  %v7316_v39 = vpop.xlane.xlu0 %1970  ;;  %8658 = vst [vmem:[#allocation99_spill] sm:$0xff] %v7318_v49 }
 0x461   :  { %4871 = vpow2.f32 %v2346_v2 }
 0x462   :  { %v7320_v16 = vpop.eup %4861  ;;  %v2344_v41 = vmul.f32 1.442695, %v2096_v20 }
 0x463   :  { %8659 = vst [vmem:[#allocation88_spill] sm:$0xff] %v7320_v16  ;;  %v7322_v22 = vpop.xlane.xlu1 %1940  ;;  %2586 = vadd.xlane.f32.xlu0 %v7248_v1  ;;  %2556 = vadd.xlane.f32.xlu1 %v7198_v59  ;;  %v7330_v18 = vpop.eup %4863 }
 0x464   :  { %4873 = vpow2.f32 %v2344_v41  ;;  %v7328_v13 = vpop.xlane.xlu0 %2430  ;;  %8660 = vst [vmem:[#allocation98_spill] sm:$0xff] %v7330_v18 }
 0x465   :  { %4875 = vrcp.f32 %v6937_v19 }
 0x466   :  { %v7332_v26 = vpop.eup %4865  ;;  %4877 = vrcp.f32 %v6880_v54 }
 0x467   :  { %8661 = vst [vmem:[#allocation95_spill] sm:$0xff] %v7332_v26  ;;  %v7334_v45 = vpop.xlane.xlu1 %1972  ;;  %2596 = vadd.xlane.f32.xlu0 %v7281_v58  ;;  %2552 = vadd.xlane.f32.xlu1 %v7233_v57  ;;  %v7342_v12 = vpop.eup %4867  ;;  %4879 = vrcp.f32 %v6905_v6 }
 0x468   :  { %v7340_v20 = vpop.xlane.xlu0 %2462  ;;  %8662 = vst [vmem:[#allocation101_spill] sm:$0xff] %v7342_v12 }
 0x46a   :  { %v7344_v41 = vpop.eup %4869 }
 0x46b   :  { %8663 = vst [vmem:[#allocation94_spill] sm:$0xff] %v7344_v41  ;;  %v7346_v62 = vpop.xlane.xlu1 %1936  ;;  %2592 = vadd.xlane.f32.xlu0 %v7309_v55  ;;  %2558 = vadd.xlane.f32.xlu1 %v7193_v29  ;;  %v7354_v59 = vpop.eup %4871 }
 0x46c   :  { %v7352_v1 = vpop.xlane.xlu0 %2426  ;;  %8664 = vst [vmem:[#allocation100_spill] sm:$0xff] %v7354_v59 }
 0x46e   :  { %v7356_v2 = vpop.eup %4873 }
 0x46f   :  { %8665 = vst [vmem:[#allocation97_spill] sm:$0xff] %v7356_v2  ;;  %v7358_v57 = vpop.xlane.xlu1 %1968  ;;  %2598 = vadd.xlane.f32.xlu0 %v7279_v61  ;;  %2554 = vadd.xlane.f32.xlu1 %v7231_v46 }
 0x470   :  { %v7364_v4 = vpop.xlane.xlu0 %2458 }
 0x473   :  { %v7366_v29 = vpop.xlane.xlu1 %2428  ;;  %2594 = vadd.xlane.f32.xlu0 %v7307_v21  ;;  %2564 = vadd.xlane.f32.xlu1 %v7267_v44 }
 0x474   :  { %v7370_v58 = vpop.xlane.xlu0 %2438 }
 0x475   :  { %8666 = vst [vmem:[#allocation96_spill] sm:$0xff] %v7370_v58 }
 0x477   :  { %v7372_v38 = vpop.xlane.xlu1 %2460  ;;  %2572 = vadd.xlane.f32.xlu0 %v7320_v16  ;;  %2560 = vadd.xlane.f32.xlu1 %v7295_v30 }
 0x478   :  { %v7376_v61 = vpop.xlane.xlu0 %2470 }
 0x47b   :  { %v7378_v46 = vpop.xlane.xlu1 %2424  ;;  %2600 = vadd.xlane.f32.xlu0 %v7356_v2  ;;  %2566 = vadd.xlane.f32.xlu1 %v7265_v31 }
 0x47c   :  { %v7382_v55 = vpop.xlane.xlu0 %2434 }
 0x47f   :  { %v7384_v21 = vpop.xlane.xlu1 %2456  ;;  %2606 = vadd.xlane.f32.xlu0 %v7330_v18  ;;  %2562 = vadd.xlane.f32.xlu1 %v7293_v14 }
 0x480   :  { %v7388_v44 = vpop.xlane.xlu0 %2466 }
 0x483   :  { %v7390_v16 = vpop.xlane.xlu1 %2436  ;;  %2602 = vadd.xlane.f32.xlu0 %v7354_v59  ;;  %2604 = vadd.xlane.f32.xlu1 %v7332_v26 }
 0x484   :  { %v7394_v30 = vpop.xlane.xlu0 %2446 }
 0x485   :  { %8667 = vst [vmem:[#allocation117_spill] sm:$0xff] %v7394_v30 }
 0x487   :  { %v7396_v2 = vpop.xlane.xlu1 %2468  ;;  %2568 = vadd.xlane.f32.xlu1 %v7344_v41 }
 0x488   :  { %v7399_v31 = vpop.xlane.xlu0 %2478 }
 0x48b   :  { %v7401_v7 = vpop.xlane.xlu1 %2432  ;;  %2574 = vadd.xlane.f32.xlu1 %v7318_v49 }
 0x48c   :  { %v7404_v18 = vpop.xlane.xlu0 %2442 }
 0x48d   :  { %8668 = vst [vmem:[#allocation118_spill] sm:$0xff] %v7404_v18 }
 0x48f   :  { %v7406_v14 = vpop.xlane.xlu1 %2464  ;;  %2570 = vadd.xlane.f32.xlu1 %v7342_v12 }
 0x490   :  { %v7409_v59 = vpop.xlane.xlu0 %2474 }
 0x493   :  { %v7411_v26 = vpop.xlane.xlu1 %2444 }
 0x494   :  { %8669 = vst [vmem:[#allocation119_spill] sm:$0xff] %v7411_v26  ;;  %v7413_v17 = vpop.xlane.xlu0 %2454 }
 0x495   :  { %8670 = vst [vmem:[#allocation120_spill] sm:$0xff] %v7413_v17 }
 0x497   :  { %v7415_v32 = vpop.xlane.xlu1 %2476 }
 0x498   :  { %v7417_v41 = vpop.xlane.xlu0 %2486 }
 0x499   :  { %8671 = vst [vmem:[#allocation121_spill] sm:$0xff] %v7417_v41 }
 0x49b   :  { %v7419_v33 = vpop.xlane.xlu1 %2440 }
 0x49c   :  { %8672 = vst [vmem:[#allocation122_spill] sm:$0xff] %v7419_v33  ;;  %v7421_v30 = vpop.xlane.xlu0 %2450 }
 0x49d   :  { %8673 = vst [vmem:[#allocation123_spill] sm:$0xff] %v7421_v30  ;;  %v4876_v30 = vpop.eup %4875 }
 0x49e   :  { %v4878_v19 = vpop.eup %4877 }
 0x49f   :  { %v7423_v49 = vpop.xlane.xlu1 %2472  ;;  %v4880_v54 = vpop.eup %4879 }
 0x4a0   :  { %v7425_v18 = vpop.xlane.xlu0 %2482 }
 0x4a1   :  { %8674 = vst [vmem:[#allocation124_spill] sm:$0xff] %v7425_v18 }
 0x4a3   :  { %v7427_v58 = vpop.xlane.xlu1 %2452 }
 0x4a4   :  { %8675 = vst [vmem:[#allocation125_spill] sm:$0xff] %v7427_v58  ;;  %v7429_v12 = vpop.xlane.xlu0 %2524 }
 0x4a5   :  { %8676 = vst [vmem:[#allocation126_spill] sm:$0xff] %v7429_v12  ;;  %v8681_v12 = vld [vmem:[#allocation114_spill] sm:$0xff] }
 0x4a6   :  { %4881 = vrcp.f32 %v8681_v12  ;;  %v8684_v12 = vld [vmem:[#allocation115_spill] sm:$0xff] }
 0x4a7   :  { %v7432_v26 = vpop.xlane.xlu1 %2484  ;;  %4883 = vrcp.f32 %v7001_v63 }
 0x4a8   :  { %8677 = vst [vmem:[#allocation127_spill] sm:$0xff] %v7432_v26  ;;  %v7434_v17 = vpop.xlane.xlu0 %2520  ;;  %4885 = vrcp.f32 %v6921_v0 }
 0x4a9   :  { %8678 = vst [vmem:[#allocation128_spill] sm:$0xff] %v7434_v17  ;;  %4887 = vrcp.f32 %v6944_v37 }
 0x4aa   :  { %4889 = vrcp.f32 %v8684_v12  ;;  %v8687_v12 = vld [vmem:[#allocation27_spill] sm:$0xff] }
 0x4ab   :  { %v7437_v41 = vpop.xlane.xlu1 %2448  ;;  %4891 = vrcp.f32 %v6969_v9 }
 0x4ac   :  { %v7439_v33 = vpop.xlane.xlu0 %2526 }
 0x4ad   :  { %8679 = vst [vmem:[#allocation129_spill] sm:$0xff] %v7439_v33 }
 0x4af   :  { %v7442_v18 = vpop.xlane.xlu1 %2480 }
 0x4b0   :  { %2776 = vxpose.xlu0.b32.start [1/16] (narrow) %v4876_v30, 8  ;;  %v7444_v58 = vpop.xlane.xlu0 %2490  ;;  %v4882_v30 = vpop.eup %4881 }
 0x4b1   :  { %8680 = vst [vmem:[#allocation130_spill] sm:$0xff] %v7444_v58  ;;  %v4884_v63 = vpop.eup %4883 }
 0x4b3   :  { %v7447_v26 = vpop.xlane.xlu1 %2492 }
 0x4b4   :  { %2777 = vxpose.xlu0.b32.cont [2/16] (narrow) %v4878_v19, 8  ;;  %v7449_v17 = vpop.xlane.xlu0 %2532 }
 0x4b5   :  { %8682 = vst [vmem:[#allocation114_spill] sm:$0xff] %v7449_v17  ;;  %v8686_v17 = vld [vmem:[#allocation29_spill] sm:$0xff] }
 0x4b6   :  { %4893 = vrcp.f32 %v8686_v17 }
 0x4b7   :  { %v7453_v6 = vpop.xlane.xlu1 %2488  ;;  %4895 = vrcp.f32 %v6912_v25 }
 0x4b8   :  { %2778 = vxpose.xlu0.b32.cont [3/16] (narrow) %v4880_v54, 8  ;;  %v7455_v33 = vpop.xlane.xlu0 %2528  ;;  %4897 = vrcp.f32 %v8687_v12 }
 0x4b9   :  { %8683 = vst [vmem:[#allocation131_spill] sm:$0xff] %v7455_v33  ;;  %v4886_v33 = vpop.eup %4885  ;;  %4899 = vrcp.f32 %v7065_v51 }
 0x4ba   :  { %v4888_v37 = vpop.eup %4887  ;;  %4901 = vrcp.f32 %v6985_v53 }
 0x4bb   :  { %v7459_v58 = vpop.xlane.xlu1 %2494  ;;  %v4890_v9 = vpop.eup %4889  ;;  %4903 = vrcp.f32 %v7008_v60 }
 0x4bc   :  { %2779 = vxpose.xlu0.b32.cont [4/16] (narrow) %v4882_v30, 8  ;;  %v7461_v19 = vpop.xlane.xlu0 %2534  ;;  %v4892_v17 = vpop.eup %4891  ;;  %4905 = vrcp.f32 %v6928_v48 }
 0x4bd   :  { %8685 = vst [vmem:[#allocation115_spill] sm:$0xff] %v7461_v19  ;;  %4907 = vrcp.f32 %v7033_v5 }
 0x4be   :  { %4909 = vrcp.f32 %v6953_v52 }
 0x4bf   :  { %v7465_v0 = vpop.xlane.xlu1 %2522  ;;  %4911 = vrcp.f32 %v6976_v24 }
 0x4c0   :  { %2780 = vxpose.xlu0.b32.cont [5/16] (narrow) %v4884_v63, 8  ;;  %v7467_v54 = vpop.xlane.xlu0 %2530  ;;  %4913 = vrcp.f32 %v6896_v23 }
 0x4c1   :  { %4915 = vrcp.f32 %v7124_v36 }
 0x4c2   :  { %2744 = vxpose.xlu1.b32.start [1/16] (narrow) %v4886_v33, 8  ;;  %v4894_v33 = vpop.eup %4893  ;;  %4917 = vrcp.f32 %v7049_v43 }
 0x4c3   :  { %v7471_v30 = vpop.xlane.xlu1 %2500  ;;  %v4896_v12 = vpop.eup %4895  ;;  %4919 = vrcp.f32 %v7072_v47 }
 0x4c4   :  { %2781 = vxpose.xlu0.b32.cont [6/16] (narrow) %v4888_v37, 8  ;;  %v7473_v19 = vpop.xlane.xlu0 %2540  ;;  %4921 = vrcp.f32 %v6992_v10 }
 0x4c5   :  { %4923 = vrcp.f32 %v7095_v42 }
 0x4c6   :  { %2745 = vxpose.xlu1.b32.cont [2/16] (narrow) %v4890_v9, 8  ;;  %v4898_v9 = vpop.eup %4897  ;;  %4925 = vrcp.f32 %v7017_v27 }
 0x4c7   :  { %v7477_v63 = vpop.xlane.xlu1 %2496  ;;  %v4900_v53 = vpop.eup %4899  ;;  %4927 = vrcp.f32 %v7040_v11 }
 0x4c8   :  { %2782 = vxpose.xlu0.b32.cont [7/16] (narrow) %v4892_v17, 8  ;;  %v7479_v25 = vpop.xlane.xlu0 %2536  ;;  %4929 = vrcp.f32 %v6960_v15 }
 0x4c9   :  { %4931 = vrcp.f32 %v7109_v8 }
 0x4ca   :  { %2746 = vxpose.xlu1.b32.cont [3/16] (narrow) %v4894_v33, 8  ;;  %v4902_v33 = vpop.eup %4901  ;;  %4933 = vrcp.f32 %v7056_v50 }
 0x4cb   :  { %v7483_v37 = vpop.xlane.xlu1 %2502  ;;  %v4904_v48 = vpop.eup %4903  ;;  %4935 = vrcp.f32 %v7081_v34 }
 0x4cc   :  { %2783 = vxpose.xlu0.b32.cont [8/16] (narrow) %v4896_v12, 8  ;;  %v7485_v51 = vpop.xlane.xlu0 %2542 }
 0x4ce   :  { %2747 = vxpose.xlu1.b32.cont [4/16] (narrow) %v4898_v9, 8  ;;  %v4906_v9 = vpop.eup %4905  ;;  %4937 = vrcp.f32 %v7024_v28  ;;  %v8699_v28 = vld [vmem:[#allocation103_spill] sm:$0xff] }
 0x4cf   :  { %v7489_v17 = vpop.xlane.xlu1 %2498  ;;  %v4908_v52 = vpop.eup %4907 }
 0x4d0   :  { %2784 = vxpose.xlu0.b32.cont [9/16] (narrow) %v4900_v53, 8  ;;  %v7491_v60 = vpop.xlane.xlu0 %2538 }
 0x4d2   :  { %2748 = vxpose.xlu1.b32.cont [5/16] (narrow) %v4902_v33, 8  ;;  %v4910_v33 = vpop.eup %4909 }
 0x4d3   :  { %v7495_v12 = vpop.xlane.xlu1 %2508  ;;  %v4912_v23 = vpop.eup %4911 }
 0x4d4   :  { %2785 = vxpose.xlu0.b32.cont [10/16] (narrow) %v4904_v48, 8  ;;  %v7497_v5 = vpop.xlane.xlu0 %2548  ;;  %v4914_v36 = vpop.eup %4913 }
 0x4d5   :  { %8688 = vst [vmem:[#allocation29_spill] sm:$0xff] %v7497_v5  ;;  %v4916_v43 = vpop.eup %4915 }
 0x4d6   :  { %2749 = vxpose.xlu1.b32.cont [6/16] (narrow) %v4906_v9, 8  ;;  %v4918_v47 = vpop.eup %4917 }
 0x4d7   :  { %v7501_v53 = vpop.xlane.xlu1 %2504  ;;  %v4920_v10 = vpop.eup %4919 }
 0x4d8   :  { %2786 = vxpose.xlu0.b32.cont [11/16] (narrow) %v4908_v52, 8  ;;  %v7503_v24 = vpop.xlane.xlu0 %2544  ;;  %v4922_v42 = vpop.eup %4921 }
 0x4d9   :  { %8689 = vst [vmem:[#allocation27_spill] sm:$0xff] %v7503_v24 }
 0x4da   :  { %2750 = vxpose.xlu1.b32.cont [7/16] (narrow) %v4910_v33, 8 }
 0x4db   :  { %v7507_v48 = vpop.xlane.xlu1 %2510 }
 0x4dc   :  { %2787 = vxpose.xlu0.b32.cont [12/16] (narrow) %v4912_v23, 8  ;;  %v7510_v9 = vpop.xlane.xlu0 %2550 }
 0x4dd   :  { %8690 = vst [vmem:[#allocation132_spill] sm:$0xff] %v7510_v9 }
 0x4de   :  { %2751 = vxpose.xlu1.b32.cont [8/16] (narrow) %v4914_v36, 8  ;;  %v4924_v36 = vpop.eup %4923 }
 0x4df   :  { %v7513_v52 = vpop.xlane.xlu1 %2506  ;;  %v4926_v27 = vpop.eup %4925 }
 0x4e0   :  { %2788 = vxpose.xlu0.b32.cont [13/16] (narrow) %v4916_v43, 8  ;;  %v7517_v33 = vpop.xlane.xlu0 %2546  ;;  %v4928_v11 = vpop.eup %4927 }
 0x4e1   :  { %8691 = vst [vmem:[#allocation133_spill] sm:$0xff] %v7517_v33  ;;  %v4930_v15 = vpop.eup %4929 }
 0x4e2   :  { %2752 = vxpose.xlu1.b32.cont [9/16] (narrow) %v4918_v47, 8  ;;  %v4932_v8 = vpop.eup %4931 }
 0x4e3   :  { %v7519_v23 = vpop.xlane.xlu1 %2516 }
 0x4e4   :  { %2789 = vxpose.xlu0.b32.cont [14/16] (narrow) %v4920_v10, 8  ;;  %v7522_v43 = vpop.xlane.xlu0 %2588 }
 0x4e5   :  { %8692 = vst [vmem:[#allocation134_spill] sm:$0xff] %v7522_v43 }
 0x4e6   :  { %2753 = vxpose.xlu1.b32.cont [10/16] (narrow) %v4922_v42, 8  ;;  %v4934_v42 = vpop.eup %4933 }
 0x4e7   :  { %v7524_v9 = vpop.xlane.xlu1 %2512  ;;  %v4936_v50 = vpop.eup %4935 }
 0x4e8   :  { %2790 = vxpose.xlu0.b32.cont [15/16] (narrow) %v4924_v36, 8  ;;  %v7528_v47 = vpop.xlane.xlu0 %2584  ;;  %v4938_v34 = vpop.eup %4937 }
 0x4e9   :  { %8693 = vst [vmem:[#allocation135_spill] sm:$0xff] %v7528_v47 }
 0x4ea   :  { %2754 = vxpose.xlu1.b32.cont [11/16] (narrow) %v4926_v27, 8 }
 0x4eb   :  { %v7530_v10 = vpop.xlane.xlu1 %2518 }
 0x4ec   :  { %2791 = vxpose.xlu0.b32.end [16/16] (narrow) %v4928_v11, 8  ;;  %v7533_v36 = vpop.xlane.xlu0 %2590 }
 0x4ed   :  { %8694 = vst [vmem:[#allocation136_spill] sm:$0xff] %v7533_v36 }
 0x4ee   :  { %2755 = vxpose.xlu1.b32.cont [12/16] (narrow) %v4930_v15, 8 }
 0x4ef   :  { %v7535_v27 = vpop.xlane.xlu1 %2514 }
 0x4f0   :  { %v7537_v11 = vpop.xlane.xlu0 %2586 }
 0x4f1   :  { %8695 = vst [vmem:[#allocation137_spill] sm:$0xff] %v7537_v11  ;;  %v8703_v11 = vld [vmem:[#allocation108_spill] sm:$0xff] }
 0x4f2   :  { %2756 = vxpose.xlu1.b32.cont [13/16] (narrow) %v4932_v8, 8  ;;  %v2102_v8 = vsub.f32 %v8699_v28, %v7334_v45 }
 0x4f3   :  { %v7539_v15 = vpop.xlane.xlu1 %2556 }
 0x4f4   :  { %8696 = vst [vmem:[#allocation138_spill] sm:$0xff] %v7539_v15  ;;  %v7541_v43 = vpop.xlane.xlu0 %2596  ;;  %v2103_v15 = vsub.f32 %v8703_v11, %v7291_v3 }
 0x4f5   :  { %8697 = vst [vmem:[#allocation139_spill] sm:$0xff] %v7541_v43 }
 0x4f6   :  { %2757 = vxpose.xlu1.b32.cont [14/16] (narrow) %v4934_v42, 8  ;;  %v2356_v42 = vmul.f32 1.442695, %v2102_v8  ;;  %v2358_v28 = vmul.f32 1.442695, %v2103_v15 }
 0x4f7   :  { %v7543_v47 = vpop.xlane.xlu1 %2552 }
 0x4f8   :  { %8698 = vst [vmem:[#allocation140_spill] sm:$0xff] %v7543_v47  ;;  %v7547_v5 = vpop.xlane.xlu0 %2592  ;;  %4939 = vpow2.f32 %v2356_v42  ;;  %v8705_v47 = vld [vmem:[#allocation110_spill] sm:$0xff] }
 0x4f9   :  { %8700 = vst [vmem:[#allocation103_spill] sm:$0xff] %v7547_v5  ;;  %v2101_v45 = vsub.f32 %v8705_v47, %v7316_v39  ;;  %v8706_v5 = vld [vmem:[#allocation104_spill] sm:$0xff]  ;;  %v8710_v39 = vld [vmem:[#allocation109_spill] sm:$0xff] }
 0x4fa   :  { %2758 = vxpose.xlu1.b32.cont [15/16] (narrow) %v4936_v50, 8  ;;  %v8702_v50 = vld [vmem:[#allocation105_spill] sm:$0xff]  ;;  %v2087_v47 = vsub.f32 %v8710_v39, %v7277_v35 }
 0x4fb   :  { %v7549_v36 = vpop.xlane.xlu1 %2558  ;;  %v2100_v33 = vsub.f32 %v8702_v50, %v7358_v57  ;;  %v2354_v50 = vmul.f32 1.442695, %v2101_v45 }
 0x4fc   :  { %8701 = vst [vmem:[#allocation141_spill] sm:$0xff] %v7549_v36  ;;  %v7555_v24 = vpop.xlane.xlu0 %2598  ;;  %v2086_v36 = vsub.f32 %v8706_v5, %v7322_v22 }
 0x4fd   :  { %8704 = vst [vmem:[#allocation105_spill] sm:$0xff] %v7555_v24  ;;  %v8727_v24 = vld [vmem:[#allocation65_spill] sm:$0xff] }
 0x4fe   :  { %2759 = vxpose.xlu1.b32.end [16/16] (narrow) %v4938_v34, 8  ;;  %v2352_v34 = vmul.f32 1.442695, %v2100_v33  ;;  %v2324_v3 = vmul.f32 1.442695, %v2086_v36  ;;  %v8708_v33 = vld [vmem:[#allocation106_spill] sm:$0xff] }
 0x4ff   :  { %v7557_v43 = vpop.xlane.xlu1 %2554  ;;  %v2084_v11 = vsub.f32 %v8708_v33, %v7346_v62  ;;  %v2326_v36 = vmul.f32 1.442695, %v2087_v47  ;;  %v8713_v62 = vld [vmem:[#allocation111_spill] sm:$0xff] }
 0x500   :  { %4941 = vpow2.f32 %v2352_v34  ;;  %v7563_v8 = vpop.xlane.xlu0 %2594  ;;  %v2085_v45 = vsub.f32 %v8713_v62, %v7305_v56  ;;  %v3000_v56 = vlaneseq }
 0x501   :  { %8707 = vst [vmem:[#allocation108_spill] sm:$0xff] %v7563_v8  ;;  %4943 = vpow2.f32 %v2358_v28  ;;  %v2320_v22 = vmul.f32 1.442695, %v2084_v11 }
 0x502   :  { %v7569_v42 = vpop.eup %4939  ;;  %4945 = vpow2.f32 %v2354_v50 }
 0x503   :  { %v7565_v57 = vpop.xlane.xlu1 %2564  ;;  %8709 = vst [vmem:[#allocation110_spill] sm:$0xff] %v7569_v42  ;;  %4947 = vpow2.f32 %v2324_v3  ;;  %v2322_v3 = vmul.f32 1.442695, %v2085_v45 }
 0x504   :  { %v7574_v5 = vpop.xlane.xlu0 %2572  ;;  %4949 = vpow2.f32 %v2320_v22 }
 0x505   :  { %8711 = vst [vmem:[#allocation104_spill] sm:$0xff] %v7574_v5  ;;  %4951 = vpow2.f32 %v2326_v36  ;;  %v3001_v36 = vshrl.u32 %v3000_v56, 7 }
 0x506   :  { %4953 = vpow2.f32 %v2322_v3 }
 0x507   :  { %v7576_v15 = vpop.xlane.xlu1 %2560  ;;  %4955 = vrcp.f32 %v7384_v21  ;;  %v8744_v21 = vld [vmem:[#allocation112_spill] sm:$0xff] }
 0x508   :  { %v7585_v50 = vpop.xlane.xlu0 %2600  ;;  %4957 = vrcp.f32 %v7364_v4 }
 0x509   :  { %8715 = vst [vmem:[#allocation111_spill] sm:$0xff] %v7585_v50  ;;  %4959 = vrcp.f32 %v7372_v38  ;;  %v8752_v38 = vld [vmem:[#allocation76_spill] sm:$0xff] }
 0x50a   :  { %v7578_v34 = vpop.eup %4941  ;;  %4961 = vrcp.f32 %v7340_v20  ;;  %v8756_v20 = vld [vmem:[#allocation73_spill] sm:$0xff] }
 0x50b   :  { %8712 = vst [vmem:[#allocation106_spill] sm:$0xff] %v7578_v34  ;;  %v7583_v28 = vpop.eup %4943  ;;  %v7587_v35 = vpop.xlane.xlu1 %2566  ;;  %4963 = vrcp.f32 %v7406_v14  ;;  %v8758_v14 = vld [vmem:[#allocation25_spill] sm:$0xff] }
 0x50c   :  { %8714 = vst [vmem:[#allocation109_spill] sm:$0xff] %v7583_v28  ;;  %v7590_v33 = vpop.eup %4945  ;;  %v7596_v39 = vpop.xlane.xlu0 %2606  ;;  %4965 = vrcp.f32 %v7378_v46  ;;  %v8759_v46 = vld [vmem:[#allocation35_spill] sm:$0xff] }
 0x50d   :  { %8716 = vst [vmem:[#allocation142_spill] sm:$0xff] %v7590_v33  ;;  %v7592_v11 = vpop.eup %4947  ;;  %8718 = vst [vmem:[#allocation144_spill] sm:$0xff] %v7596_v39  ;;  %4967 = vrcp.f32 %v7388_v44 }
 0x50e   :  { %8717 = vst [vmem:[#allocation143_spill] sm:$0xff] %v7592_v11  ;;  %v7600_v22 = vpop.eup %4949  ;;  %4969 = vrcp.f32 %v7352_v1  ;;  %v8760_v1 = vld [vmem:[#allocation44_spill] sm:$0xff] }
 0x50f   :  { %v7598_v47 = vpop.xlane.xlu1 %2562  ;;  %8719 = vst [vmem:[#allocation145_spill] sm:$0xff] %v7600_v22  ;;  %v7603_v62 = vpop.eup %4951  ;;  %4971 = vrcp.f32 %v7396_v2 }
 0x510   :  { %8720 = vst [vmem:[#allocation146_spill] sm:$0xff] %v7603_v62  ;;  %v7605_v45 = vpop.xlane.xlu0 %2602  ;;  %v7612_v3 = vpop.eup %4953  ;;  %4973 = vrcp.f32 %v7366_v29 }
 0x511   :  { %8721 = vst [vmem:[#allocation147_spill] sm:$0xff] %v7605_v45  ;;  %8723 = vst [vmem:[#allocation149_spill] sm:$0xff] %v7612_v3  ;;  %4975 = vrcp.f32 %v7376_v61 }
 0x512   :  { %4977 = vrcp.f32 %v7328_v13 }
 0x513   :  { %4979 = vrcp.f32 %v7423_v49 }
 0x514   :  { %4981 = vrcp.f32 %v7401_v7 }
 0x515   :  { %4983 = vrcp.f32 %v7409_v59 }
 0x516   :  { %4985 = vrcp.f32 %v7382_v55 }
 0x519   :  { %2612 = vadd.xlane.f32.xlu0 %v7569_v42  ;;  %v7610_v42 = vsub.s32 0, %v3001_v36 }
 0x51d   :  { %2608 = vadd.xlane.f32.xlu0 %v7578_v34  ;;  %v8724_v34 = vld [vmem:[#allocation9_spill] sm:$0xff] }
 0x521   :  { %2614 = vadd.xlane.f32.xlu0 %v7583_v28  ;;  %v7607_v28 = vpop.xlane.xlu1 %2604 }
 0x522   :  { %8722 = vst [vmem:[#allocation148_spill] sm:$0xff] %v7607_v28  ;;  %v8728_v28 = vld [vmem:[#allocation17_spill] sm:$0xff] }
 0x523   :  { %v3072_v5 = vpack.c.bf16 %v8728_v28, %v8727_v24  ;;  %v8736_v28 = vld [vmem:[#allocation62_spill] sm:$0xff] }
 0x525   :  { %2610 = vadd.xlane.f32.xlu0 %v7590_v33  ;;  %2580 = vadd.xlane.f32.xlu1 %v7592_v11  ;;  %v8725_v11 = vld [vmem:[#allocation16_spill] sm:$0xff]  ;;  %v7618_v56 = vpop.xlane.xlu1 %2568 }
 0x526   :  { %v424_v39 = vadd.f32 %v8725_v11, %v8724_v34  ;;  %8726 = vst [vmem:[#allocation9_spill] sm:$0xff] %v7618_v56  ;;  %v8731_v34 = vld [vmem:[#allocation18_spill] sm:$0xff] }
 0x529   :  { %2576 = vadd.xlane.f32.xlu1 %v7600_v22  ;;  %v7622_v36 = vpop.xlane.xlu1 %2574 }
 0x52a   :  { %8729 = vst [vmem:[#allocation16_spill] sm:$0xff] %v7622_v36 }
 0x52d   :  { %2582 = vadd.xlane.f32.xlu1 %v7603_v62  ;;  %v8730_v62 = vmov 0.0  }
 0x530   :  { %v2792_v33 = vpop.trf.xlu0 }
 0x531   :  { %v3007_v50 = vrot.slane %v2792_v33, %v7610_v42  ;;  %2578 = vadd.xlane.f32.xlu1 %v7612_v3  ;;  %v8732_v33 = vld [vmem:[#allocation68_spill] sm:$0xff] }
 0x532   :  { %v3073_v8 = vpack.c.bf16 %v8732_v33, %v8731_v34  ;;  %v8737_v3 = vld [vmem:[#allocation8_spill] sm:$0xff]  ;;  %v8738_v33 = vld [vmem:[#allocation43_spill] sm:$0xff] }
 0x533   :  { %v3033_v22 = vmul.f32 %v3007_v50, %v424_v39  ;;  %v7630_v50 = vpop.xlane.xlu1 %2570  ;;  %v8734_v39 = vld [vmem:[#allocation64_spill] sm:$0xff]  ;;  %v423_v36 = vadd.f32 %v8725_v11, %v8737_v3  ;;  %v8742_v3 = vld [vmem:[#allocation23_spill] sm:$0xff] }
 0x534   :  { %8733 = vst [vmem:[#allocation65_spill] sm:$0xff] %v7630_v50  ;;  %v3074_v24 = vpack.c.bf16 %v8734_v39, %v6932_v40  ;;  %v8739_v50 = vld [vmem:[#allocation19_spill] sm:$0xff]  ;;  %v8740_v39 = vld [vmem:[#allocation28_spill] sm:$0xff] }
 0x535   :  { %v3041_v45 = vpack.c.bf16 %v3033_v22, %v3033_v22  ;;  %v3076_v56 = vpack.c.bf16 %v8739_v50, %v8738_v33  ;;  %v8746_v50 = vld [vmem:[#allocation34_spill] sm:$0xff]  ;;  %v8749_v33 = vld [vmem:[#allocation116_spill] sm:$0xff] }
 0x537   :  { %4111 = vmatmul.mubr.bf16.vlgmr.msra.gmra.mrb[80].mxu1 %v3041_v45 }
 0x538   :  { %4135 = vmatpush3.bf16.msra.mxu1 %v3072_v5  ;;  %4150 = vmatprep.mubr.msk.bf16.mxu1 %vm5199_vm0, %v8730_v62  ;;  %v8735_v5 = vld [vmem:[#allocation71_spill] sm:$0xff] }
 0x539   :  { %4136 = vmatprep.subr.bf16.mxu1 %v8730_v62  ;;  %v3075_v22 = vpack.c.bf16 %v8736_v28, %v8735_v5  ;;  %v8743_v28 = vld [vmem:[#allocation30_spill] sm:$0xff] }
 0x53c   :  { %4137 = vmatpush3.bf16.msra.mxu1 %v3073_v8 }
 0x53d   :  { %4138 = vmatprep.subr.bf16.mxu1 %v8730_v62 }
 0x540   :  { %4139 = vmatpush3.bf16.msra.mxu1 %v3074_v24  ;;  %v8741_v24 = vld [vmem:[#allocation107_spill] sm:$0xff] }
 0x541   :  { %4140 = vmatprep.subr.bf16.mxu1 %v8730_v62  ;;  %v3064_v5 = vpack.c.bf16 %v8741_v24, %v8740_v39  ;;  %v8750_v39 = vld [vmem:[#allocation26_spill] sm:$0xff]  ;;  %v8751_v24 = vld [vmem:[#allocation72_spill] sm:$0xff] }
 0x542   :  { %v2760_v45 = vpop.trf.xlu1 }
 0x543   :  { %v3003_v34 = vrot.slane %v2760_v45, %v7610_v42  ;;  %v8747_v45 = vld [vmem:[#allocation24_spill] sm:$0xff] }
 0x544   :  { %4141 = vmatpush3.bf16.msra.mxu1 %v3075_v22  ;;  %v3077_v22 = vpack.c.bf16 %v8743_v28, %v8742_v3  ;;  %v8753_v3 = vld [vmem:[#allocation113_spill] sm:$0xff] }
 0x545   :  { %v3032_v8 = vmul.f32 %v3003_v34, %v423_v36  ;;  %4142 = vmatprep.subr.bf16.mxu1 %v8730_v62  ;;  %v3078_v34 = vpack.c.bf16 %v8747_v45, %v8746_v50  ;;  %v3067_v28 = vpack.c.bf16 %v8753_v3, %v8752_v38  ;;  %v8757_v45 = vld [vmem:[#allocation20_spill] sm:$0xff] }
 0x546   :  { %v8762_v3 = vld [vmem:[#allocation96_spill] sm:$0xff] }
 0x547   :  { %v3040_v40 = vpack.c.bf16 %v3032_v8, %v3032_v8  ;;  %v8748_v8 = vld [vmem:[#allocation70_spill] sm:$0xff] }
 0x548   :  { %4143 = vmatpush3.bf16.msra.mxu1 %v3076_v56  ;;  %v8745_v56 = vld [vmem:[#allocation102_spill] sm:$0xff]  ;;  %v3066_v4 = vpack.c.bf16 %v8749_v33, %v8748_v8  ;;  %v3070_v33 = vpack.c.bf16 %v8759_v46, %v8758_v14 }
 0x549   :  { %4144 = vmatprep.subr.bf16.mxu1 %v8730_v62  ;;  %4091 = vmatmul.mubr.bf16.vlgmr.msra.gmra.mrb[80].mxu0 %v3040_v40  ;;  %v3065_v36 = vpack.c.bf16 %v8745_v56, %v8744_v21  ;;  %v4956_v40 = vpop.eup %4955  ;;  %v8754_v21 = vld [vmem:[#allocation37_spill] sm:$0xff]  ;;  %v8755_v56 = vld [vmem:[#allocation36_spill] sm:$0xff]  ;;  %4987 = vrcp.f32 %v7415_v32 }
 0x54a   :  { %4115 = vmatpush3.bf16.msra.mxu0 %v3064_v5  ;;  %4130 = vmatprep.mubr.msk.bf16.mxu0 %vm5199_vm0, %v8730_v62  ;;  %v3079_v5 = vpack.c.bf16 %v8751_v24, %v8750_v39 }
 0x54b   :  { %4116 = vmatprep.subr.bf16.mxu0 %v8730_v62 }
 0x54c   :  { %4145 = vmatpush3.bf16.msra.mxu1 %v3077_v22  ;;  %v4958_v22 = vpop.eup %4957  ;;  %4989 = vrcp.f32 %v7390_v16 }
 0x54d   :  { %4146 = vmatprep.subr.bf16.mxu1 %v8730_v62  ;;  %v4960_v50 = vpop.eup %4959  ;;  %4991 = vrcp.f32 %v7399_v31 }
 0x54e   :  { %4117 = vmatpush3.bf16.msra.mxu0 %v3065_v36  ;;  %v3068_v36 = vpack.c.bf16 %v8755_v56, %v8754_v21  ;;  %v4962_v8 = vpop.eup %4961  ;;  %4993 = vrcp.f32 %v8762_v3  ;;  %v8765_v21 = vld [vmem:[#allocation118_spill] sm:$0xff]  ;;  %v8766_v56 = vld [vmem:[#allocation127_spill] sm:$0xff] }
 0x54f   :  { %4118 = vmatprep.subr.bf16.mxu0 %v8730_v62  ;;  %v8777_v3 = vld [vmem:[#allocation131_spill] sm:$0xff] }
 0x550   :  { %4147 = vmatpush3.bf16.msra.mxu1 %v3078_v34  ;;  %v3069_v34 = vpack.c.bf16 %v8757_v45, %v8756_v20  ;;  %v8768_v20 = vld [vmem:[#allocation121_spill] sm:$0xff] }
 0x551   :  { %4148 = vmatprep.subr.bf16.mxu1 %v8730_v62 }
 0x552   :  { %2840 = vxpose.xlu0.b32.start [1/16] (narrow) %v4956_v40, 8  ;;  %4119 = vmatpush3.bf16.msra.mxu0 %v3066_v4  ;;  %v4964_v4 = vpop.eup %4963  ;;  %v8761_v40 = vld [vmem:[#allocation38_spill] sm:$0xff]  ;;  %4995 = vrcp.f32 %v7442_v18 }
 0x553   :  { %4120 = vmatprep.subr.bf16.mxu0 %v8730_v62  ;;  %v4966_v44 = vpop.eup %4965  ;;  %v3071_v39 = vpack.c.bf16 %v8761_v40, %v8760_v1 }
 0x554   :  { %4149 = vmatpush3.bf16.msra.mxu1 %v3079_v5  ;;  %v4968_v2 = vpop.eup %4967 }
 0x555   :  { %4174 = vmatprep.subr.bf16.mxu1 %v8730_v62  ;;  %v4970_v24 = vpop.eup %4969 }
 0x556   :  { %2841 = vxpose.xlu0.b32.cont [2/16] (narrow) %v4958_v22, 8  ;;  %4121 = vmatpush3.bf16.msra.mxu0 %v3067_v28  ;;  %v4972_v29 = vpop.eup %4971  ;;  %v8763_v28 = vld [vmem:[#allocation122_spill] sm:$0xff]  ;;  %v8764_v22 = vld [vmem:[#allocation124_spill] sm:$0xff] }
 0x557   :  { %4122 = vmatprep.subr.bf16.mxu0 %v8730_v62  ;;  %v4974_v61 = vpop.eup %4973  ;;  %4997 = vrcp.f32 %v8763_v28  ;;  %v8778_v28 = vld [vmem:[#allocation114_spill] sm:$0xff] }
 0x558   :  { %v4976_v5 = vpop.eup %4975  ;;  %4999 = vrcp.f32 %v8764_v22  ;;  %v8779_v22 = vld [vmem:[#allocation115_spill] sm:$0xff] }
 0x559   :  { %v4978_v13 = vpop.eup %4977  ;;  %5001 = vrcp.f32 %v8765_v21 }
 0x55a   :  { %2842 = vxpose.xlu0.b32.cont [3/16] (narrow) %v4960_v50, 8  ;;  %4123 = vmatpush3.bf16.msra.mxu0 %v3068_v36  ;;  %v4980_v49 = vpop.eup %4979  ;;  %5003 = vrcp.f32 %v8766_v56  ;;  %v8767_v50 = vld [vmem:[#allocation119_spill] sm:$0xff]  ;;  %v8780_v56 = vld [vmem:[#allocation140_spill] sm:$0xff] }
 0x55b   :  { %4124 = vmatprep.subr.bf16.mxu0 %v8730_v62  ;;  %v4982_v38 = vpop.eup %4981  ;;  %5005 = vrcp.f32 %v8767_v50  ;;  %v8781_v50 = vld [vmem:[#allocation27_spill] sm:$0xff] }
 0x55c   :  { %v4984_v7 = vpop.eup %4983  ;;  %5007 = vrcp.f32 %v8768_v20 }
 0x55d   :  { %v4986_v59 = vpop.eup %4985 }
 0x55e   :  { %2843 = vxpose.xlu0.b32.cont [4/16] (narrow) %v4962_v8, 8  ;;  %4125 = vmatpush3.bf16.msra.mxu0 %v3069_v34  ;;  %v4988_v55 = vpop.eup %4987  ;;  %v8769_v34 = vld [vmem:[#allocation117_spill] sm:$0xff] }
 0x55f   :  { %4126 = vmatprep.subr.bf16.mxu0 %v8730_v62  ;;  %v4990_v32 = vpop.eup %4989  ;;  %5009 = vrcp.f32 %v8769_v34  ;;  %v8783_v34 = vld [vmem:[#allocation138_spill] sm:$0xff] }
 0x560   :  { %v4992_v16 = vpop.eup %4991  ;;  %5011 = vrcp.f32 %v7453_v6 }
 0x561   :  { %v4994_v31 = vpop.eup %4993  ;;  %5013 = vrcp.f32 %v7437_v41 }
 0x562   :  { %2844 = vxpose.xlu0.b32.cont [5/16] (narrow) %v4964_v4, 8  ;;  %4127 = vmatpush3.bf16.msra.mxu0 %v3070_v33  ;;  %v4996_v36 = vpop.eup %4995  ;;  %v8770_v33 = vld [vmem:[#allocation130_spill] sm:$0xff] }
 0x563   :  { %4128 = vmatprep.subr.bf16.mxu0 %v8730_v62  ;;  %v4998_v18 = vpop.eup %4997  ;;  %5015 = vrcp.f32 %v8770_v33 }
 0x564   :  { %2808 = vxpose.xlu1.b32.start [1/16] (narrow) %v4966_v44, 8  ;;  %v5000_v45 = vpop.eup %4999  ;;  %v8771_v44 = vld [vmem:[#allocation123_spill] sm:$0xff] }
 0x565   :  { %v5002_v8 = vpop.eup %5001  ;;  %5017 = vrcp.f32 %v8771_v44  ;;  %v8786_v44 = vld [vmem:[#allocation141_spill] sm:$0xff] }
 0x566   :  { %2845 = vxpose.xlu0.b32.cont [6/16] (narrow) %v4968_v2, 8  ;;  %4129 = vmatpush3.bf16.msra.mxu0 %v3071_v39  ;;  %v5004_v14 = vpop.eup %5003  ;;  %5019 = vrcp.f32 %v7447_v26  ;;  %v8772_v39 = vld [vmem:[#allocation125_spill] sm:$0xff]  ;;  %v8773_v2 = vld [vmem:[#allocation120_spill] sm:$0xff] }
 0x567   :  { %4154 = vmatprep.subr.bf16.mxu0 %v8730_v62  ;;  %v5006_v46 = vpop.eup %5005  ;;  %5021 = vrcp.f32 %v8772_v39 }
 0x568   :  { %2809 = vxpose.xlu1.b32.cont [2/16] (narrow) %v4970_v24, 8  ;;  %v5008_v4 = vpop.eup %5007  ;;  %5023 = vrcp.f32 %v7459_v58 }
 0x569   :  { %v5010_v1 = vpop.eup %5009  ;;  %5025 = vrcp.f32 %v8773_v2 }
 0x56a   :  { %2846 = vxpose.xlu0.b32.cont [7/16] (narrow) %v4972_v29, 8  ;;  %v5012_v40 = vpop.eup %5011  ;;  %5027 = vrcp.f32 %v7477_v63 }
 0x56b   :  { %v5014_v6 = vpop.eup %5013 }
 0x56c   :  { %2810 = vxpose.xlu1.b32.cont [3/16] (narrow) %v4974_v61, 8  ;;  %v8774_v61 = vld [vmem:[#allocation128_spill] sm:$0xff] }
 0x56d   :  { %v5016_v41 = vpop.eup %5015  ;;  %5029 = vrcp.f32 %v8774_v61  ;;  %v8789_v61 = vld [vmem:[#allocation60_spill] sm:$0xff] }
 0x56e   :  { %2847 = vxpose.xlu0.b32.cont [8/16] (narrow) %v4976_v5, 8  ;;  %5031 = vrcp.f32 %v7489_v17 }
 0x56f   :  { %v5018_v24 = vpop.eup %5017  ;;  %5033 = vrcp.f32 %v7465_v0 }
 0x570   :  { %2811 = vxpose.xlu1.b32.cont [4/16] (narrow) %v4978_v13, 8  ;;  %v5020_v29 = vpop.eup %5019  ;;  %5035 = vrcp.f32 %v7471_v30 }
 0x571   :  { %v5022_v26 = vpop.eup %5021 }
 0x572   :  { %2848 = vxpose.xlu0.b32.cont [9/16] (narrow) %v4980_v49, 8  ;;  %v5024_v5 = vpop.eup %5023  ;;  %v8775_v49 = vld [vmem:[#allocation126_spill] sm:$0xff] }
 0x573   :  { %v5026_v58 = vpop.eup %5025  ;;  %5037 = vrcp.f32 %v8775_v49 }
 0x574   :  { %2812 = vxpose.xlu1.b32.cont [5/16] (narrow) %v4982_v38, 8  ;;  %v5028_v13 = vpop.eup %5027  ;;  %5039 = vrcp.f32 %v7483_v37 }
 0x576   :  { %2849 = vxpose.xlu0.b32.cont [10/16] (narrow) %v4984_v7, 8  ;;  %v8776_v7 = vld [vmem:[#allocation129_spill] sm:$0xff] }
 0x577   :  { %v5030_v63 = vpop.eup %5029  ;;  %5041 = vrcp.f32 %v8776_v7 }
 0x578   :  { %2813 = vxpose.xlu1.b32.cont [6/16] (narrow) %v4986_v59, 8  ;;  %v5032_v38 = vpop.eup %5031  ;;  %5043 = vrcp.f32 %v7501_v53 }
 0x579   :  { %v5034_v17 = vpop.eup %5033  ;;  %5045 = vrcp.f32 %v8777_v3  ;;  %v8794_v3 = vld [vmem:[#allocation40_spill] sm:$0xff] }
 0x57a   :  { %2850 = vxpose.xlu0.b32.cont [11/16] (narrow) %v4988_v55, 8  ;;  %v5036_v0 = vpop.eup %5035  ;;  %5047 = vrcp.f32 %v7513_v52 }
 0x57b   :  { %5049 = vrcp.f32 %v7467_v54 }
 0x57c   :  { %2814 = vxpose.xlu1.b32.cont [7/16] (narrow) %v4990_v32, 8  ;;  %5051 = vrcp.f32 %v7495_v12 }
 0x57d   :  { %v5038_v30 = vpop.eup %5037  ;;  %5053 = vrcp.f32 %v8778_v28 }
 0x57e   :  { %2851 = vxpose.xlu0.b32.cont [12/16] (narrow) %v4992_v16, 8  ;;  %v5040_v59 = vpop.eup %5039  ;;  %5055 = vrcp.f32 %v7507_v48 }
 0x57f   :  { %5057 = vrcp.f32 %v8779_v22 }
 0x580   :  { %2815 = vxpose.xlu1.b32.cont [8/16] (narrow) %v4994_v31, 8  ;;  %5059 = vrcp.f32 %v7524_v9 }
 0x581   :  { %v5042_v37 = vpop.eup %5041  ;;  %5061 = vrcp.f32 %v7479_v25 }
 0x582   :  { %2852 = vxpose.xlu0.b32.cont [13/16] (narrow) %v4996_v36, 8  ;;  %v5044_v55 = vpop.eup %5043  ;;  %5063 = vrcp.f32 %v7535_v27 }
 0x583   :  { %v5046_v53 = vpop.eup %5045  ;;  %5065 = vrcp.f32 %v7491_v60 }
 0x584   :  { %2816 = vxpose.xlu1.b32.cont [9/16] (narrow) %v4998_v18, 8  ;;  %v5048_v32 = vpop.eup %5047  ;;  %5067 = vrcp.f32 %v7519_v23  ;;  %v8782_v18 = vld [vmem:[#allocation133_spill] sm:$0xff] }
 0x585   :  { %v5050_v52 = vpop.eup %5049  ;;  %5069 = vrcp.f32 %v7473_v19 }
 0x586   :  { %2853 = vxpose.xlu0.b32.cont [14/16] (narrow) %v5000_v45, 8  ;;  %v5052_v54 = vpop.eup %5051  ;;  %5071 = vrcp.f32 %v7530_v10 }
 0x587   :  { %v5054_v12 = vpop.eup %5053  ;;  %5073 = vrcp.f32 %v7485_v51 }
 0x588   :  { %2817 = vxpose.xlu1.b32.cont [10/16] (narrow) %v5002_v8, 8  ;;  %v5056_v48 = vpop.eup %5055  ;;  %5075 = vrcp.f32 %v8780_v56 }
 0x589   :  { %v5058_v21 = vpop.eup %5057  ;;  %5077 = vrcp.f32 %v8781_v50  ;;  %v8804_v50 = vld [vmem:[#allocation103_spill] sm:$0xff] }
 0x58a   :  { %2854 = vxpose.xlu0.b32.cont [15/16] (narrow) %v5004_v14, 8  ;;  %v5060_v9 = vpop.eup %5059  ;;  %5079 = vrcp.f32 %v7557_v43  ;;  %v8784_v14 = vld [vmem:[#allocation29_spill] sm:$0xff]  ;;  %v8785_v43 = vld [vmem:[#allocation11_spill] sm:$0xff] }
 0x58b   :  { %v5062_v25 = vpop.eup %5061  ;;  %5081 = vrcp.f32 %v8782_v18  ;;  %v8806_v18 = vld [vmem:[#allocation54_spill] sm:$0xff] }
 0x58c   :  { %2818 = vxpose.xlu1.b32.cont [11/16] (narrow) %v5006_v46, 8  ;;  %v5064_v27 = vpop.eup %5063  ;;  %5083 = vrcp.f32 %v8783_v34 }
 0x58d   :  { %v5066_v60 = vpop.eup %5065  ;;  %5085 = vrcp.f32 %v8784_v14  ;;  %v8808_v14 = vld [vmem:[#allocation59_spill] sm:$0xff] }
 0x58e   :  { %2855 = vxpose.xlu0.b32.end [16/16] (narrow) %v5008_v4, 8  ;;  %v5068_v23 = vpop.eup %5067  ;;  %v426_v4 = vadd.f32 %v8725_v11, %v8785_v43  ;;  %5087 = vrcp.f32 %v8786_v44  ;;  %v8811_v44 = vld [vmem:[#allocation33_spill] sm:$0xff] }
 0x58f   :  { %v5070_v19 = vpop.eup %5069 }
 0x590   :  { %2819 = vxpose.xlu1.b32.cont [12/16] (narrow) %v5010_v1, 8  ;;  %v5072_v10 = vpop.eup %5071 }
 0x591   :  { %v5074_v45 = vpop.eup %5073 }
 0x592   :  { %2872 = vxpose.xlu0.b32.start [1/16] (narrow) %v5012_v40, 8  ;;  %v5076_v8 = vpop.eup %5075 }
 0x593   :  { %v5078_v33 = vpop.eup %5077 }
 0x594   :  { %2820 = vxpose.xlu1.b32.cont [13/16] (narrow) %v5014_v6, 8  ;;  %v5080_v39 = vpop.eup %5079  ;;  %v8787_v6 = vld [vmem:[#allocation132_spill] sm:$0xff] }
 0x595   :  { %5089 = vrcp.f32 %v8787_v6  ;;  %v5082_v2 = vpop.eup %5081 }
 0x596   :  { %2873 = vxpose.xlu0.b32.cont [2/16] (narrow) %v5016_v41, 8  ;;  %5091 = vrcp.f32 %v7576_v15  ;;  %v8791_v15 = vld [vmem:[#allocation46_spill] sm:$0xff] }
 0x598   :  { %2821 = vxpose.xlu1.b32.cont [14/16] (narrow) %v5018_v24, 8 }
 0x59a   :  { %2874 = vxpose.xlu0.b32.cont [3/16] (narrow) %v5020_v29, 8  ;;  %v8788_v29 = vld [vmem:[#allocation31_spill] sm:$0xff] }
 0x59c   :  { %2822 = vxpose.xlu1.b32.cont [15/16] (narrow) %v5022_v26, 8  ;;  %v3088_v26 = vpack.c.bf16 %v8789_v61, %v8788_v29 }
 0x59e   :  { %2875 = vxpose.xlu0.b32.cont [4/16] (narrow) %v5024_v5, 8  ;;  %v5084_v5 = vpop.eup %5083 }
 0x59f   :  { %v5086_v49 = vpop.eup %5085 }
 0x5a0   :  { %2823 = vxpose.xlu1.b32.end [16/16] (narrow) %v5026_v58, 8  ;;  %v8790_v58 = vld [vmem:[#allocation135_spill] sm:$0xff]  ;;  %v5088_v7 = vpop.eup %5087 }
 0x5a1   :  { %5093 = vrcp.f32 %v8790_v58  ;;  %v8818_v58 = vld [vmem:[#allocation42_spill] sm:$0xff] }
 0x5a2   :  { %2876 = vxpose.xlu0.b32.cont [5/16] (narrow) %v5028_v13, 8  ;;  %5095 = vrcp.f32 %v7598_v47 }
 0x5a4   :  { %2904 = vxpose.xlu1.b32.start [1/16] (narrow) %v5030_v63, 8  ;;  %v8792_v63 = vld [vmem:[#allocation52_spill] sm:$0xff] }
 0x5a6   :  { %2877 = vxpose.xlu0.b32.cont [6/16] (narrow) %v5032_v38, 8  ;;  %v7734_v16 = vpop.xlane.xlu0 %2612  ;;  %v3089_v38 = vpack.c.bf16 %v8792_v63, %v8791_v15  ;;  %v8819_v63 = vld [vmem:[#allocation16_spill] sm:$0xff] }
 0x5a8   :  { %2905 = vxpose.xlu1.b32.cont [2/16] (narrow) %v5034_v17, 8  ;;  %v8793_v17 = vld [vmem:[#allocation137_spill] sm:$0xff] }
 0x5a9   :  { %5097 = vrcp.f32 %v8793_v17 }
 0x5aa   :  { %2878 = vxpose.xlu0.b32.cont [7/16] (narrow) %v5036_v0, 8  ;;  %v7739_v31 = vpop.xlane.xlu0 %2608  ;;  %v5090_v0 = vpop.eup %5089  ;;  %5099 = vrcp.f32 %v7565_v57  ;;  %v8798_v57 = vld [vmem:[#allocation41_spill] sm:$0xff] }
 0x5ac   :  { %2906 = vxpose.xlu1.b32.cont [3/16] (narrow) %v5038_v30, 8  ;;  %v8795_v30 = vld [vmem:[#allocation53_spill] sm:$0xff] }
 0x5ae   :  { %2879 = vxpose.xlu0.b32.cont [8/16] (narrow) %v5040_v59, 8  ;;  %v7744_v36 = vpop.xlane.xlu0 %2614  ;;  %v3090_v59 = vpack.c.bf16 %v8795_v30, %v8794_v3  ;;  %v8822_v3 = vld [vmem:[#allocation105_spill] sm:$0xff]  ;;  %v8823_v30 = vld [vmem:[#allocation58_spill] sm:$0xff] }
 0x5b0   :  { %2907 = vxpose.xlu1.b32.cont [4/16] (narrow) %v5042_v37, 8  ;;  %v5092_v37 = vpop.eup %5091 }
 0x5b1   :  { %v5094_v28 = vpop.eup %5093 }
 0x5b2   :  { %2880 = vxpose.xlu0.b32.cont [9/16] (narrow) %v5044_v55, 8  ;;  %v7749_v20 = vpop.xlane.xlu0 %2610  ;;  %v7751_v51 = vpop.xlane.xlu1 %2580  ;;  %v8796_v55 = vld [vmem:[#allocation134_spill] sm:$0xff] }
 0x5b3   :  { %5101 = vrcp.f32 %v8796_v55 }
 0x5b4   :  { %2908 = vxpose.xlu1.b32.cont [5/16] (narrow) %v5046_v53, 8  ;;  %5103 = vrcp.f32 %v7587_v35  ;;  %v8797_v53 = vld [vmem:[#allocation32_spill] sm:$0xff] }
 0x5b6   :  { %2881 = vxpose.xlu0.b32.cont [10/16] (narrow) %v5048_v32, 8  ;;  %v7759_v40 = vpop.xlane.xlu1 %2576  ;;  %v3091_v32 = vpack.c.bf16 %v8798_v57, %v8797_v53  ;;  %v8825_v53 = vld [vmem:[#allocation111_spill] sm:$0xff]  ;;  %v8826_v57 = vld [vmem:[#allocation56_spill] sm:$0xff] }
 0x5b8   :  { %2909 = vxpose.xlu1.b32.cont [6/16] (narrow) %v5050_v52, 8  ;;  %v5096_v52 = vpop.eup %5095 }
 0x5ba   :  { %2882 = vxpose.xlu0.b32.cont [11/16] (narrow) %v5052_v54, 8  ;;  %v7766_v13 = vpop.xlane.xlu1 %2582  ;;  %v8799_v54 = vld [vmem:[#allocation10_spill] sm:$0xff] }
 0x5bc   :  { %2910 = vxpose.xlu1.b32.cont [7/16] (narrow) %v5054_v12, 8  ;;  %v425_v12 = vadd.f32 %v8725_v11, %v8799_v54 }
 0x5be   :  { %2883 = vxpose.xlu0.b32.cont [12/16] (narrow) %v5056_v48, 8  ;;  %v7777_v47 = vpop.xlane.xlu1 %2578  ;;  %v8800_v48 = vld [vmem:[#allocation136_spill] sm:$0xff] }
 0x5bf   :  { %5105 = vrcp.f32 %v8800_v48  ;;  %v8830_v48 = vld [vmem:[#allocation78_spill] sm:$0xff] }
 0x5c0   :  { %2911 = vxpose.xlu1.b32.cont [8/16] (narrow) %v5058_v21, 8 }
 0x5c2   :  { %2884 = vxpose.xlu0.b32.cont [13/16] (narrow) %v5060_v9, 8  ;;  %v5098_v9 = vpop.eup %5097 }
 0x5c4   :  { %2912 = vxpose.xlu1.b32.cont [9/16] (narrow) %v5062_v25, 8  ;;  %v8801_v25 = vld [vmem:[#allocation9_spill] sm:$0xff] }
 0x5c5   :  { %5107 = vrcp.f32 %v8801_v25 }
 0x5c6   :  { %2885 = vxpose.xlu0.b32.cont [14/16] (narrow) %v5064_v27, 8  ;;  %v8802_v27 = vld [vmem:[#allocation61_spill] sm:$0xff]  ;;  %5109 = vrcp.f32 %v8804_v50  ;;  %v8834_v50 = vld [vmem:[#allocation144_spill] sm:$0xff] }
 0x5c8   :  { %2913 = vxpose.xlu1.b32.cont [10/16] (narrow) %v5066_v60, 8  ;;  %v8803_v60 = vld [vmem:[#allocation66_spill] sm:$0xff] }
 0x5c9   :  { %v3092_v56 = vpack.c.bf16 %v8803_v60, %v8802_v27  ;;  %v8833_v27 = vld [vmem:[#allocation89_spill] sm:$0xff] }
 0x5ca   :  { %2886 = vxpose.xlu0.b32.cont [15/16] (narrow) %v5068_v23, 8  ;;  %v5100_v23 = vpop.eup %5099 }
 0x5cb   :  { %v5102_v34 = vpop.eup %5101 }
 0x5cc   :  { %2914 = vxpose.xlu1.b32.cont [11/16] (narrow) %v5070_v19, 8  ;;  %v5104_v43 = vpop.eup %5103 }
 0x5cd   :  { %v5106_v6 = vpop.eup %5105 }
 0x5ce   :  { %2887 = vxpose.xlu0.b32.end [16/16] (narrow) %v5072_v10, 8  ;;  %v8805_v10 = vld [vmem:[#allocation51_spill] sm:$0xff] }
 0x5cf   :  { %v5108_v61 = vpop.eup %5107 }
 0x5d0   :  { %2915 = vxpose.xlu1.b32.cont [12/16] (narrow) %v5074_v45, 8  ;;  %v3080_v45 = vpack.c.bf16 %v8806_v18, %v8805_v10  ;;  %v5110_v15 = vpop.eup %5109 }
 0x5d2   :  { %2936 = vxpose.xlu0.b32.start [1/16] (narrow) %v5076_v8, 8  ;;  %v2856_v46 = vpop.trf.xlu0  ;;  %v8807_v8 = vld [vmem:[#allocation65_spill] sm:$0xff] }
 0x5d3   :  { %v3015_v1 = vrot.slane %v2856_v46, %v7610_v42  ;;  %5111 = vrcp.f32 %v8807_v8  ;;  %v8809_v46 = vld [vmem:[#allocation83_spill] sm:$0xff] }
 0x5d4   :  { %2916 = vxpose.xlu1.b32.cont [13/16] (narrow) %v5078_v33, 8  ;;  %v3093_v33 = vpack.c.bf16 %v8809_v46, %v8808_v14 }
 0x5d5   :  { %v3035_v41 = vmul.f32 %v3015_v1, %v426_v4  ;;  %v8810_v4 = vld [vmem:[#allocation108_spill] sm:$0xff]  ;;  %v8812_v1 = vld [vmem:[#allocation45_spill] sm:$0xff] }
 0x5d6   :  { %2937 = vxpose.xlu0.b32.cont [2/16] (narrow) %v5080_v39, 8  ;;  %5113 = vrcp.f32 %v8810_v4  ;;  %v3081_v39 = vpack.c.bf16 %v8812_v1, %v8811_v44  ;;  %v8837_v44 = vld [vmem:[#allocation12_spill] sm:$0xff] }
 0x5d7   :  { %v3043_v24 = vpack.c.bf16 %v3035_v41, %v3035_v41  ;;  %v8813_v41 = vld [vmem:[#allocation104_spill] sm:$0xff]  ;;  %v427_v1 = vadd.f32 %v8725_v11, %v8837_v44  ;;  %v8880_v44 = vld [vmem:[#allocation142_spill] sm:$0xff] }
 0x5d8   :  { %2917 = vxpose.xlu1.b32.cont [14/16] (narrow) %v5082_v2, 8  ;;  %5115 = vrcp.f32 %v8813_v41  ;;  %v8814_v2 = vld [vmem:[#allocation67_spill] sm:$0xff] }
 0x5d9   :  { %4151 = vmatmul.mubr.bf16.vlgmr.msra.gmra.mrb[84].mxu1 %v3043_v24  ;;  %v8815_v24 = vld [vmem:[#allocation57_spill] sm:$0xff] }
 0x5da   :  { %4175 = vmatpush3.bf16.msra.mxu1 %v3088_v26  ;;  %2938 = vxpose.xlu0.b32.cont [3/16] (narrow) %v5084_v5, 8  ;;  %v3094_v29 = vpack.c.bf16 %v8815_v24, %v8814_v2  ;;  %v8816_v26 = vld [vmem:[#allocation139_spill] sm:$0xff]  ;;  %v8817_v5 = vld [vmem:[#allocation50_spill] sm:$0xff]  ;;  %v8839_v24 = vld [vmem:[#allocation84_spill] sm:$0xff] }
 0x5db   :  { %4176 = vmatprep.subr.bf16.mxu1 %v8730_v62  ;;  %4190 = vmatprep.mubr.msk.bf16.mxu1 %vm5199_vm0, %v8730_v62  ;;  %5117 = vrcp.f32 %v8816_v26 }
 0x5dc   :  { %2918 = vxpose.xlu1.b32.cont [15/16] (narrow) %v5086_v49, 8  ;;  %v3082_v49 = vpack.c.bf16 %v8818_v58, %v8817_v5  ;;  %5119 = vrcp.f32 %v8819_v63  ;;  %v8842_v5 = vld [vmem:[#allocation63_spill] sm:$0xff] }
 0x5dd   :  { %5121 = vrcp.f32 %v8822_v3  ;;  %v8847_v3 = vld [vmem:[#allocation13_spill] sm:$0xff] }
 0x5de   :  { %4177 = vmatpush3.bf16.msra.mxu1 %v3089_v38  ;;  %2939 = vxpose.xlu0.b32.cont [4/16] (narrow) %v5088_v7, 8  ;;  %v8820_v38 = vld [vmem:[#allocation82_spill] sm:$0xff]  ;;  %v8821_v7 = vld [vmem:[#allocation69_spill] sm:$0xff]  ;;  %5123 = vrcp.f32 %v7759_v40  ;;  %v8828_v40 = vld [vmem:[#allocation147_spill] sm:$0xff] }
 0x5df   :  { %4178 = vmatprep.subr.bf16.mxu1 %v8730_v62  ;;  %v3095_v17 = vpack.c.bf16 %v8821_v7, %v8820_v38  ;;  %5125 = vrcp.f32 %v8825_v53  ;;  %v8844_v38 = vld [vmem:[#allocation22_spill] sm:$0xff]  ;;  %v8845_v7 = vld [vmem:[#allocation92_spill] sm:$0xff] }
 0x5e0   :  { %2919 = vxpose.xlu1.b32.end [16/16] (narrow) %v5090_v0, 8  ;;  %v5112_v0 = vpop.eup %5111  ;;  %5127 = vrcp.f32 %v7777_v47  ;;  %v8832_v47 = vld [vmem:[#allocation87_spill] sm:$0xff] }
 0x5e1   :  { %v5114_v55 = vpop.eup %5113  ;;  %5129 = vrcp.f32 %v8828_v40  ;;  %v3086_v60 = vpack.c.bf16 %v8833_v27, %v8832_v47  ;;  %v8855_v40 = vld [vmem:[#allocation74_spill] sm:$0xff]  ;;  %v8862_v27 = vld [vmem:[#allocation79_spill] sm:$0xff] }
 0x5e2   :  { %4179 = vmatpush3.bf16.msra.mxu1 %v3090_v59  ;;  %2940 = vxpose.xlu0.b32.cont [5/16] (narrow) %v5092_v37, 8  ;;  %v8824_v59 = vld [vmem:[#allocation39_spill] sm:$0xff]  ;;  %5131 = vrcp.f32 %v7751_v51 }
 0x5e3   :  { %4180 = vmatprep.subr.bf16.mxu1 %v8730_v62  ;;  %v3083_v37 = vpack.c.bf16 %v8824_v59, %v8823_v30  ;;  %v8835_v51 = vld [vmem:[#allocation91_spill] sm:$0xff]  ;;  %v428_v30 = vadd.f32 %v8725_v11, %v8847_v3 }
 0x5e4   :  { %v2824_v22 = vpop.trf.xlu1  ;;  %2968 = vxpose.xlu1.b32.start [1/16] (narrow) %v5094_v28, 8  ;;  %v5116_v28 = vpop.eup %5115 }
 0x5e5   :  { %v3011_v21 = vrot.slane %v2824_v22, %v7610_v42 }
 0x5e6   :  { %4181 = vmatpush3.bf16.msra.mxu1 %v3091_v32  ;;  %2941 = vxpose.xlu0.b32.cont [6/16] (narrow) %v5096_v52, 8  ;;  %v8827_v32 = vld [vmem:[#allocation81_spill] sm:$0xff]  ;;  %v5118_v52 = vpop.eup %5117 }
 0x5e7   :  { %v3034_v35 = vmul.f32 %v3011_v21, %v425_v12  ;;  %4182 = vmatprep.subr.bf16.mxu1 %v8730_v62  ;;  %v3084_v22 = vpack.c.bf16 %v8827_v32, %v8826_v57  ;;  %v5120_v54 = vpop.eup %5119  ;;  %v8829_v12 = vld [vmem:[#allocation48_spill] sm:$0xff]  ;;  %v8851_v32 = vld [vmem:[#allocation101_spill] sm:$0xff] }
 0x5e8   :  { %2969 = vxpose.xlu1.b32.cont [2/16] (narrow) %v5098_v9, 8  ;;  %v3085_v21 = vpack.c.bf16 %v8830_v48, %v8829_v12  ;;  %v5122_v9 = vpop.eup %5121  ;;  %v8857_v48 = vld [vmem:[#allocation99_spill] sm:$0xff] }
 0x5e9   :  { %v3042_v19 = vpack.c.bf16 %v3034_v35, %v3034_v35  ;;  %v5124_v25 = vpop.eup %5123  ;;  %v8831_v35 = vld [vmem:[#allocation148_spill] sm:$0xff] }
 0x5ea   :  { %4183 = vmatpush3.bf16.msra.mxu1 %v3092_v56  ;;  %2942 = vxpose.xlu0.b32.cont [7/16] (narrow) %v5100_v23, 8  ;;  %5133 = vrcp.f32 %v8831_v35  ;;  %v5126_v56 = vpop.eup %5125  ;;  %v8861_v35 = vld [vmem:[#allocation149_spill] sm:$0xff] }
 0x5eb   :  { %4184 = vmatprep.subr.bf16.mxu1 %v8730_v62  ;;  %4131 = vmatmul.mubr.bf16.vlgmr.msra.gmra.mrb[84].mxu0 %v3042_v19  ;;  %5135 = vrcp.f32 %v7766_v13  ;;  %v5128_v23 = vpop.eup %5127  ;;  %v8836_v19 = vld [vmem:[#allocation75_spill] sm:$0xff] }
 0x5ec   :  { %4155 = vmatpush3.bf16.msra.mxu0 %v3080_v45  ;;  %2970 = vxpose.xlu1.b32.cont [3/16] (narrow) %v5102_v34, 8  ;;  %5137 = vrcp.f32 %v8834_v50  ;;  %v3087_v10 = vpack.c.bf16 %v8836_v19, %v8835_v51  ;;  %v5130_v18 = vpop.eup %5129  ;;  %v8866_v50 = vld [vmem:[#allocation146_spill] sm:$0xff]  ;;  %v8867_v19 = vld [vmem:[#allocation77_spill] sm:$0xff] }
 0x5ed   :  { %4156 = vmatprep.subr.bf16.mxu0 %v8730_v62  ;;  %4170 = vmatprep.mubr.msk.bf16.mxu0 %vm5199_vm0, %v8730_v62  ;;  %v5132_v45 = vpop.eup %5131  ;;  %5139 = vrcp.f32 %v7739_v31 }
 0x5ee   :  { %4185 = vmatpush3.bf16.msra.mxu1 %v3093_v33  ;;  %2943 = vxpose.xlu0.b32.cont [8/16] (narrow) %v5104_v43, 8  ;;  %5141 = vrcp.f32 %v7749_v20  ;;  %v8838_v20 = vld [vmem:[#allocation47_spill] sm:$0xff] }
 0x5ef   :  { %4186 = vmatprep.subr.bf16.mxu1 %v8730_v62  ;;  %5143 = vrcp.f32 %v7734_v16 }
 0x5f0   :  { %4157 = vmatpush3.bf16.msra.mxu0 %v3081_v39  ;;  %2971 = vxpose.xlu1.b32.cont [4/16] (narrow) %v5106_v6, 8  ;;  %5145 = vrcp.f32 %v7744_v36  ;;  %v8841_v36 = vld [vmem:[#allocation55_spill] sm:$0xff] }
 0x5f1   :  { %4158 = vmatprep.subr.bf16.mxu0 %v8730_v62  ;;  %v8843_v58 = vpack.c.bf16 %v8841_v36, %v8842_v5  ;;  %v8884_v36 = vld [vmem:[#allocation15_spill] sm:$0xff] }
 0x5f2   :  { %4187 = vmatpush3.bf16.msra.mxu1 %v3094_v29  ;;  %2944 = vxpose.xlu0.b32.cont [9/16] (narrow) %v5108_v61, 8  ;;  %v8840_v29 = vpack.c.bf16 %v8838_v20, %v8839_v24  ;;  %v8883_v20 = vld [vmem:[#allocation14_spill] sm:$0xff]  ;;  %v430_v5 = vadd.f32 %v8725_v11, %v8884_v36 }
 0x5f3   :  { %4188 = vmatprep.subr.bf16.mxu1 %v8730_v62  ;;  %v429_v24 = vadd.f32 %v8725_v11, %v8883_v20 }
 0x5f4   :  { %4159 = vmatpush3.bf16.msra.mxu0 %v3082_v49  ;;  %2972 = vxpose.xlu1.b32.cont [5/16] (narrow) %v5110_v15, 8  ;;  %v5134_v34 = vpop.eup %5133 }
 0x5f5   :  { %4160 = vmatprep.subr.bf16.mxu0 %v8730_v62  ;;  %v5136_v46 = vpop.eup %5135 }
 0x5f6   :  { %4189 = vmatpush3.bf16.msra.mxu1 %v3095_v17  ;;  %2945 = vxpose.xlu0.b32.cont [10/16] (narrow) %v5112_v0, 8  ;;  %v5138_v43 = vpop.eup %5137  ;;  %v8846_v17 = vpack.c.bf16 %v8844_v38, %v8845_v7 }
 0x5f7   :  { %4214 = vmatprep.subr.bf16.mxu1 %v8730_v62  ;;  %v5140_v31 = vpop.eup %5139 }
 0x5f8   :  { %4161 = vmatpush3.bf16.msra.mxu0 %v3083_v37  ;;  %2973 = vxpose.xlu1.b32.cont [6/16] (narrow) %v5114_v55, 8  ;;  %v5142_v41 = vpop.eup %5141  ;;  %v8848_v37 = vld [vmem:[#allocation80_spill] sm:$0xff]  ;;  %v8849_v55 = vld [vmem:[#allocation90_spill] sm:$0xff] }
 0x5f9   :  { %4162 = vmatprep.subr.bf16.mxu0 %v8730_v62  ;;  %v5144_v16 = vpop.eup %5143 }
 0x5fa   :  { %2946 = vxpose.xlu0.b32.cont [11/16] (narrow) %v5116_v28, 8  ;;  %v5146_v15 = vpop.eup %5145  ;;  %v8850_v28 = vpack.c.bf16 %v8848_v37, %v8849_v55 }
 0x5fc   :  { %4163 = vmatpush3.bf16.msra.mxu0 %v3084_v22  ;;  %2974 = vxpose.xlu1.b32.cont [7/16] (narrow) %v5118_v52, 8  ;;  %v8852_v22 = vld [vmem:[#allocation94_spill] sm:$0xff] }
 0x5fd   :  { %4164 = vmatprep.subr.bf16.mxu0 %v8730_v62  ;;  %v8853_v52 = vpack.c.bf16 %v8851_v32, %v8852_v22 }
 0x5fe   :  { %2947 = vxpose.xlu0.b32.cont [12/16] (narrow) %v5120_v54, 8  ;;  %v8854_v54 = vld [vmem:[#allocation49_spill] sm:$0xff] }
 0x5ff   :  { %v8856_v12 = vpack.c.bf16 %v8854_v54, %v8855_v40 }
 0x600   :  { %4165 = vmatpush3.bf16.msra.mxu0 %v3085_v21  ;;  %2975 = vxpose.xlu1.b32.cont [8/16] (narrow) %v5122_v9, 8  ;;  %v8858_v21 = vld [vmem:[#allocation88_spill] sm:$0xff] }
 0x601   :  { %4166 = vmatprep.subr.bf16.mxu0 %v8730_v62  ;;  %v8859_v9 = vpack.c.bf16 %v8857_v48, %v8858_v21 }
 0x602   :  { %2948 = vxpose.xlu0.b32.cont [13/16] (narrow) %v5124_v25, 8  ;;  %v8860_v25 = vld [vmem:[#allocation145_spill] sm:$0xff] }
 0x603   :  { %v3102_v47 = vpack.c.bf16 %v8861_v35, %v8860_v25 }
 0x604   :  { %4167 = vmatpush3.bf16.msra.mxu0 %v3086_v60  ;;  %2976 = vxpose.xlu1.b32.cont [9/16] (narrow) %v5126_v56, 8  ;;  %v8863_v60 = vld [vmem:[#allocation85_spill] sm:$0xff] }
 0x605   :  { %4168 = vmatprep.subr.bf16.mxu0 %v8730_v62  ;;  %v8864_v56 = vpack.c.bf16 %v8862_v27, %v8863_v60 }
 0x606   :  { %2949 = vxpose.xlu0.b32.cont [14/16] (narrow) %v5128_v23, 8  ;;  %v8865_v23 = vld [vmem:[#allocation143_spill] sm:$0xff] }
 0x607   :  { %v3103_v51 = vpack.c.bf16 %v8866_v50, %v8865_v23 }
 0x608   :  { %4169 = vmatpush3.bf16.msra.mxu0 %v3087_v10  ;;  %2977 = vxpose.xlu1.b32.cont [10/16] (narrow) %v5130_v18, 8  ;;  %v8868_v10 = vld [vmem:[#allocation21_spill] sm:$0xff] }
 0x609   :  { %4194 = vmatprep.subr.bf16.mxu0 %v8730_v62  ;;  %v8869_v18 = vpack.c.bf16 %v8867_v19, %v8868_v10 }
 0x60a   :  { %2950 = vxpose.xlu0.b32.cont [15/16] (narrow) %v5132_v45, 8  ;;  %v3186_v13 = vpop.f32.mrb[80].mxu1  ;;  %v8870_v45 = vld [vmem:[#allocation93_spill] sm:$0xff] }
 0x60b   :  { %3433 = vst [vmem:[#allocation5 + $0x8] sm:$0xff] %v3186_v13  ;;  %v4112_v8 = vpop.f32.mrb[81].mxu1  ;;  %v8871_v13 = vld [vmem:[#allocation86_spill] sm:$0xff] }
 0x60c   :  { %v3189_v14 = vpop.f32.mrb[82].mxu1  ;;  %2978 = vxpose.xlu1.b32.cont [11/16] (narrow) %v5134_v34, 8  ;;  %v8872_v34 = vpack.c.bf16 %v8870_v45, %v8871_v13  ;;  %v8873_v8 = vld [vmem:[#allocation100_spill] sm:$0xff] }
 0x60d   :  { %v4113_v33 = vpop.f32.mrb[83].mxu1  ;;  %v8874_v14 = vld [vmem:[#allocation97_spill] sm:$0xff] }
 0x60e   :  { %2951 = vxpose.xlu0.b32.end [16/16] (narrow) %v5136_v46, 8  ;;  %v8875_v46 = vpack.c.bf16 %v8873_v8, %v8874_v14  ;;  %v8876_v33 = vld [vmem:[#allocation98_spill] sm:$0xff] }
 0x610   :  { %2979 = vxpose.xlu1.b32.cont [12/16] (narrow) %v5138_v43, 8  ;;  %v8877_v43 = vld [vmem:[#allocation95_spill] sm:$0xff] }
 0x612   :  { %v2888_v4 = vpop.trf.xlu0 }
 0x613   :  { %v3019_v39 = vrot.slane %v2888_v4, %v7610_v42  ;;  %v8878_v4 = vpack.c.bf16 %v8876_v33, %v8877_v43 }
 0x614   :  { %2980 = vxpose.xlu1.b32.cont [13/16] (narrow) %v5140_v31, 8  ;;  %v8879_v31 = vld [vmem:[#allocation106_spill] sm:$0xff] }
 0x615   :  { %v3036_v6 = vmul.f32 %v3019_v39, %v427_v1  ;;  %v3110_v1 = vpack.c.bf16 %v8880_v44, %v8879_v31  ;;  %v8881_v39 = vld [vmem:[#allocation110_spill] sm:$0xff] }
 0x617   :  { %v3044_v2 = vpack.c.bf16 %v3036_v6, %v3036_v6  ;;  %v8882_v6 = vld [vmem:[#allocation109_spill] sm:$0xff] }
 0x618   :  { %2981 = vxpose.xlu1.b32.cont [14/16] (narrow) %v5142_v41, 8  ;;  %v3111_v41 = vpack.c.bf16 %v8882_v6, %v8881_v39 }
 0x619   :  { %4171 = vmatmul.mubr.bf16.vlgmr.msra.gmra.mrb[88].mxu0 %v3044_v2 }
 0x61a   :  { %4195 = vmatpush3.bf16.msra.mxu0 %v8840_v29  ;;  %4210 = vmatprep.mubr.msk.bf16.mxu0 %vm5199_vm0, %v8730_v62 }
 0x61b   :  { %4196 = vmatprep.subr.bf16.mxu0 %v8730_v62 }
 0x61c   :  { %2982 = vxpose.xlu1.b32.cont [15/16] (narrow) %v5144_v16, 8  ;;  %v3146_v61 = vpop.f32.mrb[80].mxu0 }
 0x61d   :  { %3432 = vst [vmem:[#allocation5] sm:$0xff] %v3146_v61  ;;  %v4092_v26 = vpop.f32.mrb[81].mxu0 }
 0x61e   :  { %4197 = vmatpush3.bf16.msra.mxu0 %v8843_v58  ;;  %v3149_v49 = vpop.f32.mrb[82].mxu0 }
 0x61f   :  { %4198 = vmatprep.subr.bf16.mxu0 %v8730_v62  ;;  %v4093_v63 = vpop.f32.mrb[83].mxu0 }
 0x620   :  { %2983 = vxpose.xlu1.b32.end [16/16] (narrow) %v5146_v15, 8 }
 0x622   :  { %4199 = vmatpush3.bf16.msra.mxu0 %v8846_v17 }
 0x623   :  { %4200 = vmatprep.subr.bf16.mxu0 %v8730_v62 }
 0x624   :  { %v2920_v0 = vpop.trf.xlu1 }
 0x625   :  { %v3023_v59 = vrot.slane %v2920_v0, %v7610_v42 }
 0x626   :  { %4201 = vmatpush3.bf16.msra.mxu0 %v8850_v28 }
 0x627   :  { %v3037_v53 = vmul.f32 %v3023_v59, %v428_v30  ;;  %4202 = vmatprep.subr.bf16.mxu0 %v8730_v62 }
 0x629   :  { %v3045_v57 = vpack.c.bf16 %v3037_v53, %v3037_v53 }
 0x62a   :  { %4203 = vmatpush3.bf16.msra.mxu0 %v8853_v52 }
 0x62b   :  { %4204 = vmatprep.subr.bf16.mxu0 %v8730_v62  ;;  %4191 = vmatmul.mubr.bf16.vlgmr.msra.gmra.mrb[88].mxu1 %v3045_v57 }
 0x62c   :  { %4215 = vmatpush3.bf16.msra.mxu1 %v8856_v12  ;;  %4230 = vmatprep.mubr.msk.bf16.mxu1 %vm5199_vm0, %v8730_v62 }
 0x62d   :  { %4216 = vmatprep.subr.bf16.mxu1 %v8730_v62 }
 0x62e   :  { %4205 = vmatpush3.bf16.msra.mxu0 %v8859_v9 }
 0x62f   :  { %4206 = vmatprep.subr.bf16.mxu0 %v8730_v62 }
 0x630   :  { %4217 = vmatpush3.bf16.msra.mxu1 %v8864_v56 }
 0x631   :  { %4218 = vmatprep.subr.bf16.mxu1 %v8730_v62 }
 0x632   :  { %4207 = vmatpush3.bf16.msra.mxu0 %v3102_v47 }
 0x633   :  { %4208 = vmatprep.subr.bf16.mxu0 %v8730_v62 }
 0x634   :  { %4219 = vmatpush3.bf16.msra.mxu1 %v8869_v18 }
 0x635   :  { %4220 = vmatprep.subr.bf16.mxu1 %v8730_v62 }
 0x636   :  { %4209 = vmatpush3.bf16.msra.mxu0 %v3103_v51 }
 0x638   :  { %4221 = vmatpush3.bf16.msra.mxu1 %v8872_v34 }
 0x639   :  { %4222 = vmatprep.subr.bf16.mxu1 %v8730_v62 }
 0x63c   :  { %4223 = vmatpush3.bf16.msra.mxu1 %v8875_v46 }
 0x63d   :  { %4224 = vmatprep.subr.bf16.mxu1 %v8730_v62 }
 0x640   :  { %4225 = vmatpush3.bf16.msra.mxu1 %v8878_v4 }
 0x641   :  { %4226 = vmatprep.subr.bf16.mxu1 %v8730_v62 }
 0x644   :  { %4227 = vmatpush3.bf16.msra.mxu1 %v3110_v1 }
 0x645   :  { %4228 = vmatprep.subr.bf16.mxu1 %v8730_v62 }
 0x648   :  { %4229 = vmatpush3.bf16.msra.mxu1 %v3111_v41 }
 0x652   :  { %v2952_v2 = vpop.trf.xlu0 }
 0x653   :  { %v3027_v29 = vrot.slane %v2952_v2, %v7610_v42 }
 0x655   :  { %v3038_v16 = vmul.f32 %v3027_v29, %v429_v24 }
 0x657   :  { %v3046_v61 = vpack.c.bf16 %v3038_v16, %v3038_v16 }
 0x659   :  { %4211 = vmatmul.mubr.bf16.vlgmr.msra.gmra.mrb[92].mxu0 %v3046_v61 }
 0x664   :  { %v2984_v26 = vpop.trf.xlu1 }
 0x665   :  { %v3031_v58 = vrot.slane %v2984_v26, %v7610_v42 }
 0x667   :  { %v3039_v62 = vmul.f32 %v3031_v58, %v430_v5 }
 0x669   :  { %v3047_v49 = vpack.c.bf16 %v3039_v62, %v3039_v62 }
 0x66b   :  { %4231 = vmatmul.mubr.bf16.vlgmr.msra.gmra.mrb[92].mxu1 %v3047_v49 }
 0x6ac   :  { %v3266_v15 = vpop.f32.mrb[84].mxu1 }
 0x6ad   :  { %3435 = vst [vmem:[#allocation5 + $0x18] sm:$0xff] %v3266_v15  ;;  %v4152_v63 = vpop.f32.mrb[85].mxu1 }
 0x6ae   :  { %v3269_v38 = vpop.f32.mrb[86].mxu1 }
 0x6af   :  { %v4153_v7 = vpop.f32.mrb[87].mxu1 }
 0x6be   :  { %v3226_v17 = vpop.f32.mrb[84].mxu0 }
 0x6bf   :  { %3434 = vst [vmem:[#allocation5 + $0x10] sm:$0xff] %v3226_v17  ;;  %v4132_v0 = vpop.f32.mrb[85].mxu0 }
 0x6c0   :  { %v3229_v3 = vpop.f32.mrb[86].mxu0 }
 0x6c1   :  { %v4133_v30 = vpop.f32.mrb[87].mxu0 }
 0x6ec   :  { %v3306_v59 = vpop.f32.mrb[88].mxu0 }
 0x6ed   :  { %3436 = vst [vmem:[#allocation5 + $0x20] sm:$0xff] %v3306_v59  ;;  %v4172_v37 = vpop.f32.mrb[89].mxu0 }
 0x6ee   :  { %v3309_v55 = vpop.f32.mrb[90].mxu0 }
 0x6ef   :  { %v4173_v11 = vpop.f32.mrb[91].mxu0 }
 0x6fe   :  { %v3346_v28 = vpop.f32.mrb[88].mxu1 }
 0x6ff   :  { %3437 = vst [vmem:[#allocation5 + $0x28] sm:$0xff] %v3346_v28  ;;  %v4192_v42 = vpop.f32.mrb[89].mxu1 }
 0x700   :  { %v3349_v53 = vpop.f32.mrb[90].mxu1 }
 0x701   :  { %v4193_v57 = vpop.f32.mrb[91].mxu1 }
 0x72c   :  { %v3386_v32 = vpop.f32.mrb[92].mxu0 }
 0x72d   :  { %3438 = vst [vmem:[#allocation5 + $0x30] sm:$0xff] %v3386_v32  ;;  %v4212_v22 = vpop.f32.mrb[93].mxu0 }
 0x72e   :  { %v3389_v52 = vpop.f32.mrb[94].mxu0 }
 0x72f   :  { %v4213_v54 = vpop.f32.mrb[95].mxu0 }
 0x73e   :  { %v3426_v40 = vpop.f32.mrb[92].mxu1 }
 0x73f   :  { %3439 = vst [vmem:[#allocation5 + $0x38] sm:$0xff] %v3426_v40  ;;  %v4232_v12 = vpop.f32.mrb[93].mxu1 }
 0x740   :  { %v3429_v48 = vpop.f32.mrb[94].mxu1 }
 0x741   :  { %5180 = shalt.err (!%p5177_p12)
}
 0x742   :  { %s5181_s5 = scalar_lea.hbm %s7941_s3, 1024 }
 0x743   :  { %p5182_p13 = scmp.ne.s32.totalorder %s7941_s3, %s5181_s5  ;;  %p5185_p0 = scmp.lt.u32.totalorder %s5181_s5, %s7941_s3 }
 0x745   :  { %p5187_p1 = pnand %p5185_p0, %p5182_p13 }
 0x747   :  { %5190 = shalt.err (!%p5187_p1)
}
 0x748   :  { %3451 = dma.vmem_to_hbm [thread:$0]  %s3446_s1, 1024, %s7941_s3, [#allocation4], %s5196_s22, %s5196_s22, %s5197_s23   ;;  %v4233_v21 = vpop.f32.mrb[95].mxu1 }
 0x749   :  { %5193 = dma.done.wait [#allocation4], 1024  }
 0x74a   :  { %5194 = vsyncadd [#allocation4], 4294966272 }
 0x74b   :  { %3455 = vsyncpa [#allocation3], 1 }
 0x74c   :  { %3456 = vsyncpa [#allocation4], 1 }

</bundles_post_ra>
